<compile_context>
chip_gen: v7x
topology: tpu7x:2x2x1
jax: 0.10.0
libtpu: 0.0.40
codegen_flags: <defaults>
</compile_context>

<pallas_src>
import math

import numpy as np
import jax
import jax.numpy as jnp
from jax.experimental import pallas as pl
from jax.experimental.pallas import tpu as pltpu

# ----------------------------- small config ---------------------------------
# vision (SigLIP-like)
V_CHANNELS = 3
V_IMG = 16
V_PATCH = 8
V_NP = (V_IMG // V_PATCH) ** 2          # 4 image tokens
V_HID = 32
V_INT = 64
V_LAYERS = 2
V_HEADS = 4
V_HD = V_HID // V_HEADS                 # 8
LN_EPS = 1e-6
PDIM = V_CHANNELS * V_PATCH * V_PATCH   # 192

# text (Gemma)
VOCAB = 128
HID = 32
INT = 64
N_LAYERS = 2
N_HEADS = 4
N_KV = 2
HEAD_DIM = 16
ROPE_THETA = 10000.0
RMS_EPS = 1e-6

QDIM = N_HEADS * HEAD_DIM               # 64
KDIM = N_KV * HEAD_DIM                  # 32
FUSED_QKV = QDIM + KDIM + KDIM + QDIM + KDIM   # [q|k|v|q_rot|k_rot] = 224

PROJ_DIM = HID                          # projector output == text hidden
IMAGE_TOKEN_INDEX = 7
PAD_TOKEN_ID = -1                       # config.pad_token_id is None -> -1

MXU_DTYPE = jnp.bfloat16                # MXU operand dtype; accumulation is f32


# ----------------------------- in-kernel helpers -----------------------------
def _dotf32(a, b):
    return jnp.dot(a, b, preferred_element_type=jnp.float32)


def _rmsnorm(x, w_plus1):
    # Gemma RMSNorm: x * rsqrt(mean(x^2)+eps) * (1 + w); (1+w) is pre-packed.
    var = jnp.mean(x * x, axis=-1, keepdims=True)
    return x * jax.lax.rsqrt(var + RMS_EPS) * w_plus1


def _layernorm(x, w, b):
    mu = jnp.mean(x, axis=-1, keepdims=True)
    var = jnp.mean((x - mu) * (x - mu), axis=-1, keepdims=True)
    return (x - mu) * jax.lax.rsqrt(var + LN_EPS) * w + b


def _softmax_rows(s):
    s = s - jnp.max(s, axis=-1, keepdims=True)
    p = jnp.exp(s)
    return p * pl.reciprocal(jnp.sum(p, axis=-1, keepdims=True), approx=True)


# ----------------------------- fused Gemma LM kernel --------------------------
def _gemma_lm_kernel(emb_ref, cos_ref, sin_ref, wqkv_ref, wo_ref, norms_ref,
                     wgu_ref, wd_ref, lm_head_ref, out_ref):
    # GemmaModel: hidden_states = inputs_embeds * sqrt(hidden_size)
    h = emb_ref[...] * math.sqrt(HID)                     # (S, HID) f32
    cosf = cos_ref[...]                                   # (S, QDIM) tiled per head
    sinf = sin_ref[...]
    cosk = cosf[:, :KDIM]
    sink = sinf[:, :KDIM]
    scale = 1.0 / math.sqrt(HEAD_DIM)
    n_rep = N_HEADS // N_KV

    for l in range(N_LAYERS):                             # layers unrolled in-kernel
        # ------------------- self attention -------------------
        x = _rmsnorm(h, norms_ref[2 * l:2 * l + 1, :])
        xb = x.astype(MXU_DTYPE)
        # one fused lane-dense projection: [q | k | v | rotate_half(q) | rotate_half(k)]
        proj = _dotf32(xb, wqkv_ref[l])                   # (S, 224)
        q = proj[:, 0:QDIM]
        k = proj[:, QDIM:QDIM + KDIM]
        v = proj[:, QDIM + KDIM:QDIM + 2 * KDIM]
        q_rot = proj[:, QDIM + 2 * KDIM:2 * QDIM + 2 * KDIM]
        k_rot = proj[:, 2 * QDIM + 2 * KDIM:2 * QDIM + 3 * KDIM]
        # RoPE (reference convention) as two VPU FMAs
        qe = q * cosf + q_rot * sinf
        ke = k * cosk + k_rot * sink

        ohs = []
        for hh in range(N_HEADS):                         # GQA by slicing kv chunk
            kv = hh // n_rep
            qh = qe[:, hh * HEAD_DIM:(hh + 1) * HEAD_DIM]
            kh = ke[:, kv * HEAD_DIM:(kv + 1) * HEAD_DIM]
            vh = v[:, kv * HEAD_DIM:(kv + 1) * HEAD_DIM]
            s = jax.lax.dot_general(
                qh.astype(MXU_DTYPE), kh.astype(MXU_DTYPE),
                (((1,), (1,)), ((), ())),
                preferred_element_type=jnp.float32) * scale
            # all-zeros prefill mask dropped (no-op in the reference)
            p = _softmax_rows(s)
            ohs.append(_dotf32(p.astype(MXU_DTYPE), vh.astype(MXU_DTYPE)))
        o_cat = jnp.concatenate(ohs, axis=-1)             # (S, N_HEADS*HEAD_DIM)
        h = h + _dotf32(o_cat.astype(MXU_DTYPE), wo_ref[l])

        # ------------------- gated MLP -------------------
        x2 = _rmsnorm(h, norms_ref[2 * l + 1:2 * l + 2, :])
        x2b = x2.astype(MXU_DTYPE)
        gu = _dotf32(x2b, wgu_ref[l])                     # fused gate|up (S, 2*INT)
        g = gu[:, :INT]
        u = gu[:, INT:]
        mid = jax.nn.gelu(g, approximate=True) * u        # gelu tanh
        h = h + _dotf32(mid.astype(MXU_DTYPE), wd_ref[l])

    xf = _rmsnorm(h, norms_ref[2 * N_LAYERS:2 * N_LAYERS + 1, :])
    out_ref[...] = _dotf32(xf.astype(MXU_DTYPE), lm_head_ref[...])


def gemma_lm_pallas(t, embeds, cos_f, sin_f):
    B, S, _ = embeds.shape
    per_b = lambda b: (b, 0, 0)
    c2 = lambda b: (0, 0)
    c3 = lambda b: (0, 0, 0)
    in_specs = [
        pl.BlockSpec((None, S, HID), per_b),                       # embeds
        pl.BlockSpec((None, S, QDIM), per_b),                      # cos (tiled per head)
        pl.BlockSpec((None, S, QDIM), per_b),                      # sin (tiled per head)
        pl.BlockSpec((N_LAYERS, HID, FUSED_QKV), c3),              # fused qkv(+rot)
        pl.BlockSpec((N_LAYERS, QDIM, HID), c3),                   # Wo stacked
        pl.BlockSpec((2 * N_LAYERS + 1, HID), c2),                 # all rmsnorm (1+w)
        pl.BlockSpec((N_LAYERS, HID, 2 * INT), c3),                # fused gate|up
        pl.BlockSpec((N_LAYERS, INT, HID), c3),                    # down
        pl.BlockSpec((HID, VOCAB), c2),                            # lm_head^T
    ]
    return pl.pallas_call(
        _gemma_lm_kernel,
        out_shape=jax.ShapeDtypeStruct((B, S, VOCAB), jnp.float32),
        grid=(B,),
        in_specs=in_specs,
        out_specs=pl.BlockSpec((None, S, VOCAB), per_b),
        compiler_params=pltpu.CompilerParams(dimension_semantics=("parallel",)),
    )(embeds, cos_f, sin_f, t["wqkv"], t["wo"], t["norms"],
      t["wgu"], t["wd"], t["lm_head_t"])


# ----------------------------- fused vision kernel ----------------------------
def _vision_kernel(patch_ref, pw_ref, embb_ref, ln_ref, wqkv_ref, bqkv_ref,
                   wo_ref, bias2_ref, fc1_ref, b1_ref, fc2_ref,
                   post_ref, projw_ref, projb_ref, out_ref):
    # Conv2d(stride == kernel == patch) as per-patch matmul; patch bias + pos
    # embedding were pre-summed at pack time.
    x = _dotf32(patch_ref[...].astype(MXU_DTYPE), pw_ref[...]) + embb_ref[...]
    scale = V_HD ** -0.5

    for l in range(V_LAYERS):                             # layers unrolled in-kernel
        lnp = ln_ref[l]                                   # (4, V_HID): ln1w,ln1b,ln2w,ln2b
        b2 = bias2_ref[l]                                 # (2, V_HID): o_b, fc2_b

        # ------------------- attention (pre-LN) -------------------
        h = _layernorm(x, lnp[0:1, :], lnp[1:2, :])
        hb = h.astype(MXU_DTYPE)
        proj = _dotf32(hb, wqkv_ref[l]) + bqkv_ref[l]     # fused qkv (V_NP, 3*V_HID)
        q = proj[:, 0:V_HID]
        k = proj[:, V_HID:2 * V_HID]
        v = proj[:, 2 * V_HID:3 * V_HID]
        ohs = []
        for hh in range(V_HEADS):
            qh = q[:, hh * V_HD:(hh + 1) * V_HD]
            kh = k[:, hh * V_HD:(hh + 1) * V_HD]
            vh = v[:, hh * V_HD:(hh + 1) * V_HD]
            s = jax.lax.dot_general(
                qh.astype(MXU_DTYPE), kh.astype(MXU_DTYPE),
                (((1,), (1,)), ((), ())),
                preferred_element_type=jnp.float32) * scale
            p = _softmax_rows(s)
            ohs.append(_dotf32(p.astype(MXU_DTYPE), vh.astype(MXU_DTYPE)))
        o_cat = jnp.concatenate(ohs, axis=-1)             # (V_NP, V_HID)
        x = x + _dotf32(o_cat.astype(MXU_DTYPE), wo_ref[l]) + b2[0:1, :]

        # ------------------- MLP (pre-LN) -------------------
        h = _layernorm(x, lnp[2:3, :], lnp[3:4, :])
        h = jax.nn.gelu(_dotf32(h.astype(MXU_DTYPE), fc1_ref[l]) + b1_ref[l],
                        approximate=True)
        h = _dotf32(h.astype(MXU_DTYPE), fc2_ref[l]) + b2[1:2, :]
        x = x + h

    y = _layernorm(x, post_ref[0:1, :], post_ref[1:2, :])
    # multi-modal projector; PaliGemma 1/sqrt(hidden) scaling folded into weights
    y = _dotf32(y.astype(MXU_DTYPE), projw_ref[...]) + projb_ref[...]
    # lane-dense (1, V_NP*PROJ_DIM) output row (unmasked vst / dense writeback)
    out_ref[...] = jnp.concatenate([y[i:i + 1, :] for i in range(V_NP)], axis=-1)


def vision_tower_pallas(v, patches):
    B = patches.shape[0]
    per_b = lambda b: (b, 0, 0)
    c2 = lambda b: (0, 0)
    c3 = lambda b: (0, 0, 0)
    in_specs = [
        pl.BlockSpec((None, V_NP, PDIM), per_b),                   # patches
        pl.BlockSpec((PDIM, V_HID), c2),                           # patch weight^T
        pl.BlockSpec((V_NP, V_HID), c2),                           # pos + patch bias
        pl.BlockSpec((V_LAYERS, 4, V_HID), c3),                    # ln1w,ln1b,ln2w,ln2b
        pl.BlockSpec((V_LAYERS, V_HID, 3 * V_HID), c3),            # fused Wqkv
        pl.BlockSpec((V_LAYERS, 1, 3 * V_HID), c3),                # fused bqkv
        pl.BlockSpec((V_LAYERS, V_HID, V_HID), c3),                # Wo
        pl.BlockSpec((V_LAYERS, 2, V_HID), c3),                    # o_b, fc2_b
        pl.BlockSpec((V_LAYERS, V_HID, V_INT), c3),                # fc1
        pl.BlockSpec((V_LAYERS, 1, V_INT), c3),                    # fc1 b
        pl.BlockSpec((V_LAYERS, V_INT, V_HID), c3),                # fc2
        pl.BlockSpec((2, V_HID), c2),                              # post-ln w, b
        pl.BlockSpec((V_HID, PROJ_DIM), c2),                       # projector w^T (scaled)
        pl.BlockSpec((1, PROJ_DIM), c2),                           # projector b (scaled)
    ]
    return pl.pallas_call(
        _vision_kernel,
        out_shape=jax.ShapeDtypeStruct((B, 1, V_NP * PROJ_DIM), jnp.float32),
        grid=(B,),
        in_specs=in_specs,
        out_specs=pl.BlockSpec((None, 1, V_NP * PROJ_DIM), per_b),
        compiler_params=pltpu.CompilerParams(dimension_semantics=("parallel",)),
    )(patches, v["patch_w_t"], v["emb_bias"], v["ln"], v["wqkv"], v["bqkv"],
      v["wo"], v["bias2"], v["fc1"], v["b1"], v["fc2"],
      v["post"], v["proj_w_t"], v["proj_b"])


# ----------------------------- glue (plain JAX) -------------------------------
def _rotate_half_matrix(dim):
    # rotate_half(x) == x @ R  for the reference's interleaved-slice convention:
    #   rotate_half(x)[m] = -x[2m+1]        for m <  dim/2
    #   rotate_half(x)[m] =  x[2(m-dim/2)]  for m >= dim/2
    r = np.zeros((dim, dim), np.float32)
    half = dim // 2
    for m in range(half):
        r[2 * m + 1, m] = -1.0
    for m in range(half, dim):
        r[2 * (m - half), m] = 1.0
    return r


def rope_cos_sin(position_ids, head_dim, base):
    inv_freq = 1.0 / (base ** (jnp.arange(0, head_dim, 2, dtype=jnp.float32) / head_dim))
    freqs = position_ids[:, :, None].astype(jnp.float32) * inv_freq[None, None, :]
    emb = jnp.concatenate([freqs, freqs], axis=-1)
    return jnp.cos(emb), jnp.sin(emb)


def paligemma_forward(packed, input_ids, pixel_values, attention_mask):
    # reference asserts attention_mask == 1 everywhere (prefill, no padding)
    B, S = input_ids.shape

    # 1) token embeddings (gather — glue)
    inputs_embeds = packed["text"]["embed"][input_ids]                  # (B, S, HID)

    # 2) patch extraction (glue) + fused vision tower / projector / scaling
    P = V_PATCH
    n = V_IMG // P
    patches = pixel_values.astype(jnp.float32).reshape(B, V_CHANNELS, n, P, n, P)
    patches = patches.transpose(0, 2, 4, 1, 3, 5).reshape(B, n * n, V_CHANNELS * P * P)
    img_flat = vision_tower_pallas(packed["vision"], patches)           # (B, 1, NP*HID)
    img_feat_scaled = img_flat.reshape(B, V_NP, PROJ_DIM)

    # 3) merge text / image / pad tokens (masked_scatter semantics — glue)
    text_mask = (input_ids != IMAGE_TOKEN_INDEX) & (input_ids != PAD_TOKEN_ID)
    image_mask = input_ids == IMAGE_TOKEN_INDEX
    pad_mask = input_ids == PAD_TOKEN_ID
    img_mask_flat = image_mask.reshape(-1)
    img_idx = jnp.cumsum(img_mask_flat.astype(jnp.int32)) - 1
    scaled_flat = img_feat_scaled.reshape(B * V_NP, HID)
    gathered = scaled_flat[jnp.clip(img_idx, 0, B * V_NP - 1)]
    emb_flat = inputs_embeds.reshape(B * S, HID)
    final = jnp.where(
        img_mask_flat[:, None],
        gathered,
        jnp.where(text_mask.reshape(-1)[:, None], emb_flat, 0.0),
    )
    final = jnp.where(pad_mask.reshape(-1)[:, None], 0.0, final).reshape(B, S, HID)

    # prefill: additive mask is all zeros in the reference -> dropped entirely.
    position_ids = jnp.where(attention_mask == 0, 1, jnp.cumsum(attention_mask, axis=-1))
    cos, sin = rope_cos_sin(position_ids.astype(jnp.float32), HEAD_DIM, ROPE_THETA)
    cos_f = jnp.tile(cos, (1, 1, N_HEADS))                              # (B, S, QDIM)
    sin_f = jnp.tile(sin, (1, 1, N_HEADS))

    # 4) fused Gemma decoder stack + final norm + lm_head
    return gemma_lm_pallas(packed["text"], final, cos_f, sin_f)


# ----------------------------- parameter init / packing -----------------------
def init_params(key):
    keys = iter(jax.random.split(key, 256))

    def nrm(shape, scale=0.02):
        return jax.random.normal(next(keys), shape, jnp.float32) * scale

    vision_layers = []
    for _ in range(V_LAYERS):
        vision_layers.append(dict(
            ln1_w=jnp.ones((V_HID,), jnp.float32), ln1_b=jnp.zeros((V_HID,), jnp.float32),
            q_w=nrm((V_HID, V_HID)), q_b=nrm((V_HID,)),
            k_w=nrm((V_HID, V_HID)), k_b=nrm((V_HID,)),
            v_w=nrm((V_HID, V_HID)), v_b=nrm((V_HID,)),
            o_w=nrm((V_HID, V_HID)), o_b=nrm((V_HID,)),
            ln2_w=jnp.ones((V_HID,), jnp.float32), ln2_b=jnp.zeros((V_HID,), jnp.float32),
            fc1_w=nrm((V_INT, V_HID)), fc1_b=nrm((V_INT,)),
            fc2_w=nrm((V_HID, V_INT)), fc2_b=nrm((V_HID,)),
        ))
    vision = dict(
        patch_w=nrm((V_HID, PDIM)),
        patch_b=nrm((V_HID,)),
        pos_embed=nrm((V_NP, V_HID)),
        layers=vision_layers,
        post_ln_w=jnp.ones((V_HID,), jnp.float32),
        post_ln_b=jnp.zeros((V_HID,), jnp.float32),
    )

    text_layers = []
    for _ in range(N_LAYERS):
        text_layers.append(dict(
            in_ln=jnp.zeros((HID,), jnp.float32),            # GemmaRMSNorm init = zeros
            q_w=nrm((N_HEADS * HEAD_DIM, HID)),
            k_w=nrm((N_KV * HEAD_DIM, HID)),
            v_w=nrm((N_KV * HEAD_DIM, HID)),
            o_w=nrm((HID, N_HEADS * HEAD_DIM)),
            post_ln=jnp.zeros((HID,), jnp.float32),
            gate_w=nrm((INT, HID)),
            up_w=nrm((INT, HID)),
            down_w=nrm((HID, INT)),
        ))
    # TODO(synk): reference lm_head is independently initialized (tie_weights not
    # called in forward), so it stays untied here.
    text = dict(
        embed=nrm((VOCAB, HID)),
        layers=text_layers,
        norm=jnp.zeros((HID,), jnp.float32),
        lm_head=nrm((VOCAB, HID)),
    )

    return dict(
        vision=vision,
        proj_w=nrm((PROJ_DIM, V_HID)),
        proj_b=nrm((PROJ_DIM,)),
        text=text,
    )


def pack_params(params):
    """One-time repacking (outside the forward path): transpose to matmul layout,
    fuse QKV (+ rotate_half fold) / gate|up / biases, stack per layer, cast MXU
    weights to bf16, pre-add the RMSNorm (1+w), fold 1/sqrt(hidden) into the
    projector."""
    bf = lambda w: w.astype(MXU_DTYPE)
    R = _rotate_half_matrix(HEAD_DIM)
    Rq = jnp.asarray(np.kron(np.eye(N_HEADS, dtype=np.float32), R))   # (QDIM, QDIM)
    Rk = jnp.asarray(np.kron(np.eye(N_KV, dtype=np.float32), R))      # (KDIM, KDIM)

    # ---- text ----
    tl = params["text"]["layers"]

    def fused_qkv(lp):
        wq = lp["q_w"].T            # (HID, QDIM)
        wk = lp["k_w"].T            # (HID, KDIM)
        wv = lp["v_w"].T            # (HID, KDIM)
        return jnp.concatenate([wq, wk, wv, wq @ Rq, wk @ Rk], axis=1)   # (HID, 224)

    text = dict(
        embed=params["text"]["embed"],
        wqkv=bf(jnp.stack([fused_qkv(lp) for lp in tl])),
        wo=bf(jnp.stack([lp["o_w"].T for lp in tl])),
        norms=jnp.stack(
            [w for lp in tl for w in (1.0 + lp["in_ln"], 1.0 + lp["post_ln"])]
            + [1.0 + params["text"]["norm"]]),
        wgu=bf(jnp.stack([jnp.concatenate([lp["gate_w"].T, lp["up_w"].T], axis=1)
                          for lp in tl])),
        wd=bf(jnp.stack([lp["down_w"].T for lp in tl])),
        lm_head_t=bf(params["text"]["lm_head"].T),
    )

    # ---- vision ----
    vl = params["vision"]["layers"]
    inv = 1.0 / math.sqrt(HID)      # PaliGemma image-feature scaling, folded in
    vision = dict(
        patch_w_t=bf(params["vision"]["patch_w"].T),
        emb_bias=params["vision"]["pos_embed"] + params["vision"]["patch_b"][None, :],
        ln=jnp.stack([jnp.stack([lp["ln1_w"], lp["ln1_b"], lp["ln2_w"], lp["ln2_b"]])
                      for lp in vl]),
        wqkv=bf(jnp.stack([jnp.concatenate([lp["q_w"].T, lp["k_w"].T, lp["v_w"].T], axis=1)
                           for lp in vl])),
        bqkv=jnp.stack([jnp.concatenate([lp["q_b"], lp["k_b"], lp["v_b"]]).reshape(1, 3 * V_HID)
                        for lp in vl]),
        wo=bf(jnp.stack([lp["o_w"].T for lp in vl])),
        bias2=jnp.stack([jnp.stack([lp["o_b"], lp["fc2_b"]]) for lp in vl]),
        fc1=bf(jnp.stack([lp["fc1_w"].T for lp in vl])),
        b1=jnp.stack([lp["fc1_b"].reshape(1, V_INT) for lp in vl]),
        fc2=bf(jnp.stack([lp["fc2_w"].T for lp in vl])),
        post=jnp.stack([params["vision"]["post_ln_w"], params["vision"]["post_ln_b"]]),
        proj_w_t=bf(params["proj_w"].T * inv),
        proj_b=(params["proj_b"] * inv).reshape(1, PROJ_DIM),
    )
    return dict(text=text, vision=vision)


# ----------------------------- main -------------------------------------------
if __name__ == "__main__":
    key = jax.random.PRNGKey(0)
    k_param, k_pix = jax.random.split(key)

    params = init_params(k_param)
    packed = pack_params(params)          # one-time weight repacking (not in fwd)

    B, S = 2, 8
    input_ids = jnp.array(
        [
            [IMAGE_TOKEN_INDEX] * V_NP + [5, 23, 99, 42],
            [IMAGE_TOKEN_INDEX] * V_NP + [11, 3, 64, 120],
        ],
        dtype=jnp.int32,
    )
    pixel_values = jax.random.normal(k_pix, (B, V_CHANNELS, V_IMG, V_IMG), jnp.float32)
    attention_mask = jnp.ones((B, S), jnp.int32)

    fwd = jax.jit(paligemma_forward)
    logits = fwd(packed, input_ids, pixel_values, attention_mask)
    logits = jax.block_until_ready(logits)
    assert logits.shape == (B, S, VOCAB)
    assert bool(jnp.all(jnp.isfinite(logits)))
    print("KERNEL_OK")
</pallas_src>

<mosaic_0001>
module attributes {stable_mosaic.version = 11 : i64} {
  func.func @_vision_kernel(%arg0: i32, %arg1: memref<1x4x192xf32, #tpu.memory_space<vmem>>, %arg2: memref<192x32xbf16, #tpu.memory_space<vmem>>, %arg3: memref<4x32xf32, #tpu.memory_space<vmem>>, %arg4: memref<2x4x32xf32, #tpu.memory_space<vmem>>, %arg5: memref<2x32x96xbf16, #tpu.memory_space<vmem>>, %arg6: memref<2x1x96xf32, #tpu.memory_space<vmem>>, %arg7: memref<2x32x32xbf16, #tpu.memory_space<vmem>>, %arg8: memref<2x2x32xf32, #tpu.memory_space<vmem>>, %arg9: memref<2x32x64xbf16, #tpu.memory_space<vmem>>, %arg10: memref<2x1x64xf32, #tpu.memory_space<vmem>>, %arg11: memref<2x64x32xbf16, #tpu.memory_space<vmem>>, %arg12: memref<2x32xf32, #tpu.memory_space<vmem>>, %arg13: memref<32x32xbf16, #tpu.memory_space<vmem>>, %arg14: memref<1x32xf32, #tpu.memory_space<vmem>>, %arg15: memref<1x1x128xf32, #tpu.memory_space<vmem>>) attributes {dimension_semantics = [#tpu.dimension_semantics<parallel>], iteration_bounds = array<i64: 2>, scalar_prefetch = 0 : i64, scratch_operands = 0 : i64, tpu.core_type = #tpu.core_type<tc>, window_params = [{transform_indices = @transform_0, window_bounds = array<i64: 1, 4, 192>}, {pipeline_mode = #tpu.pipeline_mode<synchronous>, transform_indices = @transform_1, window_bounds = array<i64: 192, 32>}, {pipeline_mode = #tpu.pipeline_mode<synchronous>, transform_indices = @transform_2, window_bounds = array<i64: 4, 32>}, {pipeline_mode = #tpu.pipeline_mode<synchronous>, transform_indices = @transform_3, window_bounds = array<i64: 2, 4, 32>}, {pipeline_mode = #tpu.pipeline_mode<synchronous>, transform_indices = @transform_4, window_bounds = array<i64: 2, 32, 96>}, {pipeline_mode = #tpu.pipeline_mode<synchronous>, transform_indices = @transform_5, window_bounds = array<i64: 2, 1, 96>}, {pipeline_mode = #tpu.pipeline_mode<synchronous>, transform_indices = @transform_6, window_bounds = array<i64: 2, 32, 32>}, {pipeline_mode = #tpu.pipeline_mode<synchronous>, transform_indices = @transform_7, window_bounds = array<i64: 2, 2, 32>}, {pipeline_mode = #tpu.pipeline_mode<synchronous>, transform_indices = @transform_8, window_bounds = array<i64: 2, 32, 64>}, {pipeline_mode = #tpu.pipeline_mode<synchronous>, transform_indices = @transform_9, window_bounds = array<i64: 2, 1, 64>}, {pipeline_mode = #tpu.pipeline_mode<synchronous>, transform_indices = @transform_10, window_bounds = array<i64: 2, 64, 32>}, {pipeline_mode = #tpu.pipeline_mode<synchronous>, transform_indices = @transform_11, window_bounds = array<i64: 2, 32>}, {pipeline_mode = #tpu.pipeline_mode<synchronous>, transform_indices = @transform_12, window_bounds = array<i64: 32, 32>}, {pipeline_mode = #tpu.pipeline_mode<synchronous>, transform_indices = @transform_13, window_bounds = array<i64: 1, 32>}, {transform_indices = @transform_14, window_bounds = array<i64: 1, 1, 128>}]} {
    %c0 = arith.constant 0 : index
    %c0_0 = arith.constant 0 : index
    %c0_1 = arith.constant 0 : index
    %0 = vector.load %arg1[%c0, %c0_0, %c0_1] : memref<1x4x192xf32, #tpu.memory_space<vmem>>, vector<1x4x192xf32>
    %1 = vector.shape_cast %0 : vector<1x4x192xf32> to vector<4x192xf32>
    %2 = arith.truncf %1 : vector<4x192xf32> to vector<4x192xbf16>
    %c0_2 = arith.constant 0 : index
    %c0_3 = arith.constant 0 : index
    %3 = vector.load %arg2[%c0_2, %c0_3] : memref<192x32xbf16, #tpu.memory_space<vmem>>, vector<192x32xbf16>
    %cst = arith.constant dense<0.000000e+00> : vector<4x32xf32>
    %4 = tpu.matmul %2, %3, %cst {dimension_numbers = #tpu.dot_dimension_numbers<[1], [0], [0], [1], [0, 0, 1, 1], [], []>} : vector<4x192xbf16>, vector<192x32xbf16>, vector<4x32xf32> -> vector<4x32xf32>
    %c0_4 = arith.constant 0 : index
    %c0_5 = arith.constant 0 : index
    %5 = vector.load %arg3[%c0_4, %c0_5] : memref<4x32xf32, #tpu.memory_space<vmem>>, vector<4x32xf32>
    %6 = arith.addf %4, %5 : vector<4x32xf32>
    %c0_6 = arith.constant 0 : index
    %c0_7 = arith.constant 0 : index
    %c0_8 = arith.constant 0 : index
    %7 = vector.load %arg4[%c0_6, %c0_7, %c0_8] : memref<2x4x32xf32, #tpu.memory_space<vmem>>, vector<1x4x32xf32>
    %8 = vector.shape_cast %7 : vector<1x4x32xf32> to vector<4x32xf32>
    %c0_9 = arith.constant 0 : index
    %c0_10 = arith.constant 0 : index
    %c0_11 = arith.constant 0 : index
    %9 = vector.load %arg8[%c0_9, %c0_10, %c0_11] : memref<2x2x32xf32, #tpu.memory_space<vmem>>, vector<1x2x32xf32>
    %10 = vector.shape_cast %9 : vector<1x2x32xf32> to vector<2x32xf32>
    %11 = vector.extract_strided_slice %8 {offsets = [0, 0], sizes = [1, 32], strides = [1, 1]} : vector<4x32xf32> to vector<1x32xf32>
    %12 = vector.extract_strided_slice %8 {offsets = [1, 0], sizes = [1, 32], strides = [1, 1]} : vector<4x32xf32> to vector<1x32xf32>
    %cst_12 = arith.constant dense<0.000000e+00> : vector<4xf32>
    %13 = vector.multi_reduction <add>, %6, %cst_12 [1] : vector<4x32xf32> to vector<4xf32>
    %14 = vector.shape_cast %13 : vector<4xf32> to vector<4x1xf32>
    %cst_13 = arith.constant 3.200000e+01 : f32
    %15 = vector.broadcast %cst_13 : f32 to vector<4x1xf32>
    %16 = arith.divf %14, %15 : vector<4x1xf32>
    %17 = vector.broadcast %16 : vector<4x1xf32> to vector<4x32xf32>
    %18 = arith.subf %6, %17 : vector<4x32xf32>
    %19 = vector.broadcast %16 : vector<4x1xf32> to vector<4x32xf32>
    %20 = arith.subf %6, %19 : vector<4x32xf32>
    %21 = arith.mulf %18, %20 : vector<4x32xf32>
    %cst_14 = arith.constant dense<0.000000e+00> : vector<4xf32>
    %22 = vector.multi_reduction <add>, %21, %cst_14 [1] : vector<4x32xf32> to vector<4xf32>
    %23 = vector.shape_cast %22 : vector<4xf32> to vector<4x1xf32>
    %cst_15 = arith.constant 3.200000e+01 : f32
    %24 = vector.broadcast %cst_15 : f32 to vector<4x1xf32>
    %25 = arith.divf %23, %24 : vector<4x1xf32>
    %26 = vector.broadcast %16 : vector<4x1xf32> to vector<4x32xf32>
    %27 = arith.subf %6, %26 : vector<4x32xf32>
    %cst_16 = arith.constant 9.99999997E-7 : f32
    %28 = vector.broadcast %cst_16 : f32 to vector<4x1xf32>
    %29 = arith.addf %25, %28 : vector<4x1xf32>
    %30 = math.rsqrt %29 : vector<4x1xf32>
    %31 = vector.broadcast %30 : vector<4x1xf32> to vector<4x32xf32>
    %32 = arith.mulf %27, %31 : vector<4x32xf32>
    %33 = vector.broadcast %11 : vector<1x32xf32> to vector<4x32xf32>
    %34 = arith.mulf %32, %33 : vector<4x32xf32>
    %35 = vector.broadcast %12 : vector<1x32xf32> to vector<4x32xf32>
    %36 = arith.addf %34, %35 : vector<4x32xf32>
    %37 = arith.truncf %36 : vector<4x32xf32> to vector<4x32xbf16>
    %c0_17 = arith.constant 0 : index
    %c0_18 = arith.constant 0 : index
    %c0_19 = arith.constant 0 : index
    %38 = vector.load %arg5[%c0_17, %c0_18, %c0_19] : memref<2x32x96xbf16, #tpu.memory_space<vmem>>, vector<1x32x96xbf16>
    %39 = vector.shape_cast %38 : vector<1x32x96xbf16> to vector<32x96xbf16>
    %cst_20 = arith.constant dense<0.000000e+00> : vector<4x96xf32>
    %40 = tpu.matmul %37, %39, %cst_20 {dimension_numbers = #tpu.dot_dimension_numbers<[1], [0], [0], [1], [0, 0, 1, 1], [], []>} : vector<4x32xbf16>, vector<32x96xbf16>, vector<4x96xf32> -> vector<4x96xf32>
    %c0_21 = arith.constant 0 : index
    %c0_22 = arith.constant 0 : index
    %c0_23 = arith.constant 0 : index
    %41 = vector.load %arg6[%c0_21, %c0_22, %c0_23] : memref<2x1x96xf32, #tpu.memory_space<vmem>>, vector<1x1x96xf32>
    %42 = vector.shape_cast %41 : vector<1x1x96xf32> to vector<1x96xf32>
    %43 = vector.broadcast %42 : vector<1x96xf32> to vector<4x96xf32>
    %44 = arith.addf %40, %43 : vector<4x96xf32>
    %45 = vector.extract_strided_slice %44 {offsets = [0, 0], sizes = [4, 32], strides = [1, 1]} : vector<4x96xf32> to vector<4x32xf32>
    %46 = vector.extract_strided_slice %44 {offsets = [0, 32], sizes = [4, 32], strides = [1, 1]} : vector<4x96xf32> to vector<4x32xf32>
    %47 = vector.extract_strided_slice %44 {offsets = [0, 64], sizes = [4, 32], strides = [1, 1]} : vector<4x96xf32> to vector<4x32xf32>
    %48 = vector.extract_strided_slice %45 {offsets = [0, 0], sizes = [4, 8], strides = [1, 1]} : vector<4x32xf32> to vector<4x8xf32>
    %49 = vector.extract_strided_slice %46 {offsets = [0, 0], sizes = [4, 8], strides = [1, 1]} : vector<4x32xf32> to vector<4x8xf32>
    %50 = vector.extract_strided_slice %47 {offsets = [0, 0], sizes = [4, 8], strides = [1, 1]} : vector<4x32xf32> to vector<4x8xf32>
    %51 = arith.truncf %48 : vector<4x8xf32> to vector<4x8xbf16>
    %52 = arith.truncf %49 : vector<4x8xf32> to vector<4x8xbf16>
    %cst_24 = arith.constant dense<0.000000e+00> : vector<4x4xf32>
    %53 = tpu.matmul %51, %52, %cst_24 {dimension_numbers = #tpu.dot_dimension_numbers<[1], [1], [0], [0], [0, 0, 1, 0], [], []>} : vector<4x8xbf16>, vector<4x8xbf16>, vector<4x4xf32> -> vector<4x4xf32>
    %cst_25 = arith.constant 0.353553385 : f32
    %54 = vector.broadcast %cst_25 : f32 to vector<4x4xf32>
    %55 = arith.mulf %53, %54 : vector<4x4xf32>
    %cst_26 = arith.constant dense<0xFF800000> : vector<4xf32>
    %56 = vector.multi_reduction <maximumf>, %55, %cst_26 [1] : vector<4x4xf32> to vector<4xf32>
    %57 = vector.shape_cast %56 : vector<4xf32> to vector<4x1xf32>
    %58 = vector.broadcast %57 : vector<4x1xf32> to vector<4x4xf32>
    %59 = arith.subf %55, %58 : vector<4x4xf32>
    %60 = math.exp %59 : vector<4x4xf32>
    %cst_27 = arith.constant dense<0.000000e+00> : vector<4xf32>
    %61 = vector.multi_reduction <add>, %60, %cst_27 [1] : vector<4x4xf32> to vector<4xf32>
    %62 = vector.shape_cast %61 : vector<4xf32> to vector<4x1xf32>
    %63 = tpu.reciprocal %62 {approx = true} : vector<4x1xf32> -> vector<4x1xf32>
    %64 = vector.broadcast %63 : vector<4x1xf32> to vector<4x4xf32>
    %65 = arith.mulf %60, %64 : vector<4x4xf32>
    %66 = arith.truncf %65 : vector<4x4xf32> to vector<4x4xbf16>
    %67 = arith.truncf %50 : vector<4x8xf32> to vector<4x8xbf16>
    %cst_28 = arith.constant dense<0.000000e+00> : vector<4x8xf32>
    %68 = tpu.matmul %66, %67, %cst_28 {dimension_numbers = #tpu.dot_dimension_numbers<[1], [0], [0], [1], [0, 0, 1, 1], [], []>} : vector<4x4xbf16>, vector<4x8xbf16>, vector<4x8xf32> -> vector<4x8xf32>
    %69 = vector.extract_strided_slice %45 {offsets = [0, 8], sizes = [4, 8], strides = [1, 1]} : vector<4x32xf32> to vector<4x8xf32>
    %70 = vector.extract_strided_slice %46 {offsets = [0, 8], sizes = [4, 8], strides = [1, 1]} : vector<4x32xf32> to vector<4x8xf32>
    %71 = vector.extract_strided_slice %47 {offsets = [0, 8], sizes = [4, 8], strides = [1, 1]} : vector<4x32xf32> to vector<4x8xf32>
    %72 = arith.truncf %69 : vector<4x8xf32> to vector<4x8xbf16>
    %73 = arith.truncf %70 : vector<4x8xf32> to vector<4x8xbf16>
    %cst_29 = arith.constant dense<0.000000e+00> : vector<4x4xf32>
    %74 = tpu.matmul %72, %73, %cst_29 {dimension_numbers = #tpu.dot_dimension_numbers<[1], [1], [0], [0], [0, 0, 1, 0], [], []>} : vector<4x8xbf16>, vector<4x8xbf16>, vector<4x4xf32> -> vector<4x4xf32>
    %cst_30 = arith.constant 0.353553385 : f32
    %75 = vector.broadcast %cst_30 : f32 to vector<4x4xf32>
    %76 = arith.mulf %74, %75 : vector<4x4xf32>
    %cst_31 = arith.constant dense<0xFF800000> : vector<4xf32>
    %77 = vector.multi_reduction <maximumf>, %76, %cst_31 [1] : vector<4x4xf32> to vector<4xf32>
    %78 = vector.shape_cast %77 : vector<4xf32> to vector<4x1xf32>
    %79 = vector.broadcast %78 : vector<4x1xf32> to vector<4x4xf32>
    %80 = arith.subf %76, %79 : vector<4x4xf32>
    %81 = math.exp %80 : vector<4x4xf32>
    %cst_32 = arith.constant dense<0.000000e+00> : vector<4xf32>
    %82 = vector.multi_reduction <add>, %81, %cst_32 [1] : vector<4x4xf32> to vector<4xf32>
    %83 = vector.shape_cast %82 : vector<4xf32> to vector<4x1xf32>
    %84 = tpu.reciprocal %83 {approx = true} : vector<4x1xf32> -> vector<4x1xf32>
    %85 = vector.broadcast %84 : vector<4x1xf32> to vector<4x4xf32>
    %86 = arith.mulf %81, %85 : vector<4x4xf32>
    %87 = arith.truncf %86 : vector<4x4xf32> to vector<4x4xbf16>
    %88 = arith.truncf %71 : vector<4x8xf32> to vector<4x8xbf16>
    %cst_33 = arith.constant dense<0.000000e+00> : vector<4x8xf32>
    %89 = tpu.matmul %87, %88, %cst_33 {dimension_numbers = #tpu.dot_dimension_numbers<[1], [0], [0], [1], [0, 0, 1, 1], [], []>} : vector<4x4xbf16>, vector<4x8xbf16>, vector<4x8xf32> -> vector<4x8xf32>
    %90 = vector.extract_strided_slice %45 {offsets = [0, 16], sizes = [4, 8], strides = [1, 1]} : vector<4x32xf32> to vector<4x8xf32>
    %91 = vector.extract_strided_slice %46 {offsets = [0, 16], sizes = [4, 8], strides = [1, 1]} : vector<4x32xf32> to vector<4x8xf32>
    %92 = vector.extract_strided_slice %47 {offsets = [0, 16], sizes = [4, 8], strides = [1, 1]} : vector<4x32xf32> to vector<4x8xf32>
    %93 = arith.truncf %90 : vector<4x8xf32> to vector<4x8xbf16>
    %94 = arith.truncf %91 : vector<4x8xf32> to vector<4x8xbf16>
    %cst_34 = arith.constant dense<0.000000e+00> : vector<4x4xf32>
    %95 = tpu.matmul %93, %94, %cst_34 {dimension_numbers = #tpu.dot_dimension_numbers<[1], [1], [0], [0], [0, 0, 1, 0], [], []>} : vector<4x8xbf16>, vector<4x8xbf16>, vector<4x4xf32> -> vector<4x4xf32>
    %cst_35 = arith.constant 0.353553385 : f32
    %96 = vector.broadcast %cst_35 : f32 to vector<4x4xf32>
    %97 = arith.mulf %95, %96 : vector<4x4xf32>
    %cst_36 = arith.constant dense<0xFF800000> : vector<4xf32>
    %98 = vector.multi_reduction <maximumf>, %97, %cst_36 [1] : vector<4x4xf32> to vector<4xf32>
    %99 = vector.shape_cast %98 : vector<4xf32> to vector<4x1xf32>
    %100 = vector.broadcast %99 : vector<4x1xf32> to vector<4x4xf32>
    %101 = arith.subf %97, %100 : vector<4x4xf32>
    %102 = math.exp %101 : vector<4x4xf32>
    %cst_37 = arith.constant dense<0.000000e+00> : vector<4xf32>
    %103 = vector.multi_reduction <add>, %102, %cst_37 [1] : vector<4x4xf32> to vector<4xf32>
    %104 = vector.shape_cast %103 : vector<4xf32> to vector<4x1xf32>
    %105 = tpu.reciprocal %104 {approx = true} : vector<4x1xf32> -> vector<4x1xf32>
    %106 = vector.broadcast %105 : vector<4x1xf32> to vector<4x4xf32>
    %107 = arith.mulf %102, %106 : vector<4x4xf32>
    %108 = arith.truncf %107 : vector<4x4xf32> to vector<4x4xbf16>
    %109 = arith.truncf %92 : vector<4x8xf32> to vector<4x8xbf16>
    %cst_38 = arith.constant dense<0.000000e+00> : vector<4x8xf32>
    %110 = tpu.matmul %108, %109, %cst_38 {dimension_numbers = #tpu.dot_dimension_numbers<[1], [0], [0], [1], [0, 0, 1, 1], [], []>} : vector<4x4xbf16>, vector<4x8xbf16>, vector<4x8xf32> -> vector<4x8xf32>
    %111 = vector.extract_strided_slice %45 {offsets = [0, 24], sizes = [4, 8], strides = [1, 1]} : vector<4x32xf32> to vector<4x8xf32>
    %112 = vector.extract_strided_slice %46 {offsets = [0, 24], sizes = [4, 8], strides = [1, 1]} : vector<4x32xf32> to vector<4x8xf32>
    %113 = vector.extract_strided_slice %47 {offsets = [0, 24], sizes = [4, 8], strides = [1, 1]} : vector<4x32xf32> to vector<4x8xf32>
    %114 = arith.truncf %111 : vector<4x8xf32> to vector<4x8xbf16>
    %115 = arith.truncf %112 : vector<4x8xf32> to vector<4x8xbf16>
    %cst_39 = arith.constant dense<0.000000e+00> : vector<4x4xf32>
    %116 = tpu.matmul %114, %115, %cst_39 {dimension_numbers = #tpu.dot_dimension_numbers<[1], [1], [0], [0], [0, 0, 1, 0], [], []>} : vector<4x8xbf16>, vector<4x8xbf16>, vector<4x4xf32> -> vector<4x4xf32>
    %cst_40 = arith.constant 0.353553385 : f32
    %117 = vector.broadcast %cst_40 : f32 to vector<4x4xf32>
    %118 = arith.mulf %116, %117 : vector<4x4xf32>
    %cst_41 = arith.constant dense<0xFF800000> : vector<4xf32>
    %119 = vector.multi_reduction <maximumf>, %118, %cst_41 [1] : vector<4x4xf32> to vector<4xf32>
    %120 = vector.shape_cast %119 : vector<4xf32> to vector<4x1xf32>
    %121 = vector.broadcast %120 : vector<4x1xf32> to vector<4x4xf32>
    %122 = arith.subf %118, %121 : vector<4x4xf32>
    %123 = math.exp %122 : vector<4x4xf32>
    %cst_42 = arith.constant dense<0.000000e+00> : vector<4xf32>
    %124 = vector.multi_reduction <add>, %123, %cst_42 [1] : vector<4x4xf32> to vector<4xf32>
    %125 = vector.shape_cast %124 : vector<4xf32> to vector<4x1xf32>
    %126 = tpu.reciprocal %125 {approx = true} : vector<4x1xf32> -> vector<4x1xf32>
    %127 = vector.broadcast %126 : vector<4x1xf32> to vector<4x4xf32>
    %128 = arith.mulf %123, %127 : vector<4x4xf32>
    %129 = arith.truncf %128 : vector<4x4xf32> to vector<4x4xbf16>
    %130 = arith.truncf %113 : vector<4x8xf32> to vector<4x8xbf16>
    %cst_43 = arith.constant dense<0.000000e+00> : vector<4x8xf32>
    %131 = tpu.matmul %129, %130, %cst_43 {dimension_numbers = #tpu.dot_dimension_numbers<[1], [0], [0], [1], [0, 0, 1, 1], [], []>} : vector<4x4xbf16>, vector<4x8xbf16>, vector<4x8xf32> -> vector<4x8xf32>
    %132 = tpu.concatenate %68, %89, %110, %131 in 1 : vector<4x8xf32>, vector<4x8xf32>, vector<4x8xf32>, vector<4x8xf32> -> vector<4x32xf32>
    %133 = arith.truncf %132 : vector<4x32xf32> to vector<4x32xbf16>
    %c0_44 = arith.constant 0 : index
    %c0_45 = arith.constant 0 : index
    %c0_46 = arith.constant 0 : index
    %134 = vector.load %arg7[%c0_44, %c0_45, %c0_46] : memref<2x32x32xbf16, #tpu.memory_space<vmem>>, vector<1x32x32xbf16>
    %135 = vector.shape_cast %134 : vector<1x32x32xbf16> to vector<32x32xbf16>
    %cst_47 = arith.constant dense<0.000000e+00> : vector<4x32xf32>
    %136 = tpu.matmul %133, %135, %cst_47 {dimension_numbers = #tpu.dot_dimension_numbers<[1], [0], [0], [1], [0, 0, 1, 1], [], []>} : vector<4x32xbf16>, vector<32x32xbf16>, vector<4x32xf32> -> vector<4x32xf32>
    %137 = arith.addf %6, %136 : vector<4x32xf32>
    %138 = vector.extract_strided_slice %10 {offsets = [0, 0], sizes = [1, 32], strides = [1, 1]} : vector<2x32xf32> to vector<1x32xf32>
    %139 = vector.broadcast %138 : vector<1x32xf32> to vector<4x32xf32>
    %140 = arith.addf %137, %139 : vector<4x32xf32>
    %141 = vector.extract_strided_slice %8 {offsets = [2, 0], sizes = [1, 32], strides = [1, 1]} : vector<4x32xf32> to vector<1x32xf32>
    %142 = vector.extract_strided_slice %8 {offsets = [3, 0], sizes = [1, 32], strides = [1, 1]} : vector<4x32xf32> to vector<1x32xf32>
    %cst_48 = arith.constant dense<0.000000e+00> : vector<4xf32>
    %143 = vector.multi_reduction <add>, %140, %cst_48 [1] : vector<4x32xf32> to vector<4xf32>
    %144 = vector.shape_cast %143 : vector<4xf32> to vector<4x1xf32>
    %cst_49 = arith.constant 3.200000e+01 : f32
    %145 = vector.broadcast %cst_49 : f32 to vector<4x1xf32>
    %146 = arith.divf %144, %145 : vector<4x1xf32>
    %147 = vector.broadcast %146 : vector<4x1xf32> to vector<4x32xf32>
    %148 = arith.subf %140, %147 : vector<4x32xf32>
    %149 = vector.broadcast %146 : vector<4x1xf32> to vector<4x32xf32>
    %150 = arith.subf %140, %149 : vector<4x32xf32>
    %151 = arith.mulf %148, %150 : vector<4x32xf32>
    %cst_50 = arith.constant dense<0.000000e+00> : vector<4xf32>
    %152 = vector.multi_reduction <add>, %151, %cst_50 [1] : vector<4x32xf32> to vector<4xf32>
    %153 = vector.shape_cast %152 : vector<4xf32> to vector<4x1xf32>
    %cst_51 = arith.constant 3.200000e+01 : f32
    %154 = vector.broadcast %cst_51 : f32 to vector<4x1xf32>
    %155 = arith.divf %153, %154 : vector<4x1xf32>
    %156 = vector.broadcast %146 : vector<4x1xf32> to vector<4x32xf32>
    %157 = arith.subf %140, %156 : vector<4x32xf32>
    %cst_52 = arith.constant 9.99999997E-7 : f32
    %158 = vector.broadcast %cst_52 : f32 to vector<4x1xf32>
    %159 = arith.addf %155, %158 : vector<4x1xf32>
    %160 = math.rsqrt %159 : vector<4x1xf32>
    %161 = vector.broadcast %160 : vector<4x1xf32> to vector<4x32xf32>
    %162 = arith.mulf %157, %161 : vector<4x32xf32>
    %163 = vector.broadcast %141 : vector<1x32xf32> to vector<4x32xf32>
    %164 = arith.mulf %162, %163 : vector<4x32xf32>
    %165 = vector.broadcast %142 : vector<1x32xf32> to vector<4x32xf32>
    %166 = arith.addf %164, %165 : vector<4x32xf32>
    %167 = arith.truncf %166 : vector<4x32xf32> to vector<4x32xbf16>
    %c0_53 = arith.constant 0 : index
    %c0_54 = arith.constant 0 : index
    %c0_55 = arith.constant 0 : index
    %168 = vector.load %arg9[%c0_53, %c0_54, %c0_55] : memref<2x32x64xbf16, #tpu.memory_space<vmem>>, vector<1x32x64xbf16>
    %169 = vector.shape_cast %168 : vector<1x32x64xbf16> to vector<32x64xbf16>
    %cst_56 = arith.constant dense<0.000000e+00> : vector<4x64xf32>
    %170 = tpu.matmul %167, %169, %cst_56 {dimension_numbers = #tpu.dot_dimension_numbers<[1], [0], [0], [1], [0, 0, 1, 1], [], []>} : vector<4x32xbf16>, vector<32x64xbf16>, vector<4x64xf32> -> vector<4x64xf32>
    %c0_57 = arith.constant 0 : index
    %c0_58 = arith.constant 0 : index
    %c0_59 = arith.constant 0 : index
    %171 = vector.load %arg10[%c0_57, %c0_58, %c0_59] : memref<2x1x64xf32, #tpu.memory_space<vmem>>, vector<1x1x64xf32>
    %172 = vector.shape_cast %171 : vector<1x1x64xf32> to vector<1x64xf32>
    %173 = vector.broadcast %172 : vector<1x64xf32> to vector<4x64xf32>
    %174 = arith.addf %170, %173 : vector<4x64xf32>
    %175 = arith.mulf %174, %174 : vector<4x64xf32>
    %176 = arith.mulf %174, %175 : vector<4x64xf32>
    %cst_60 = arith.constant 4.471500e-02 : f32
    %177 = vector.broadcast %cst_60 : f32 to vector<4x64xf32>
    %178 = arith.mulf %177, %176 : vector<4x64xf32>
    %179 = arith.addf %174, %178 : vector<4x64xf32>
    %cst_61 = arith.constant 0.797884583 : f32
    %180 = vector.broadcast %cst_61 : f32 to vector<4x64xf32>
    %181 = arith.mulf %180, %179 : vector<4x64xf32>
    %182 = math.tanh %181 : vector<4x64xf32>
    %cst_62 = arith.constant 1.000000e+00 : f32
    %183 = vector.broadcast %cst_62 : f32 to vector<4x64xf32>
    %184 = arith.addf %183, %182 : vector<4x64xf32>
    %cst_63 = arith.constant 5.000000e-01 : f32
    %185 = vector.broadcast %cst_63 : f32 to vector<4x64xf32>
    %186 = arith.mulf %185, %184 : vector<4x64xf32>
    %187 = arith.mulf %174, %186 : vector<4x64xf32>
    %188 = arith.truncf %187 : vector<4x64xf32> to vector<4x64xbf16>
    %c0_64 = arith.constant 0 : index
    %c0_65 = arith.constant 0 : index
    %c0_66 = arith.constant 0 : index
    %189 = vector.load %arg11[%c0_64, %c0_65, %c0_66] : memref<2x64x32xbf16, #tpu.memory_space<vmem>>, vector<1x64x32xbf16>
    %190 = vector.shape_cast %189 : vector<1x64x32xbf16> to vector<64x32xbf16>
    %cst_67 = arith.constant dense<0.000000e+00> : vector<4x32xf32>
    %191 = tpu.matmul %188, %190, %cst_67 {dimension_numbers = #tpu.dot_dimension_numbers<[1], [0], [0], [1], [0, 0, 1, 1], [], []>} : vector<4x64xbf16>, vector<64x32xbf16>, vector<4x32xf32> -> vector<4x32xf32>
    %192 = vector.extract_strided_slice %10 {offsets = [1, 0], sizes = [1, 32], strides = [1, 1]} : vector<2x32xf32> to vector<1x32xf32>
    %193 = vector.broadcast %192 : vector<1x32xf32> to vector<4x32xf32>
    %194 = arith.addf %191, %193 : vector<4x32xf32>
    %195 = arith.addf %140, %194 : vector<4x32xf32>
    %c1 = arith.constant 1 : index
    %c0_68 = arith.constant 0 : index
    %c0_69 = arith.constant 0 : index
    %196 = vector.load %arg4[%c1, %c0_68, %c0_69] : memref<2x4x32xf32, #tpu.memory_space<vmem>>, vector<1x4x32xf32>
    %197 = vector.shape_cast %196 : vector<1x4x32xf32> to vector<4x32xf32>
    %c1_70 = arith.constant 1 : index
    %c0_71 = arith.constant 0 : index
    %c0_72 = arith.constant 0 : index
    %198 = vector.load %arg8[%c1_70, %c0_71, %c0_72] : memref<2x2x32xf32, #tpu.memory_space<vmem>>, vector<1x2x32xf32>
    %199 = vector.shape_cast %198 : vector<1x2x32xf32> to vector<2x32xf32>
    %200 = vector.extract_strided_slice %197 {offsets = [0, 0], sizes = [1, 32], strides = [1, 1]} : vector<4x32xf32> to vector<1x32xf32>
    %201 = vector.extract_strided_slice %197 {offsets = [1, 0], sizes = [1, 32], strides = [1, 1]} : vector<4x32xf32> to vector<1x32xf32>
    %cst_73 = arith.constant dense<0.000000e+00> : vector<4xf32>
    %202 = vector.multi_reduction <add>, %195, %cst_73 [1] : vector<4x32xf32> to vector<4xf32>
    %203 = vector.shape_cast %202 : vector<4xf32> to vector<4x1xf32>
    %cst_74 = arith.constant 3.200000e+01 : f32
    %204 = vector.broadcast %cst_74 : f32 to vector<4x1xf32>
    %205 = arith.divf %203, %204 : vector<4x1xf32>
    %206 = vector.broadcast %205 : vector<4x1xf32> to vector<4x32xf32>
    %207 = arith.subf %195, %206 : vector<4x32xf32>
    %208 = vector.broadcast %205 : vector<4x1xf32> to vector<4x32xf32>
    %209 = arith.subf %195, %208 : vector<4x32xf32>
    %210 = arith.mulf %207, %209 : vector<4x32xf32>
    %cst_75 = arith.constant dense<0.000000e+00> : vector<4xf32>
    %211 = vector.multi_reduction <add>, %210, %cst_75 [1] : vector<4x32xf32> to vector<4xf32>
    %212 = vector.shape_cast %211 : vector<4xf32> to vector<4x1xf32>
    %cst_76 = arith.constant 3.200000e+01 : f32
    %213 = vector.broadcast %cst_76 : f32 to vector<4x1xf32>
    %214 = arith.divf %212, %213 : vector<4x1xf32>
    %215 = vector.broadcast %205 : vector<4x1xf32> to vector<4x32xf32>
    %216 = arith.subf %195, %215 : vector<4x32xf32>
    %cst_77 = arith.constant 9.99999997E-7 : f32
    %217 = vector.broadcast %cst_77 : f32 to vector<4x1xf32>
    %218 = arith.addf %214, %217 : vector<4x1xf32>
    %219 = math.rsqrt %218 : vector<4x1xf32>
    %220 = vector.broadcast %219 : vector<4x1xf32> to vector<4x32xf32>
    %221 = arith.mulf %216, %220 : vector<4x32xf32>
    %222 = vector.broadcast %200 : vector<1x32xf32> to vector<4x32xf32>
    %223 = arith.mulf %221, %222 : vector<4x32xf32>
    %224 = vector.broadcast %201 : vector<1x32xf32> to vector<4x32xf32>
    %225 = arith.addf %223, %224 : vector<4x32xf32>
    %226 = arith.truncf %225 : vector<4x32xf32> to vector<4x32xbf16>
    %c1_78 = arith.constant 1 : index
    %c0_79 = arith.constant 0 : index
    %c0_80 = arith.constant 0 : index
    %227 = vector.load %arg5[%c1_78, %c0_79, %c0_80] : memref<2x32x96xbf16, #tpu.memory_space<vmem>>, vector<1x32x96xbf16>
    %228 = vector.shape_cast %227 : vector<1x32x96xbf16> to vector<32x96xbf16>
    %cst_81 = arith.constant dense<0.000000e+00> : vector<4x96xf32>
    %229 = tpu.matmul %226, %228, %cst_81 {dimension_numbers = #tpu.dot_dimension_numbers<[1], [0], [0], [1], [0, 0, 1, 1], [], []>} : vector<4x32xbf16>, vector<32x96xbf16>, vector<4x96xf32> -> vector<4x96xf32>
    %c1_82 = arith.constant 1 : index
    %c0_83 = arith.constant 0 : index
    %c0_84 = arith.constant 0 : index
    %230 = vector.load %arg6[%c1_82, %c0_83, %c0_84] : memref<2x1x96xf32, #tpu.memory_space<vmem>>, vector<1x1x96xf32>
    %231 = vector.shape_cast %230 : vector<1x1x96xf32> to vector<1x96xf32>
    %232 = vector.broadcast %231 : vector<1x96xf32> to vector<4x96xf32>
    %233 = arith.addf %229, %232 : vector<4x96xf32>
    %234 = vector.extract_strided_slice %233 {offsets = [0, 0], sizes = [4, 32], strides = [1, 1]} : vector<4x96xf32> to vector<4x32xf32>
    %235 = vector.extract_strided_slice %233 {offsets = [0, 32], sizes = [4, 32], strides = [1, 1]} : vector<4x96xf32> to vector<4x32xf32>
    %236 = vector.extract_strided_slice %233 {offsets = [0, 64], sizes = [4, 32], strides = [1, 1]} : vector<4x96xf32> to vector<4x32xf32>
    %237 = vector.extract_strided_slice %234 {offsets = [0, 0], sizes = [4, 8], strides = [1, 1]} : vector<4x32xf32> to vector<4x8xf32>
    %238 = vector.extract_strided_slice %235 {offsets = [0, 0], sizes = [4, 8], strides = [1, 1]} : vector<4x32xf32> to vector<4x8xf32>
    %239 = vector.extract_strided_slice %236 {offsets = [0, 0], sizes = [4, 8], strides = [1, 1]} : vector<4x32xf32> to vector<4x8xf32>
    %240 = arith.truncf %237 : vector<4x8xf32> to vector<4x8xbf16>
    %241 = arith.truncf %238 : vector<4x8xf32> to vector<4x8xbf16>
    %cst_85 = arith.constant dense<0.000000e+00> : vector<4x4xf32>
    %242 = tpu.matmul %240, %241, %cst_85 {dimension_numbers = #tpu.dot_dimension_numbers<[1], [1], [0], [0], [0, 0, 1, 0], [], []>} : vector<4x8xbf16>, vector<4x8xbf16>, vector<4x4xf32> -> vector<4x4xf32>
    %cst_86 = arith.constant 0.353553385 : f32
    %243 = vector.broadcast %cst_86 : f32 to vector<4x4xf32>
    %244 = arith.mulf %242, %243 : vector<4x4xf32>
    %cst_87 = arith.constant dense<0xFF800000> : vector<4xf32>
    %245 = vector.multi_reduction <maximumf>, %244, %cst_87 [1] : vector<4x4xf32> to vector<4xf32>
    %246 = vector.shape_cast %245 : vector<4xf32> to vector<4x1xf32>
    %247 = vector.broadcast %246 : vector<4x1xf32> to vector<4x4xf32>
    %248 = arith.subf %244, %247 : vector<4x4xf32>
    %249 = math.exp %248 : vector<4x4xf32>
    %cst_88 = arith.constant dense<0.000000e+00> : vector<4xf32>
    %250 = vector.multi_reduction <add>, %249, %cst_88 [1] : vector<4x4xf32> to vector<4xf32>
    %251 = vector.shape_cast %250 : vector<4xf32> to vector<4x1xf32>
    %252 = tpu.reciprocal %251 {approx = true} : vector<4x1xf32> -> vector<4x1xf32>
    %253 = vector.broadcast %252 : vector<4x1xf32> to vector<4x4xf32>
    %254 = arith.mulf %249, %253 : vector<4x4xf32>
    %255 = arith.truncf %254 : vector<4x4xf32> to vector<4x4xbf16>
    %256 = arith.truncf %239 : vector<4x8xf32> to vector<4x8xbf16>
    %cst_89 = arith.constant dense<0.000000e+00> : vector<4x8xf32>
    %257 = tpu.matmul %255, %256, %cst_89 {dimension_numbers = #tpu.dot_dimension_numbers<[1], [0], [0], [1], [0, 0, 1, 1], [], []>} : vector<4x4xbf16>, vector<4x8xbf16>, vector<4x8xf32> -> vector<4x8xf32>
    %258 = vector.extract_strided_slice %234 {offsets = [0, 8], sizes = [4, 8], strides = [1, 1]} : vector<4x32xf32> to vector<4x8xf32>
    %259 = vector.extract_strided_slice %235 {offsets = [0, 8], sizes = [4, 8], strides = [1, 1]} : vector<4x32xf32> to vector<4x8xf32>
    %260 = vector.extract_strided_slice %236 {offsets = [0, 8], sizes = [4, 8], strides = [1, 1]} : vector<4x32xf32> to vector<4x8xf32>
    %261 = arith.truncf %258 : vector<4x8xf32> to vector<4x8xbf16>
    %262 = arith.truncf %259 : vector<4x8xf32> to vector<4x8xbf16>
    %cst_90 = arith.constant dense<0.000000e+00> : vector<4x4xf32>
    %263 = tpu.matmul %261, %262, %cst_90 {dimension_numbers = #tpu.dot_dimension_numbers<[1], [1], [0], [0], [0, 0, 1, 0], [], []>} : vector<4x8xbf16>, vector<4x8xbf16>, vector<4x4xf32> -> vector<4x4xf32>
    %cst_91 = arith.constant 0.353553385 : f32
    %264 = vector.broadcast %cst_91 : f32 to vector<4x4xf32>
    %265 = arith.mulf %263, %264 : vector<4x4xf32>
    %cst_92 = arith.constant dense<0xFF800000> : vector<4xf32>
    %266 = vector.multi_reduction <maximumf>, %265, %cst_92 [1] : vector<4x4xf32> to vector<4xf32>
    %267 = vector.shape_cast %266 : vector<4xf32> to vector<4x1xf32>
    %268 = vector.broadcast %267 : vector<4x1xf32> to vector<4x4xf32>
    %269 = arith.subf %265, %268 : vector<4x4xf32>
    %270 = math.exp %269 : vector<4x4xf32>
    %cst_93 = arith.constant dense<0.000000e+00> : vector<4xf32>
    %271 = vector.multi_reduction <add>, %270, %cst_93 [1] : vector<4x4xf32> to vector<4xf32>
    %272 = vector.shape_cast %271 : vector<4xf32> to vector<4x1xf32>
    %273 = tpu.reciprocal %272 {approx = true} : vector<4x1xf32> -> vector<4x1xf32>
    %274 = vector.broadcast %273 : vector<4x1xf32> to vector<4x4xf32>
    %275 = arith.mulf %270, %274 : vector<4x4xf32>
    %276 = arith.truncf %275 : vector<4x4xf32> to vector<4x4xbf16>
    %277 = arith.truncf %260 : vector<4x8xf32> to vector<4x8xbf16>
    %cst_94 = arith.constant dense<0.000000e+00> : vector<4x8xf32>
    %278 = tpu.matmul %276, %277, %cst_94 {dimension_numbers = #tpu.dot_dimension_numbers<[1], [0], [0], [1], [0, 0, 1, 1], [], []>} : vector<4x4xbf16>, vector<4x8xbf16>, vector<4x8xf32> -> vector<4x8xf32>
    %279 = vector.extract_strided_slice %234 {offsets = [0, 16], sizes = [4, 8], strides = [1, 1]} : vector<4x32xf32> to vector<4x8xf32>
    %280 = vector.extract_strided_slice %235 {offsets = [0, 16], sizes = [4, 8], strides = [1, 1]} : vector<4x32xf32> to vector<4x8xf32>
    %281 = vector.extract_strided_slice %236 {offsets = [0, 16], sizes = [4, 8], strides = [1, 1]} : vector<4x32xf32> to vector<4x8xf32>
    %282 = arith.truncf %279 : vector<4x8xf32> to vector<4x8xbf16>
    %283 = arith.truncf %280 : vector<4x8xf32> to vector<4x8xbf16>
    %cst_95 = arith.constant dense<0.000000e+00> : vector<4x4xf32>
    %284 = tpu.matmul %282, %283, %cst_95 {dimension_numbers = #tpu.dot_dimension_numbers<[1], [1], [0], [0], [0, 0, 1, 0], [], []>} : vector<4x8xbf16>, vector<4x8xbf16>, vector<4x4xf32> -> vector<4x4xf32>
    %cst_96 = arith.constant 0.353553385 : f32
    %285 = vector.broadcast %cst_96 : f32 to vector<4x4xf32>
    %286 = arith.mulf %284, %285 : vector<4x4xf32>
    %cst_97 = arith.constant dense<0xFF800000> : vector<4xf32>
    %287 = vector.multi_reduction <maximumf>, %286, %cst_97 [1] : vector<4x4xf32> to vector<4xf32>
    %288 = vector.shape_cast %287 : vector<4xf32> to vector<4x1xf32>
    %289 = vector.broadcast %288 : vector<4x1xf32> to vector<4x4xf32>
    %290 = arith.subf %286, %289 : vector<4x4xf32>
    %291 = math.exp %290 : vector<4x4xf32>
    %cst_98 = arith.constant dense<0.000000e+00> : vector<4xf32>
    %292 = vector.multi_reduction <add>, %291, %cst_98 [1] : vector<4x4xf32> to vector<4xf32>
    %293 = vector.shape_cast %292 : vector<4xf32> to vector<4x1xf32>
    %294 = tpu.reciprocal %293 {approx = true} : vector<4x1xf32> -> vector<4x1xf32>
    %295 = vector.broadcast %294 : vector<4x1xf32> to vector<4x4xf32>
    %296 = arith.mulf %291, %295 : vector<4x4xf32>
    %297 = arith.truncf %296 : vector<4x4xf32> to vector<4x4xbf16>
    %298 = arith.truncf %281 : vector<4x8xf32> to vector<4x8xbf16>
    %cst_99 = arith.constant dense<0.000000e+00> : vector<4x8xf32>
    %299 = tpu.matmul %297, %298, %cst_99 {dimension_numbers = #tpu.dot_dimension_numbers<[1], [0], [0], [1], [0, 0, 1, 1], [], []>} : vector<4x4xbf16>, vector<4x8xbf16>, vector<4x8xf32> -> vector<4x8xf32>
    %300 = vector.extract_strided_slice %234 {offsets = [0, 24], sizes = [4, 8], strides = [1, 1]} : vector<4x32xf32> to vector<4x8xf32>
    %301 = vector.extract_strided_slice %235 {offsets = [0, 24], sizes = [4, 8], strides = [1, 1]} : vector<4x32xf32> to vector<4x8xf32>
    %302 = vector.extract_strided_slice %236 {offsets = [0, 24], sizes = [4, 8], strides = [1, 1]} : vector<4x32xf32> to vector<4x8xf32>
    %303 = arith.truncf %300 : vector<4x8xf32> to vector<4x8xbf16>
    %304 = arith.truncf %301 : vector<4x8xf32> to vector<4x8xbf16>
    %cst_100 = arith.constant dense<0.000000e+00> : vector<4x4xf32>
    %305 = tpu.matmul %303, %304, %cst_100 {dimension_numbers = #tpu.dot_dimension_numbers<[1], [1], [0], [0], [0, 0, 1, 0], [], []>} : vector<4x8xbf16>, vector<4x8xbf16>, vector<4x4xf32> -> vector<4x4xf32>
    %cst_101 = arith.constant 0.353553385 : f32
    %306 = vector.broadcast %cst_101 : f32 to vector<4x4xf32>
    %307 = arith.mulf %305, %306 : vector<4x4xf32>
    %cst_102 = arith.constant dense<0xFF800000> : vector<4xf32>
    %308 = vector.multi_reduction <maximumf>, %307, %cst_102 [1] : vector<4x4xf32> to vector<4xf32>
    %309 = vector.shape_cast %308 : vector<4xf32> to vector<4x1xf32>
    %310 = vector.broadcast %309 : vector<4x1xf32> to vector<4x4xf32>
    %311 = arith.subf %307, %310 : vector<4x4xf32>
    %312 = math.exp %311 : vector<4x4xf32>
    %cst_103 = arith.constant dense<0.000000e+00> : vector<4xf32>
    %313 = vector.multi_reduction <add>, %312, %cst_103 [1] : vector<4x4xf32> to vector<4xf32>
    %314 = vector.shape_cast %313 : vector<4xf32> to vector<4x1xf32>
    %315 = tpu.reciprocal %314 {approx = true} : vector<4x1xf32> -> vector<4x1xf32>
    %316 = vector.broadcast %315 : vector<4x1xf32> to vector<4x4xf32>
    %317 = arith.mulf %312, %316 : vector<4x4xf32>
    %318 = arith.truncf %317 : vector<4x4xf32> to vector<4x4xbf16>
    %319 = arith.truncf %302 : vector<4x8xf32> to vector<4x8xbf16>
    %cst_104 = arith.constant dense<0.000000e+00> : vector<4x8xf32>
    %320 = tpu.matmul %318, %319, %cst_104 {dimension_numbers = #tpu.dot_dimension_numbers<[1], [0], [0], [1], [0, 0, 1, 1], [], []>} : vector<4x4xbf16>, vector<4x8xbf16>, vector<4x8xf32> -> vector<4x8xf32>
    %321 = tpu.concatenate %257, %278, %299, %320 in 1 : vector<4x8xf32>, vector<4x8xf32>, vector<4x8xf32>, vector<4x8xf32> -> vector<4x32xf32>
    %322 = arith.truncf %321 : vector<4x32xf32> to vector<4x32xbf16>
    %c1_105 = arith.constant 1 : index
    %c0_106 = arith.constant 0 : index
    %c0_107 = arith.constant 0 : index
    %323 = vector.load %arg7[%c1_105, %c0_106, %c0_107] : memref<2x32x32xbf16, #tpu.memory_space<vmem>>, vector<1x32x32xbf16>
    %324 = vector.shape_cast %323 : vector<1x32x32xbf16> to vector<32x32xbf16>
    %cst_108 = arith.constant dense<0.000000e+00> : vector<4x32xf32>
    %325 = tpu.matmul %322, %324, %cst_108 {dimension_numbers = #tpu.dot_dimension_numbers<[1], [0], [0], [1], [0, 0, 1, 1], [], []>} : vector<4x32xbf16>, vector<32x32xbf16>, vector<4x32xf32> -> vector<4x32xf32>
    %326 = arith.addf %195, %325 : vector<4x32xf32>
    %327 = vector.extract_strided_slice %199 {offsets = [0, 0], sizes = [1, 32], strides = [1, 1]} : vector<2x32xf32> to vector<1x32xf32>
    %328 = vector.broadcast %327 : vector<1x32xf32> to vector<4x32xf32>
    %329 = arith.addf %326, %328 : vector<4x32xf32>
    %330 = vector.extract_strided_slice %197 {offsets = [2, 0], sizes = [1, 32], strides = [1, 1]} : vector<4x32xf32> to vector<1x32xf32>
    %331 = vector.extract_strided_slice %197 {offsets = [3, 0], sizes = [1, 32], strides = [1, 1]} : vector<4x32xf32> to vector<1x32xf32>
    %cst_109 = arith.constant dense<0.000000e+00> : vector<4xf32>
    %332 = vector.multi_reduction <add>, %329, %cst_109 [1] : vector<4x32xf32> to vector<4xf32>
    %333 = vector.shape_cast %332 : vector<4xf32> to vector<4x1xf32>
    %cst_110 = arith.constant 3.200000e+01 : f32
    %334 = vector.broadcast %cst_110 : f32 to vector<4x1xf32>
    %335 = arith.divf %333, %334 : vector<4x1xf32>
    %336 = vector.broadcast %335 : vector<4x1xf32> to vector<4x32xf32>
    %337 = arith.subf %329, %336 : vector<4x32xf32>
    %338 = vector.broadcast %335 : vector<4x1xf32> to vector<4x32xf32>
    %339 = arith.subf %329, %338 : vector<4x32xf32>
    %340 = arith.mulf %337, %339 : vector<4x32xf32>
    %cst_111 = arith.constant dense<0.000000e+00> : vector<4xf32>
    %341 = vector.multi_reduction <add>, %340, %cst_111 [1] : vector<4x32xf32> to vector<4xf32>
    %342 = vector.shape_cast %341 : vector<4xf32> to vector<4x1xf32>
    %cst_112 = arith.constant 3.200000e+01 : f32
    %343 = vector.broadcast %cst_112 : f32 to vector<4x1xf32>
    %344 = arith.divf %342, %343 : vector<4x1xf32>
    %345 = vector.broadcast %335 : vector<4x1xf32> to vector<4x32xf32>
    %346 = arith.subf %329, %345 : vector<4x32xf32>
    %cst_113 = arith.constant 9.99999997E-7 : f32
    %347 = vector.broadcast %cst_113 : f32 to vector<4x1xf32>
    %348 = arith.addf %344, %347 : vector<4x1xf32>
    %349 = math.rsqrt %348 : vector<4x1xf32>
    %350 = vector.broadcast %349 : vector<4x1xf32> to vector<4x32xf32>
    %351 = arith.mulf %346, %350 : vector<4x32xf32>
    %352 = vector.broadcast %330 : vector<1x32xf32> to vector<4x32xf32>
    %353 = arith.mulf %351, %352 : vector<4x32xf32>
    %354 = vector.broadcast %331 : vector<1x32xf32> to vector<4x32xf32>
    %355 = arith.addf %353, %354 : vector<4x32xf32>
    %356 = arith.truncf %355 : vector<4x32xf32> to vector<4x32xbf16>
    %c1_114 = arith.constant 1 : index
    %c0_115 = arith.constant 0 : index
    %c0_116 = arith.constant 0 : index
    %357 = vector.load %arg9[%c1_114, %c0_115, %c0_116] : memref<2x32x64xbf16, #tpu.memory_space<vmem>>, vector<1x32x64xbf16>
    %358 = vector.shape_cast %357 : vector<1x32x64xbf16> to vector<32x64xbf16>
    %cst_117 = arith.constant dense<0.000000e+00> : vector<4x64xf32>
    %359 = tpu.matmul %356, %358, %cst_117 {dimension_numbers = #tpu.dot_dimension_numbers<[1], [0], [0], [1], [0, 0, 1, 1], [], []>} : vector<4x32xbf16>, vector<32x64xbf16>, vector<4x64xf32> -> vector<4x64xf32>
    %c1_118 = arith.constant 1 : index
    %c0_119 = arith.constant 0 : index
    %c0_120 = arith.constant 0 : index
    %360 = vector.load %arg10[%c1_118, %c0_119, %c0_120] : memref<2x1x64xf32, #tpu.memory_space<vmem>>, vector<1x1x64xf32>
    %361 = vector.shape_cast %360 : vector<1x1x64xf32> to vector<1x64xf32>
    %362 = vector.broadcast %361 : vector<1x64xf32> to vector<4x64xf32>
    %363 = arith.addf %359, %362 : vector<4x64xf32>
    %364 = arith.mulf %363, %363 : vector<4x64xf32>
    %365 = arith.mulf %363, %364 : vector<4x64xf32>
    %cst_121 = arith.constant 4.471500e-02 : f32
    %366 = vector.broadcast %cst_121 : f32 to vector<4x64xf32>
    %367 = arith.mulf %366, %365 : vector<4x64xf32>
    %368 = arith.addf %363, %367 : vector<4x64xf32>
    %cst_122 = arith.constant 0.797884583 : f32
    %369 = vector.broadcast %cst_122 : f32 to vector<4x64xf32>
    %370 = arith.mulf %369, %368 : vector<4x64xf32>
    %371 = math.tanh %370 : vector<4x64xf32>
    %cst_123 = arith.constant 1.000000e+00 : f32
    %372 = vector.broadcast %cst_123 : f32 to vector<4x64xf32>
    %373 = arith.addf %372, %371 : vector<4x64xf32>
    %cst_124 = arith.constant 5.000000e-01 : f32
    %374 = vector.broadcast %cst_124 : f32 to vector<4x64xf32>
    %375 = arith.mulf %374, %373 : vector<4x64xf32>
    %376 = arith.mulf %363, %375 : vector<4x64xf32>
    %377 = arith.truncf %376 : vector<4x64xf32> to vector<4x64xbf16>
    %c1_125 = arith.constant 1 : index
    %c0_126 = arith.constant 0 : index
    %c0_127 = arith.constant 0 : index
    %378 = vector.load %arg11[%c1_125, %c0_126, %c0_127] : memref<2x64x32xbf16, #tpu.memory_space<vmem>>, vector<1x64x32xbf16>
    %379 = vector.shape_cast %378 : vector<1x64x32xbf16> to vector<64x32xbf16>
    %cst_128 = arith.constant dense<0.000000e+00> : vector<4x32xf32>
    %380 = tpu.matmul %377, %379, %cst_128 {dimension_numbers = #tpu.dot_dimension_numbers<[1], [0], [0], [1], [0, 0, 1, 1], [], []>} : vector<4x64xbf16>, vector<64x32xbf16>, vector<4x32xf32> -> vector<4x32xf32>
    %381 = vector.extract_strided_slice %199 {offsets = [1, 0], sizes = [1, 32], strides = [1, 1]} : vector<2x32xf32> to vector<1x32xf32>
    %382 = vector.broadcast %381 : vector<1x32xf32> to vector<4x32xf32>
    %383 = arith.addf %380, %382 : vector<4x32xf32>
    %384 = arith.addf %329, %383 : vector<4x32xf32>
    %c0_129 = arith.constant 0 : index
    %c0_130 = arith.constant 0 : index
    %385 = vector.load %arg12[%c0_129, %c0_130] : memref<2x32xf32, #tpu.memory_space<vmem>>, vector<1x32xf32>
    %c1_131 = arith.constant 1 : index
    %c0_132 = arith.constant 0 : index
    %386 = vector.load %arg12[%c1_131, %c0_132] : memref<2x32xf32, #tpu.memory_space<vmem>>, vector<1x32xf32>
    %cst_133 = arith.constant dense<0.000000e+00> : vector<4xf32>
    %387 = vector.multi_reduction <add>, %384, %cst_133 [1] : vector<4x32xf32> to vector<4xf32>
    %388 = vector.shape_cast %387 : vector<4xf32> to vector<4x1xf32>
    %cst_134 = arith.constant 3.200000e+01 : f32
    %389 = vector.broadcast %cst_134 : f32 to vector<4x1xf32>
    %390 = arith.divf %388, %389 : vector<4x1xf32>
    %391 = vector.broadcast %390 : vector<4x1xf32> to vector<4x32xf32>
    %392 = arith.subf %384, %391 : vector<4x32xf32>
    %393 = vector.broadcast %390 : vector<4x1xf32> to vector<4x32xf32>
    %394 = arith.subf %384, %393 : vector<4x32xf32>
    %395 = arith.mulf %392, %394 : vector<4x32xf32>
    %cst_135 = arith.constant dense<0.000000e+00> : vector<4xf32>
    %396 = vector.multi_reduction <add>, %395, %cst_135 [1] : vector<4x32xf32> to vector<4xf32>
    %397 = vector.shape_cast %396 : vector<4xf32> to vector<4x1xf32>
    %cst_136 = arith.constant 3.200000e+01 : f32
    %398 = vector.broadcast %cst_136 : f32 to vector<4x1xf32>
    %399 = arith.divf %397, %398 : vector<4x1xf32>
    %400 = vector.broadcast %390 : vector<4x1xf32> to vector<4x32xf32>
    %401 = arith.subf %384, %400 : vector<4x32xf32>
    %cst_137 = arith.constant 9.99999997E-7 : f32
    %402 = vector.broadcast %cst_137 : f32 to vector<4x1xf32>
    %403 = arith.addf %399, %402 : vector<4x1xf32>
    %404 = math.rsqrt %403 : vector<4x1xf32>
    %405 = vector.broadcast %404 : vector<4x1xf32> to vector<4x32xf32>
    %406 = arith.mulf %401, %405 : vector<4x32xf32>
    %407 = vector.broadcast %385 : vector<1x32xf32> to vector<4x32xf32>
    %408 = arith.mulf %406, %407 : vector<4x32xf32>
    %409 = vector.broadcast %386 : vector<1x32xf32> to vector<4x32xf32>
    %410 = arith.addf %408, %409 : vector<4x32xf32>
    %411 = arith.truncf %410 : vector<4x32xf32> to vector<4x32xbf16>
    %c0_138 = arith.constant 0 : index
    %c0_139 = arith.constant 0 : index
    %412 = vector.load %arg13[%c0_138, %c0_139] : memref<32x32xbf16, #tpu.memory_space<vmem>>, vector<32x32xbf16>
    %cst_140 = arith.constant dense<0.000000e+00> : vector<4x32xf32>
    %413 = tpu.matmul %411, %412, %cst_140 {dimension_numbers = #tpu.dot_dimension_numbers<[1], [0], [0], [1], [0, 0, 1, 1], [], []>} : vector<4x32xbf16>, vector<32x32xbf16>, vector<4x32xf32> -> vector<4x32xf32>
    %c0_141 = arith.constant 0 : index
    %c0_142 = arith.constant 0 : index
    %414 = vector.load %arg14[%c0_141, %c0_142] : memref<1x32xf32, #tpu.memory_space<vmem>>, vector<1x32xf32>
    %415 = vector.broadcast %414 : vector<1x32xf32> to vector<4x32xf32>
    %416 = arith.addf %413, %415 : vector<4x32xf32>
    %417 = vector.extract_strided_slice %416 {offsets = [0, 0], sizes = [1, 32], strides = [1, 1]} : vector<4x32xf32> to vector<1x32xf32>
    %418 = vector.extract_strided_slice %416 {offsets = [1, 0], sizes = [1, 32], strides = [1, 1]} : vector<4x32xf32> to vector<1x32xf32>
    %419 = vector.extract_strided_slice %416 {offsets = [2, 0], sizes = [1, 32], strides = [1, 1]} : vector<4x32xf32> to vector<1x32xf32>
    %420 = vector.extract_strided_slice %416 {offsets = [3, 0], sizes = [1, 32], strides = [1, 1]} : vector<4x32xf32> to vector<1x32xf32>
    %421 = tpu.concatenate %417, %418, %419, %420 in 1 : vector<1x32xf32>, vector<1x32xf32>, vector<1x32xf32>, vector<1x32xf32> -> vector<1x128xf32>
    %c0_143 = arith.constant 0 : index
    %c0_144 = arith.constant 0 : index
    %c0_145 = arith.constant 0 : index
    %422 = vector.load %arg15[%c0_143, %c0_144, %c0_145] : memref<1x1x128xf32, #tpu.memory_space<vmem>>, vector<1x1x128xf32>
    %423 = vector.shape_cast %422 : vector<1x1x128xf32> to vector<1x128xf32>
    %424 = vector.shape_cast %421 : vector<1x128xf32> to vector<1x1x128xf32>
    tpu.vector_store %arg15[%c0_143, %c0_144, %c0_145], %424 {strides = array<i32>} : memref<1x1x128xf32, #tpu.memory_space<vmem>>, vector<1x1x128xf32>,
    return
  }
  func.func @transform_0(%arg0: i32) -> (i32, i32, i32) {
    %c0_i32 = arith.constant 0 : i32
    %c0_i32_0 = arith.constant 0 : i32
    %c0_i32_1 = arith.constant 0 : i32
    return %arg0, %c0_i32, %c0_i32_0 : i32, i32, i32
  }
  func.func @transform_1(%arg0: i32) -> (i32, i32) {
    %c0_i32 = arith.constant 0 : i32
    %c0_i32_0 = arith.constant 0 : i32
    %c0_i32_1 = arith.constant 0 : i32
    return %c0_i32, %c0_i32_0 : i32, i32
  }
  func.func @transform_2(%arg0: i32) -> (i32, i32) {
    %c0_i32 = arith.constant 0 : i32
    %c0_i32_0 = arith.constant 0 : i32
    %c0_i32_1 = arith.constant 0 : i32
    return %c0_i32, %c0_i32_0 : i32, i32
  }
  func.func @transform_3(%arg0: i32) -> (i32, i32, i32) {
    %c0_i32 = arith.constant 0 : i32
    %c0_i32_0 = arith.constant 0 : i32
    %c0_i32_1 = arith.constant 0 : i32
    %c0_i32_2 = arith.constant 0 : i32
    return %c0_i32, %c0_i32_0, %c0_i32_1 : i32, i32, i32
  }
  func.func @transform_4(%arg0: i32) -> (i32, i32, i32) {
    %c0_i32 = arith.constant 0 : i32
    %c0_i32_0 = arith.constant 0 : i32
    %c0_i32_1 = arith.constant 0 : i32
    %c0_i32_2 = arith.constant 0 : i32
    return %c0_i32, %c0_i32_0, %c0_i32_1 : i32, i32, i32
  }
  func.func @transform_5(%arg0: i32) -> (i32, i32, i32) {
    %c0_i32 = arith.constant 0 : i32
    %c0_i32_0 = arith.constant 0 : i32
    %c0_i32_1 = arith.constant 0 : i32
    %c0_i32_2 = arith.constant 0 : i32
    return %c0_i32, %c0_i32_0, %c0_i32_1 : i32, i32, i32
  }
  func.func @transform_6(%arg0: i32) -> (i32, i32, i32) {
    %c0_i32 = arith.constant 0 : i32
    %c0_i32_0 = arith.constant 0 : i32
    %c0_i32_1 = arith.constant 0 : i32
    %c0_i32_2 = arith.constant 0 : i32
    return %c0_i32, %c0_i32_0, %c0_i32_1 : i32, i32, i32
  }
  func.func @transform_7(%arg0: i32) -> (i32, i32, i32) {
    %c0_i32 = arith.constant 0 : i32
    %c0_i32_0 = arith.constant 0 : i32
    %c0_i32_1 = arith.constant 0 : i32
    %c0_i32_2 = arith.constant 0 : i32
    return %c0_i32, %c0_i32_0, %c0_i32_1 : i32, i32, i32
  }
  func.func @transform_8(%arg0: i32) -> (i32, i32, i32) {
    %c0_i32 = arith.constant 0 : i32
    %c0_i32_0 = arith.constant 0 : i32
    %c0_i32_1 = arith.constant 0 : i32
    %c0_i32_2 = arith.constant 0 : i32
    return %c0_i32, %c0_i32_0, %c0_i32_1 : i32, i32, i32
  }
  func.func @transform_9(%arg0: i32) -> (i32, i32, i32) {
    %c0_i32 = arith.constant 0 : i32
    %c0_i32_0 = arith.constant 0 : i32
    %c0_i32_1 = arith.constant 0 : i32
    %c0_i32_2 = arith.constant 0 : i32
    return %c0_i32, %c0_i32_0, %c0_i32_1 : i32, i32, i32
  }
  func.func @transform_10(%arg0: i32) -> (i32, i32, i32) {
    %c0_i32 = arith.constant 0 : i32
    %c0_i32_0 = arith.constant 0 : i32
    %c0_i32_1 = arith.constant 0 : i32
    %c0_i32_2 = arith.constant 0 : i32
    return %c0_i32, %c0_i32_0, %c0_i32_1 : i32, i32, i32
  }
  func.func @transform_11(%arg0: i32) -> (i32, i32) {
    %c0_i32 = arith.constant 0 : i32
    %c0_i32_0 = arith.constant 0 : i32
    %c0_i32_1 = arith.constant 0 : i32
    return %c0_i32, %c0_i32_0 : i32, i32
  }
  func.func @transform_12(%arg0: i32) -> (i32, i32) {
    %c0_i32 = arith.constant 0 : i32
    %c0_i32_0 = arith.constant 0 : i32
    %c0_i32_1 = arith.constant 0 : i32
    return %c0_i32, %c0_i32_0 : i32, i32
  }
  func.func @transform_13(%arg0: i32) -> (i32, i32) {
    %c0_i32 = arith.constant 0 : i32
    %c0_i32_0 = arith.constant 0 : i32
    %c0_i32_1 = arith.constant 0 : i32
    return %c0_i32, %c0_i32_0 : i32, i32
  }
  func.func @transform_14(%arg0: i32) -> (i32, i32, i32) {
    %c0_i32 = arith.constant 0 : i32
    %c0_i32_0 = arith.constant 0 : i32
    %c0_i32_1 = arith.constant 0 : i32
    return %arg0, %c0_i32, %c0_i32_0 : i32, i32, i32
  }
}

module attributes {stable_mosaic.version = 11 : i64} {
  func.func @_gemma_lm_kernel(%arg0: i32, %arg1: memref<1x8x32xf32, #tpu.memory_space<vmem>>, %arg2: memref<1x8x64xf32, #tpu.memory_space<vmem>>, %arg3: memref<1x8x64xf32, #tpu.memory_space<vmem>>, %arg4: memref<2x32x224xbf16, #tpu.memory_space<vmem>>, %arg5: memref<2x64x32xbf16, #tpu.memory_space<vmem>>, %arg6: memref<5x32xf32, #tpu.memory_space<vmem>>, %arg7: memref<2x32x128xbf16, #tpu.memory_space<vmem>>, %arg8: memref<2x64x32xbf16, #tpu.memory_space<vmem>>, %arg9: memref<32x128xbf16, #tpu.memory_space<vmem>>, %arg10: memref<1x8x128xf32, #tpu.memory_space<vmem>>) attributes {dimension_semantics = [#tpu.dimension_semantics<parallel>], iteration_bounds = array<i64: 2>, scalar_prefetch = 0 : i64, scratch_operands = 0 : i64, tpu.core_type = #tpu.core_type<tc>, window_params = [{transform_indices = @transform_0, window_bounds = array<i64: 1, 8, 32>}, {transform_indices = @transform_1, window_bounds = array<i64: 1, 8, 64>}, {transform_indices = @transform_2, window_bounds = array<i64: 1, 8, 64>}, {pipeline_mode = #tpu.pipeline_mode<synchronous>, transform_indices = @transform_3, window_bounds = array<i64: 2, 32, 224>}, {pipeline_mode = #tpu.pipeline_mode<synchronous>, transform_indices = @transform_4, window_bounds = array<i64: 2, 64, 32>}, {pipeline_mode = #tpu.pipeline_mode<synchronous>, transform_indices = @transform_5, window_bounds = array<i64: 5, 32>}, {pipeline_mode = #tpu.pipeline_mode<synchronous>, transform_indices = @transform_6, window_bounds = array<i64: 2, 32, 128>}, {pipeline_mode = #tpu.pipeline_mode<synchronous>, transform_indices = @transform_7, window_bounds = array<i64: 2, 64, 32>}, {pipeline_mode = #tpu.pipeline_mode<synchronous>, transform_indices = @transform_8, window_bounds = array<i64: 32, 128>}, {transform_indices = @transform_9, window_bounds = array<i64: 1, 8, 128>}]} {
    %c0 = arith.constant 0 : index
    %c0_0 = arith.constant 0 : index
    %c0_1 = arith.constant 0 : index
    %0 = vector.load %arg1[%c0, %c0_0, %c0_1] : memref<1x8x32xf32, #tpu.memory_space<vmem>>, vector<1x8x32xf32>
    %1 = vector.shape_cast %0 : vector<1x8x32xf32> to vector<8x32xf32>
    %cst = arith.constant 5.65685415 : f32
    %2 = vector.broadcast %cst : f32 to vector<8x32xf32>
    %3 = arith.mulf %1, %2 : vector<8x32xf32>
    %c0_2 = arith.constant 0 : index
    %c0_3 = arith.constant 0 : index
    %c0_4 = arith.constant 0 : index
    %4 = vector.load %arg2[%c0_2, %c0_3, %c0_4] : memref<1x8x64xf32, #tpu.memory_space<vmem>>, vector<1x8x64xf32>
    %5 = vector.shape_cast %4 : vector<1x8x64xf32> to vector<8x64xf32>
    %c0_5 = arith.constant 0 : index
    %c0_6 = arith.constant 0 : index
    %c0_7 = arith.constant 0 : index
    %6 = vector.load %arg3[%c0_5, %c0_6, %c0_7] : memref<1x8x64xf32, #tpu.memory_space<vmem>>, vector<1x8x64xf32>
    %7 = vector.shape_cast %6 : vector<1x8x64xf32> to vector<8x64xf32>
    %8 = vector.extract_strided_slice %5 {offsets = [0, 0], sizes = [8, 32], strides = [1, 1]} : vector<8x64xf32> to vector<8x32xf32>
    %9 = vector.extract_strided_slice %7 {offsets = [0, 0], sizes = [8, 32], strides = [1, 1]} : vector<8x64xf32> to vector<8x32xf32>
    %c0_8 = arith.constant 0 : index
    %c0_9 = arith.constant 0 : index
    %10 = vector.load %arg6[%c0_8, %c0_9] : memref<5x32xf32, #tpu.memory_space<vmem>>, vector<1x32xf32>
    %11 = arith.mulf %3, %3 : vector<8x32xf32>
    %cst_10 = arith.constant dense<0.000000e+00> : vector<8xf32>
    %12 = vector.multi_reduction <add>, %11, %cst_10 [1] : vector<8x32xf32> to vector<8xf32>
    %13 = vector.shape_cast %12 : vector<8xf32> to vector<8x1xf32>
    %cst_11 = arith.constant 3.200000e+01 : f32
    %14 = vector.broadcast %cst_11 : f32 to vector<8x1xf32>
    %15 = arith.divf %13, %14 : vector<8x1xf32>
    %cst_12 = arith.constant 9.99999997E-7 : f32
    %16 = vector.broadcast %cst_12 : f32 to vector<8x1xf32>
    %17 = arith.addf %15, %16 : vector<8x1xf32>
    %18 = math.rsqrt %17 : vector<8x1xf32>
    %19 = vector.broadcast %18 : vector<8x1xf32> to vector<8x32xf32>
    %20 = arith.mulf %3, %19 : vector<8x32xf32>
    %21 = vector.broadcast %10 : vector<1x32xf32> to vector<8x32xf32>
    %22 = arith.mulf %20, %21 : vector<8x32xf32>
    %23 = arith.truncf %22 : vector<8x32xf32> to vector<8x32xbf16>
    %c0_13 = arith.constant 0 : index
    %c0_14 = arith.constant 0 : index
    %c0_15 = arith.constant 0 : index
    %24 = vector.load %arg4[%c0_13, %c0_14, %c0_15] : memref<2x32x224xbf16, #tpu.memory_space<vmem>>, vector<1x32x224xbf16>
    %25 = vector.shape_cast %24 : vector<1x32x224xbf16> to vector<32x224xbf16>
    %cst_16 = arith.constant dense<0.000000e+00> : vector<8x224xf32>
    %26 = tpu.matmul %23, %25, %cst_16 {dimension_numbers = #tpu.dot_dimension_numbers<[1], [0], [0], [1], [0, 0, 1, 1], [], []>} : vector<8x32xbf16>, vector<32x224xbf16>, vector<8x224xf32> -> vector<8x224xf32>
    %27 = vector.extract_strided_slice %26 {offsets = [0, 0], sizes = [8, 64], strides = [1, 1]} : vector<8x224xf32> to vector<8x64xf32>
    %28 = vector.extract_strided_slice %26 {offsets = [0, 64], sizes = [8, 32], strides = [1, 1]} : vector<8x224xf32> to vector<8x32xf32>
    %29 = vector.extract_strided_slice %26 {offsets = [0, 96], sizes = [8, 32], strides = [1, 1]} : vector<8x224xf32> to vector<8x32xf32>
    %30 = vector.extract_strided_slice %26 {offsets = [0, 128], sizes = [8, 64], strides = [1, 1]} : vector<8x224xf32> to vector<8x64xf32>
    %31 = vector.extract_strided_slice %26 {offsets = [0, 192], sizes = [8, 32], strides = [1, 1]} : vector<8x224xf32> to vector<8x32xf32>
    %32 = arith.mulf %27, %5 : vector<8x64xf32>
    %33 = arith.mulf %30, %7 : vector<8x64xf32>
    %34 = arith.addf %32, %33 : vector<8x64xf32>
    %35 = arith.mulf %28, %8 : vector<8x32xf32>
    %36 = arith.mulf %31, %9 : vector<8x32xf32>
    %37 = arith.addf %35, %36 : vector<8x32xf32>
    %38 = vector.extract_strided_slice %34 {offsets = [0, 0], sizes = [8, 16], strides = [1, 1]} : vector<8x64xf32> to vector<8x16xf32>
    %39 = vector.extract_strided_slice %37 {offsets = [0, 0], sizes = [8, 16], strides = [1, 1]} : vector<8x32xf32> to vector<8x16xf32>
    %40 = vector.extract_strided_slice %29 {offsets = [0, 0], sizes = [8, 16], strides = [1, 1]} : vector<8x32xf32> to vector<8x16xf32>
    %41 = arith.truncf %38 : vector<8x16xf32> to vector<8x16xbf16>
    %42 = arith.truncf %39 : vector<8x16xf32> to vector<8x16xbf16>
    %cst_17 = arith.constant dense<0.000000e+00> : vector<8x8xf32>
    %43 = tpu.matmul %41, %42, %cst_17 {dimension_numbers = #tpu.dot_dimension_numbers<[1], [1], [0], [0], [0, 0, 1, 0], [], []>} : vector<8x16xbf16>, vector<8x16xbf16>, vector<8x8xf32> -> vector<8x8xf32>
    %cst_18 = arith.constant 2.500000e-01 : f32
    %44 = vector.broadcast %cst_18 : f32 to vector<8x8xf32>
    %45 = arith.mulf %43, %44 : vector<8x8xf32>
    %cst_19 = arith.constant dense<0xFF800000> : vector<8xf32>
    %46 = vector.multi_reduction <maximumf>, %45, %cst_19 [1] : vector<8x8xf32> to vector<8xf32>
    %47 = vector.shape_cast %46 : vector<8xf32> to vector<8x1xf32>
    %48 = vector.broadcast %47 : vector<8x1xf32> to vector<8x8xf32>
    %49 = arith.subf %45, %48 : vector<8x8xf32>
    %50 = math.exp %49 : vector<8x8xf32>
    %cst_20 = arith.constant dense<0.000000e+00> : vector<8xf32>
    %51 = vector.multi_reduction <add>, %50, %cst_20 [1] : vector<8x8xf32> to vector<8xf32>
    %52 = vector.shape_cast %51 : vector<8xf32> to vector<8x1xf32>
    %53 = tpu.reciprocal %52 {approx = true} : vector<8x1xf32> -> vector<8x1xf32>
    %54 = vector.broadcast %53 : vector<8x1xf32> to vector<8x8xf32>
    %55 = arith.mulf %50, %54 : vector<8x8xf32>
    %56 = arith.truncf %55 : vector<8x8xf32> to vector<8x8xbf16>
    %57 = arith.truncf %40 : vector<8x16xf32> to vector<8x16xbf16>
    %cst_21 = arith.constant dense<0.000000e+00> : vector<8x16xf32>
    %58 = tpu.matmul %56, %57, %cst_21 {dimension_numbers = #tpu.dot_dimension_numbers<[1], [0], [0], [1], [0, 0, 1, 1], [], []>} : vector<8x8xbf16>, vector<8x16xbf16>, vector<8x16xf32> -> vector<8x16xf32>
    %59 = vector.extract_strided_slice %34 {offsets = [0, 16], sizes = [8, 16], strides = [1, 1]} : vector<8x64xf32> to vector<8x16xf32>
    %60 = vector.extract_strided_slice %37 {offsets = [0, 0], sizes = [8, 16], strides = [1, 1]} : vector<8x32xf32> to vector<8x16xf32>
    %61 = vector.extract_strided_slice %29 {offsets = [0, 0], sizes = [8, 16], strides = [1, 1]} : vector<8x32xf32> to vector<8x16xf32>
    %62 = arith.truncf %59 : vector<8x16xf32> to vector<8x16xbf16>
    %63 = arith.truncf %60 : vector<8x16xf32> to vector<8x16xbf16>
    %cst_22 = arith.constant dense<0.000000e+00> : vector<8x8xf32>
    %64 = tpu.matmul %62, %63, %cst_22 {dimension_numbers = #tpu.dot_dimension_numbers<[1], [1], [0], [0], [0, 0, 1, 0], [], []>} : vector<8x16xbf16>, vector<8x16xbf16>, vector<8x8xf32> -> vector<8x8xf32>
    %cst_23 = arith.constant 2.500000e-01 : f32
    %65 = vector.broadcast %cst_23 : f32 to vector<8x8xf32>
    %66 = arith.mulf %64, %65 : vector<8x8xf32>
    %cst_24 = arith.constant dense<0xFF800000> : vector<8xf32>
    %67 = vector.multi_reduction <maximumf>, %66, %cst_24 [1] : vector<8x8xf32> to vector<8xf32>
    %68 = vector.shape_cast %67 : vector<8xf32> to vector<8x1xf32>
    %69 = vector.broadcast %68 : vector<8x1xf32> to vector<8x8xf32>
    %70 = arith.subf %66, %69 : vector<8x8xf32>
    %71 = math.exp %70 : vector<8x8xf32>
    %cst_25 = arith.constant dense<0.000000e+00> : vector<8xf32>
    %72 = vector.multi_reduction <add>, %71, %cst_25 [1] : vector<8x8xf32> to vector<8xf32>
    %73 = vector.shape_cast %72 : vector<8xf32> to vector<8x1xf32>
    %74 = tpu.reciprocal %73 {approx = true} : vector<8x1xf32> -> vector<8x1xf32>
    %75 = vector.broadcast %74 : vector<8x1xf32> to vector<8x8xf32>
    %76 = arith.mulf %71, %75 : vector<8x8xf32>
    %77 = arith.truncf %76 : vector<8x8xf32> to vector<8x8xbf16>
    %78 = arith.truncf %61 : vector<8x16xf32> to vector<8x16xbf16>
    %cst_26 = arith.constant dense<0.000000e+00> : vector<8x16xf32>
    %79 = tpu.matmul %77, %78, %cst_26 {dimension_numbers = #tpu.dot_dimension_numbers<[1], [0], [0], [1], [0, 0, 1, 1], [], []>} : vector<8x8xbf16>, vector<8x16xbf16>, vector<8x16xf32> -> vector<8x16xf32>
    %80 = vector.extract_strided_slice %34 {offsets = [0, 32], sizes = [8, 16], strides = [1, 1]} : vector<8x64xf32> to vector<8x16xf32>
    %81 = vector.extract_strided_slice %37 {offsets = [0, 16], sizes = [8, 16], strides = [1, 1]} : vector<8x32xf32> to vector<8x16xf32>
    %82 = vector.extract_strided_slice %29 {offsets = [0, 16], sizes = [8, 16], strides = [1, 1]} : vector<8x32xf32> to vector<8x16xf32>
    %83 = arith.truncf %80 : vector<8x16xf32> to vector<8x16xbf16>
    %84 = arith.truncf %81 : vector<8x16xf32> to vector<8x16xbf16>
    %cst_27 = arith.constant dense<0.000000e+00> : vector<8x8xf32>
    %85 = tpu.matmul %83, %84, %cst_27 {dimension_numbers = #tpu.dot_dimension_numbers<[1], [1], [0], [0], [0, 0, 1, 0], [], []>} : vector<8x16xbf16>, vector<8x16xbf16>, vector<8x8xf32> -> vector<8x8xf32>
    %cst_28 = arith.constant 2.500000e-01 : f32
    %86 = vector.broadcast %cst_28 : f32 to vector<8x8xf32>
    %87 = arith.mulf %85, %86 : vector<8x8xf32>
    %cst_29 = arith.constant dense<0xFF800000> : vector<8xf32>
    %88 = vector.multi_reduction <maximumf>, %87, %cst_29 [1] : vector<8x8xf32> to vector<8xf32>
    %89 = vector.shape_cast %88 : vector<8xf32> to vector<8x1xf32>
    %90 = vector.broadcast %89 : vector<8x1xf32> to vector<8x8xf32>
    %91 = arith.subf %87, %90 : vector<8x8xf32>
    %92 = math.exp %91 : vector<8x8xf32>
    %cst_30 = arith.constant dense<0.000000e+00> : vector<8xf32>
    %93 = vector.multi_reduction <add>, %92, %cst_30 [1] : vector<8x8xf32> to vector<8xf32>
    %94 = vector.shape_cast %93 : vector<8xf32> to vector<8x1xf32>
    %95 = tpu.reciprocal %94 {approx = true} : vector<8x1xf32> -> vector<8x1xf32>
    %96 = vector.broadcast %95 : vector<8x1xf32> to vector<8x8xf32>
    %97 = arith.mulf %92, %96 : vector<8x8xf32>
    %98 = arith.truncf %97 : vector<8x8xf32> to vector<8x8xbf16>
    %99 = arith.truncf %82 : vector<8x16xf32> to vector<8x16xbf16>
    %cst_31 = arith.constant dense<0.000000e+00> : vector<8x16xf32>
    %100 = tpu.matmul %98, %99, %cst_31 {dimension_numbers = #tpu.dot_dimension_numbers<[1], [0], [0], [1], [0, 0, 1, 1], [], []>} : vector<8x8xbf16>, vector<8x16xbf16>, vector<8x16xf32> -> vector<8x16xf32>
    %101 = vector.extract_strided_slice %34 {offsets = [0, 48], sizes = [8, 16], strides = [1, 1]} : vector<8x64xf32> to vector<8x16xf32>
    %102 = vector.extract_strided_slice %37 {offsets = [0, 16], sizes = [8, 16], strides = [1, 1]} : vector<8x32xf32> to vector<8x16xf32>
    %103 = vector.extract_strided_slice %29 {offsets = [0, 16], sizes = [8, 16], strides = [1, 1]} : vector<8x32xf32> to vector<8x16xf32>
    %104 = arith.truncf %101 : vector<8x16xf32> to vector<8x16xbf16>
    %105 = arith.truncf %102 : vector<8x16xf32> to vector<8x16xbf16>
    %cst_32 = arith.constant dense<0.000000e+00> : vector<8x8xf32>
    %106 = tpu.matmul %104, %105, %cst_32 {dimension_numbers = #tpu.dot_dimension_numbers<[1], [1], [0], [0], [0, 0, 1, 0], [], []>} : vector<8x16xbf16>, vector<8x16xbf16>, vector<8x8xf32> -> vector<8x8xf32>
    %cst_33 = arith.constant 2.500000e-01 : f32
    %107 = vector.broadcast %cst_33 : f32 to vector<8x8xf32>
    %108 = arith.mulf %106, %107 : vector<8x8xf32>
    %cst_34 = arith.constant dense<0xFF800000> : vector<8xf32>
    %109 = vector.multi_reduction <maximumf>, %108, %cst_34 [1] : vector<8x8xf32> to vector<8xf32>
    %110 = vector.shape_cast %109 : vector<8xf32> to vector<8x1xf32>
    %111 = vector.broadcast %110 : vector<8x1xf32> to vector<8x8xf32>
    %112 = arith.subf %108, %111 : vector<8x8xf32>
    %113 = math.exp %112 : vector<8x8xf32>
    %cst_35 = arith.constant dense<0.000000e+00> : vector<8xf32>
    %114 = vector.multi_reduction <add>, %113, %cst_35 [1] : vector<8x8xf32> to vector<8xf32>
    %115 = vector.shape_cast %114 : vector<8xf32> to vector<8x1xf32>
    %116 = tpu.reciprocal %115 {approx = true} : vector<8x1xf32> -> vector<8x1xf32>
    %117 = vector.broadcast %116 : vector<8x1xf32> to vector<8x8xf32>
    %118 = arith.mulf %113, %117 : vector<8x8xf32>
    %119 = arith.truncf %118 : vector<8x8xf32> to vector<8x8xbf16>
    %120 = arith.truncf %103 : vector<8x16xf32> to vector<8x16xbf16>
    %cst_36 = arith.constant dense<0.000000e+00> : vector<8x16xf32>
    %121 = tpu.matmul %119, %120, %cst_36 {dimension_numbers = #tpu.dot_dimension_numbers<[1], [0], [0], [1], [0, 0, 1, 1], [], []>} : vector<8x8xbf16>, vector<8x16xbf16>, vector<8x16xf32> -> vector<8x16xf32>
    %122 = tpu.concatenate %58, %79, %100, %121 in 1 : vector<8x16xf32>, vector<8x16xf32>, vector<8x16xf32>, vector<8x16xf32> -> vector<8x64xf32>
    %123 = arith.truncf %122 : vector<8x64xf32> to vector<8x64xbf16>
    %c0_37 = arith.constant 0 : index
    %c0_38 = arith.constant 0 : index
    %c0_39 = arith.constant 0 : index
    %124 = vector.load %arg5[%c0_37, %c0_38, %c0_39] : memref<2x64x32xbf16, #tpu.memory_space<vmem>>, vector<1x64x32xbf16>
    %125 = vector.shape_cast %124 : vector<1x64x32xbf16> to vector<64x32xbf16>
    %cst_40 = arith.constant dense<0.000000e+00> : vector<8x32xf32>
    %126 = tpu.matmul %123, %125, %cst_40 {dimension_numbers = #tpu.dot_dimension_numbers<[1], [0], [0], [1], [0, 0, 1, 1], [], []>} : vector<8x64xbf16>, vector<64x32xbf16>, vector<8x32xf32> -> vector<8x32xf32>
    %127 = arith.addf %3, %126 : vector<8x32xf32>
    %c1 = arith.constant 1 : index
    %c0_41 = arith.constant 0 : index
    %128 = vector.load %arg6[%c1, %c0_41] : memref<5x32xf32, #tpu.memory_space<vmem>>, vector<1x32xf32>
    %129 = arith.mulf %127, %127 : vector<8x32xf32>
    %cst_42 = arith.constant dense<0.000000e+00> : vector<8xf32>
    %130 = vector.multi_reduction <add>, %129, %cst_42 [1] : vector<8x32xf32> to vector<8xf32>
    %131 = vector.shape_cast %130 : vector<8xf32> to vector<8x1xf32>
    %cst_43 = arith.constant 3.200000e+01 : f32
    %132 = vector.broadcast %cst_43 : f32 to vector<8x1xf32>
    %133 = arith.divf %131, %132 : vector<8x1xf32>
    %cst_44 = arith.constant 9.99999997E-7 : f32
    %134 = vector.broadcast %cst_44 : f32 to vector<8x1xf32>
    %135 = arith.addf %133, %134 : vector<8x1xf32>
    %136 = math.rsqrt %135 : vector<8x1xf32>
    %137 = vector.broadcast %136 : vector<8x1xf32> to vector<8x32xf32>
    %138 = arith.mulf %127, %137 : vector<8x32xf32>
    %139 = vector.broadcast %128 : vector<1x32xf32> to vector<8x32xf32>
    %140 = arith.mulf %138, %139 : vector<8x32xf32>
    %141 = arith.truncf %140 : vector<8x32xf32> to vector<8x32xbf16>
    %c0_45 = arith.constant 0 : index
    %c0_46 = arith.constant 0 : index
    %c0_47 = arith.constant 0 : index
    %142 = vector.load %arg7[%c0_45, %c0_46, %c0_47] : memref<2x32x128xbf16, #tpu.memory_space<vmem>>, vector<1x32x128xbf16>
    %143 = vector.shape_cast %142 : vector<1x32x128xbf16> to vector<32x128xbf16>
    %cst_48 = arith.constant dense<0.000000e+00> : vector<8x128xf32>
    %144 = tpu.matmul %141, %143, %cst_48 {dimension_numbers = #tpu.dot_dimension_numbers<[1], [0], [0], [1], [0, 0, 1, 1], [], []>} : vector<8x32xbf16>, vector<32x128xbf16>, vector<8x128xf32> -> vector<8x128xf32>
    %145 = vector.extract_strided_slice %144 {offsets = [0, 0], sizes = [8, 64], strides = [1, 1]} : vector<8x128xf32> to vector<8x64xf32>
    %146 = vector.extract_strided_slice %144 {offsets = [0, 64], sizes = [8, 64], strides = [1, 1]} : vector<8x128xf32> to vector<8x64xf32>
    %147 = arith.mulf %145, %145 : vector<8x64xf32>
    %148 = arith.mulf %145, %147 : vector<8x64xf32>
    %cst_49 = arith.constant 4.471500e-02 : f32
    %149 = vector.broadcast %cst_49 : f32 to vector<8x64xf32>
    %150 = arith.mulf %149, %148 : vector<8x64xf32>
    %151 = arith.addf %145, %150 : vector<8x64xf32>
    %cst_50 = arith.constant 0.797884583 : f32
    %152 = vector.broadcast %cst_50 : f32 to vector<8x64xf32>
    %153 = arith.mulf %152, %151 : vector<8x64xf32>
    %154 = math.tanh %153 : vector<8x64xf32>
    %cst_51 = arith.constant 1.000000e+00 : f32
    %155 = vector.broadcast %cst_51 : f32 to vector<8x64xf32>
    %156 = arith.addf %155, %154 : vector<8x64xf32>
    %cst_52 = arith.constant 5.000000e-01 : f32
    %157 = vector.broadcast %cst_52 : f32 to vector<8x64xf32>
    %158 = arith.mulf %157, %156 : vector<8x64xf32>
    %159 = arith.mulf %145, %158 : vector<8x64xf32>
    %160 = arith.mulf %159, %146 : vector<8x64xf32>
    %161 = arith.truncf %160 : vector<8x64xf32> to vector<8x64xbf16>
    %c0_53 = arith.constant 0 : index
    %c0_54 = arith.constant 0 : index
    %c0_55 = arith.constant 0 : index
    %162 = vector.load %arg8[%c0_53, %c0_54, %c0_55] : memref<2x64x32xbf16, #tpu.memory_space<vmem>>, vector<1x64x32xbf16>
    %163 = vector.shape_cast %162 : vector<1x64x32xbf16> to vector<64x32xbf16>
    %cst_56 = arith.constant dense<0.000000e+00> : vector<8x32xf32>
    %164 = tpu.matmul %161, %163, %cst_56 {dimension_numbers = #tpu.dot_dimension_numbers<[1], [0], [0], [1], [0, 0, 1, 1], [], []>} : vector<8x64xbf16>, vector<64x32xbf16>, vector<8x32xf32> -> vector<8x32xf32>
    %165 = arith.addf %127, %164 : vector<8x32xf32>
    %c2 = arith.constant 2 : index
    %c0_57 = arith.constant 0 : index
    %166 = vector.load %arg6[%c2, %c0_57] : memref<5x32xf32, #tpu.memory_space<vmem>>, vector<1x32xf32>
    %167 = arith.mulf %165, %165 : vector<8x32xf32>
    %cst_58 = arith.constant dense<0.000000e+00> : vector<8xf32>
    %168 = vector.multi_reduction <add>, %167, %cst_58 [1] : vector<8x32xf32> to vector<8xf32>
    %169 = vector.shape_cast %168 : vector<8xf32> to vector<8x1xf32>
    %cst_59 = arith.constant 3.200000e+01 : f32
    %170 = vector.broadcast %cst_59 : f32 to vector<8x1xf32>
    %171 = arith.divf %169, %170 : vector<8x1xf32>
    %cst_60 = arith.constant 9.99999997E-7 : f32
    %172 = vector.broadcast %cst_60 : f32 to vector<8x1xf32>
    %173 = arith.addf %171, %172 : vector<8x1xf32>
    %174 = math.rsqrt %173 : vector<8x1xf32>
    %175 = vector.broadcast %174 : vector<8x1xf32> to vector<8x32xf32>
    %176 = arith.mulf %165, %175 : vector<8x32xf32>
    %177 = vector.broadcast %166 : vector<1x32xf32> to vector<8x32xf32>
    %178 = arith.mulf %176, %177 : vector<8x32xf32>
    %179 = arith.truncf %178 : vector<8x32xf32> to vector<8x32xbf16>
    %c1_61 = arith.constant 1 : index
    %c0_62 = arith.constant 0 : index
    %c0_63 = arith.constant 0 : index
    %180 = vector.load %arg4[%c1_61, %c0_62, %c0_63] : memref<2x32x224xbf16, #tpu.memory_space<vmem>>, vector<1x32x224xbf16>
    %181 = vector.shape_cast %180 : vector<1x32x224xbf16> to vector<32x224xbf16>
    %cst_64 = arith.constant dense<0.000000e+00> : vector<8x224xf32>
    %182 = tpu.matmul %179, %181, %cst_64 {dimension_numbers = #tpu.dot_dimension_numbers<[1], [0], [0], [1], [0, 0, 1, 1], [], []>} : vector<8x32xbf16>, vector<32x224xbf16>, vector<8x224xf32> -> vector<8x224xf32>
    %183 = vector.extract_strided_slice %182 {offsets = [0, 0], sizes = [8, 64], strides = [1, 1]} : vector<8x224xf32> to vector<8x64xf32>
    %184 = vector.extract_strided_slice %182 {offsets = [0, 64], sizes = [8, 32], strides = [1, 1]} : vector<8x224xf32> to vector<8x32xf32>
    %185 = vector.extract_strided_slice %182 {offsets = [0, 96], sizes = [8, 32], strides = [1, 1]} : vector<8x224xf32> to vector<8x32xf32>
    %186 = vector.extract_strided_slice %182 {offsets = [0, 128], sizes = [8, 64], strides = [1, 1]} : vector<8x224xf32> to vector<8x64xf32>
    %187 = vector.extract_strided_slice %182 {offsets = [0, 192], sizes = [8, 32], strides = [1, 1]} : vector<8x224xf32> to vector<8x32xf32>
    %188 = arith.mulf %183, %5 : vector<8x64xf32>
    %189 = arith.mulf %186, %7 : vector<8x64xf32>
    %190 = arith.addf %188, %189 : vector<8x64xf32>
    %191 = arith.mulf %184, %8 : vector<8x32xf32>
    %192 = arith.mulf %187, %9 : vector<8x32xf32>
    %193 = arith.addf %191, %192 : vector<8x32xf32>
    %194 = vector.extract_strided_slice %190 {offsets = [0, 0], sizes = [8, 16], strides = [1, 1]} : vector<8x64xf32> to vector<8x16xf32>
    %195 = vector.extract_strided_slice %193 {offsets = [0, 0], sizes = [8, 16], strides = [1, 1]} : vector<8x32xf32> to vector<8x16xf32>
    %196 = vector.extract_strided_slice %185 {offsets = [0, 0], sizes = [8, 16], strides = [1, 1]} : vector<8x32xf32> to vector<8x16xf32>
    %197 = arith.truncf %194 : vector<8x16xf32> to vector<8x16xbf16>
    %198 = arith.truncf %195 : vector<8x16xf32> to vector<8x16xbf16>
    %cst_65 = arith.constant dense<0.000000e+00> : vector<8x8xf32>
    %199 = tpu.matmul %197, %198, %cst_65 {dimension_numbers = #tpu.dot_dimension_numbers<[1], [1], [0], [0], [0, 0, 1, 0], [], []>} : vector<8x16xbf16>, vector<8x16xbf16>, vector<8x8xf32> -> vector<8x8xf32>
    %cst_66 = arith.constant 2.500000e-01 : f32
    %200 = vector.broadcast %cst_66 : f32 to vector<8x8xf32>
    %201 = arith.mulf %199, %200 : vector<8x8xf32>
    %cst_67 = arith.constant dense<0xFF800000> : vector<8xf32>
    %202 = vector.multi_reduction <maximumf>, %201, %cst_67 [1] : vector<8x8xf32> to vector<8xf32>
    %203 = vector.shape_cast %202 : vector<8xf32> to vector<8x1xf32>
    %204 = vector.broadcast %203 : vector<8x1xf32> to vector<8x8xf32>
    %205 = arith.subf %201, %204 : vector<8x8xf32>
    %206 = math.exp %205 : vector<8x8xf32>
    %cst_68 = arith.constant dense<0.000000e+00> : vector<8xf32>
    %207 = vector.multi_reduction <add>, %206, %cst_68 [1] : vector<8x8xf32> to vector<8xf32>
    %208 = vector.shape_cast %207 : vector<8xf32> to vector<8x1xf32>
    %209 = tpu.reciprocal %208 {approx = true} : vector<8x1xf32> -> vector<8x1xf32>
    %210 = vector.broadcast %209 : vector<8x1xf32> to vector<8x8xf32>
    %211 = arith.mulf %206, %210 : vector<8x8xf32>
    %212 = arith.truncf %211 : vector<8x8xf32> to vector<8x8xbf16>
    %213 = arith.truncf %196 : vector<8x16xf32> to vector<8x16xbf16>
    %cst_69 = arith.constant dense<0.000000e+00> : vector<8x16xf32>
    %214 = tpu.matmul %212, %213, %cst_69 {dimension_numbers = #tpu.dot_dimension_numbers<[1], [0], [0], [1], [0, 0, 1, 1], [], []>} : vector<8x8xbf16>, vector<8x16xbf16>, vector<8x16xf32> -> vector<8x16xf32>
    %215 = vector.extract_strided_slice %190 {offsets = [0, 16], sizes = [8, 16], strides = [1, 1]} : vector<8x64xf32> to vector<8x16xf32>
    %216 = vector.extract_strided_slice %193 {offsets = [0, 0], sizes = [8, 16], strides = [1, 1]} : vector<8x32xf32> to vector<8x16xf32>
    %217 = vector.extract_strided_slice %185 {offsets = [0, 0], sizes = [8, 16], strides = [1, 1]} : vector<8x32xf32> to vector<8x16xf32>
    %218 = arith.truncf %215 : vector<8x16xf32> to vector<8x16xbf16>
    %219 = arith.truncf %216 : vector<8x16xf32> to vector<8x16xbf16>
    %cst_70 = arith.constant dense<0.000000e+00> : vector<8x8xf32>
    %220 = tpu.matmul %218, %219, %cst_70 {dimension_numbers = #tpu.dot_dimension_numbers<[1], [1], [0], [0], [0, 0, 1, 0], [], []>} : vector<8x16xbf16>, vector<8x16xbf16>, vector<8x8xf32> -> vector<8x8xf32>
    %cst_71 = arith.constant 2.500000e-01 : f32
    %221 = vector.broadcast %cst_71 : f32 to vector<8x8xf32>
    %222 = arith.mulf %220, %221 : vector<8x8xf32>
    %cst_72 = arith.constant dense<0xFF800000> : vector<8xf32>
    %223 = vector.multi_reduction <maximumf>, %222, %cst_72 [1] : vector<8x8xf32> to vector<8xf32>
    %224 = vector.shape_cast %223 : vector<8xf32> to vector<8x1xf32>
    %225 = vector.broadcast %224 : vector<8x1xf32> to vector<8x8xf32>
    %226 = arith.subf %222, %225 : vector<8x8xf32>
    %227 = math.exp %226 : vector<8x8xf32>
    %cst_73 = arith.constant dense<0.000000e+00> : vector<8xf32>
    %228 = vector.multi_reduction <add>, %227, %cst_73 [1] : vector<8x8xf32> to vector<8xf32>
    %229 = vector.shape_cast %228 : vector<8xf32> to vector<8x1xf32>
    %230 = tpu.reciprocal %229 {approx = true} : vector<8x1xf32> -> vector<8x1xf32>
    %231 = vector.broadcast %230 : vector<8x1xf32> to vector<8x8xf32>
    %232 = arith.mulf %227, %231 : vector<8x8xf32>
    %233 = arith.truncf %232 : vector<8x8xf32> to vector<8x8xbf16>
    %234 = arith.truncf %217 : vector<8x16xf32> to vector<8x16xbf16>
    %cst_74 = arith.constant dense<0.000000e+00> : vector<8x16xf32>
    %235 = tpu.matmul %233, %234, %cst_74 {dimension_numbers = #tpu.dot_dimension_numbers<[1], [0], [0], [1], [0, 0, 1, 1], [], []>} : vector<8x8xbf16>, vector<8x16xbf16>, vector<8x16xf32> -> vector<8x16xf32>
    %236 = vector.extract_strided_slice %190 {offsets = [0, 32], sizes = [8, 16], strides = [1, 1]} : vector<8x64xf32> to vector<8x16xf32>
    %237 = vector.extract_strided_slice %193 {offsets = [0, 16], sizes = [8, 16], strides = [1, 1]} : vector<8x32xf32> to vector<8x16xf32>
    %238 = vector.extract_strided_slice %185 {offsets = [0, 16], sizes = [8, 16], strides = [1, 1]} : vector<8x32xf32> to vector<8x16xf32>
    %239 = arith.truncf %236 : vector<8x16xf32> to vector<8x16xbf16>
    %240 = arith.truncf %237 : vector<8x16xf32> to vector<8x16xbf16>
    %cst_75 = arith.constant dense<0.000000e+00> : vector<8x8xf32>
    %241 = tpu.matmul %239, %240, %cst_75 {dimension_numbers = #tpu.dot_dimension_numbers<[1], [1], [0], [0], [0, 0, 1, 0], [], []>} : vector<8x16xbf16>, vector<8x16xbf16>, vector<8x8xf32> -> vector<8x8xf32>
    %cst_76 = arith.constant 2.500000e-01 : f32
    %242 = vector.broadcast %cst_76 : f32 to vector<8x8xf32>
    %243 = arith.mulf %241, %242 : vector<8x8xf32>
    %cst_77 = arith.constant dense<0xFF800000> : vector<8xf32>
    %244 = vector.multi_reduction <maximumf>, %243, %cst_77 [1] : vector<8x8xf32> to vector<8xf32>
    %245 = vector.shape_cast %244 : vector<8xf32> to vector<8x1xf32>
    %246 = vector.broadcast %245 : vector<8x1xf32> to vector<8x8xf32>
    %247 = arith.subf %243, %246 : vector<8x8xf32>
    %248 = math.exp %247 : vector<8x8xf32>
    %cst_78 = arith.constant dense<0.000000e+00> : vector<8xf32>
    %249 = vector.multi_reduction <add>, %248, %cst_78 [1] : vector<8x8xf32> to vector<8xf32>
    %250 = vector.shape_cast %249 : vector<8xf32> to vector<8x1xf32>
    %251 = tpu.reciprocal %250 {approx = true} : vector<8x1xf32> -> vector<8x1xf32>
    %252 = vector.broadcast %251 : vector<8x1xf32> to vector<8x8xf32>
    %253 = arith.mulf %248, %252 : vector<8x8xf32>
    %254 = arith.truncf %253 : vector<8x8xf32> to vector<8x8xbf16>
    %255 = arith.truncf %238 : vector<8x16xf32> to vector<8x16xbf16>
    %cst_79 = arith.constant dense<0.000000e+00> : vector<8x16xf32>
    %256 = tpu.matmul %254, %255, %cst_79 {dimension_numbers = #tpu.dot_dimension_numbers<[1], [0], [0], [1], [0, 0, 1, 1], [], []>} : vector<8x8xbf16>, vector<8x16xbf16>, vector<8x16xf32> -> vector<8x16xf32>
    %257 = vector.extract_strided_slice %190 {offsets = [0, 48], sizes = [8, 16], strides = [1, 1]} : vector<8x64xf32> to vector<8x16xf32>
    %258 = vector.extract_strided_slice %193 {offsets = [0, 16], sizes = [8, 16], strides = [1, 1]} : vector<8x32xf32> to vector<8x16xf32>
    %259 = vector.extract_strided_slice %185 {offsets = [0, 16], sizes = [8, 16], strides = [1, 1]} : vector<8x32xf32> to vector<8x16xf32>
    %260 = arith.truncf %257 : vector<8x16xf32> to vector<8x16xbf16>
    %261 = arith.truncf %258 : vector<8x16xf32> to vector<8x16xbf16>
    %cst_80 = arith.constant dense<0.000000e+00> : vector<8x8xf32>
    %262 = tpu.matmul %260, %261, %cst_80 {dimension_numbers = #tpu.dot_dimension_numbers<[1], [1], [0], [0], [0, 0, 1, 0], [], []>} : vector<8x16xbf16>, vector<8x16xbf16>, vector<8x8xf32> -> vector<8x8xf32>
    %cst_81 = arith.constant 2.500000e-01 : f32
    %263 = vector.broadcast %cst_81 : f32 to vector<8x8xf32>
    %264 = arith.mulf %262, %263 : vector<8x8xf32>
    %cst_82 = arith.constant dense<0xFF800000> : vector<8xf32>
    %265 = vector.multi_reduction <maximumf>, %264, %cst_82 [1] : vector<8x8xf32> to vector<8xf32>
    %266 = vector.shape_cast %265 : vector<8xf32> to vector<8x1xf32>
    %267 = vector.broadcast %266 : vector<8x1xf32> to vector<8x8xf32>
    %268 = arith.subf %264, %267 : vector<8x8xf32>
    %269 = math.exp %268 : vector<8x8xf32>
    %cst_83 = arith.constant dense<0.000000e+00> : vector<8xf32>
    %270 = vector.multi_reduction <add>, %269, %cst_83 [1] : vector<8x8xf32> to vector<8xf32>
    %271 = vector.shape_cast %270 : vector<8xf32> to vector<8x1xf32>
    %272 = tpu.reciprocal %271 {approx = true} : vector<8x1xf32> -> vector<8x1xf32>
    %273 = vector.broadcast %272 : vector<8x1xf32> to vector<8x8xf32>
    %274 = arith.mulf %269, %273 : vector<8x8xf32>
    %275 = arith.truncf %274 : vector<8x8xf32> to vector<8x8xbf16>
    %276 = arith.truncf %259 : vector<8x16xf32> to vector<8x16xbf16>
    %cst_84 = arith.constant dense<0.000000e+00> : vector<8x16xf32>
    %277 = tpu.matmul %275, %276, %cst_84 {dimension_numbers = #tpu.dot_dimension_numbers<[1], [0], [0], [1], [0, 0, 1, 1], [], []>} : vector<8x8xbf16>, vector<8x16xbf16>, vector<8x16xf32> -> vector<8x16xf32>
    %278 = tpu.concatenate %214, %235, %256, %277 in 1 : vector<8x16xf32>, vector<8x16xf32>, vector<8x16xf32>, vector<8x16xf32> -> vector<8x64xf32>
    %279 = arith.truncf %278 : vector<8x64xf32> to vector<8x64xbf16>
    %c1_85 = arith.constant 1 : index
    %c0_86 = arith.constant 0 : index
    %c0_87 = arith.constant 0 : index
    %280 = vector.load %arg5[%c1_85, %c0_86, %c0_87] : memref<2x64x32xbf16, #tpu.memory_space<vmem>>, vector<1x64x32xbf16>
    %281 = vector.shape_cast %280 : vector<1x64x32xbf16> to vector<64x32xbf16>
    %cst_88 = arith.constant dense<0.000000e+00> : vector<8x32xf32>
    %282 = tpu.matmul %279, %281, %cst_88 {dimension_numbers = #tpu.dot_dimension_numbers<[1], [0], [0], [1], [0, 0, 1, 1], [], []>} : vector<8x64xbf16>, vector<64x32xbf16>, vector<8x32xf32> -> vector<8x32xf32>
    %283 = arith.addf %165, %282 : vector<8x32xf32>
    %c3 = arith.constant 3 : index
    %c0_89 = arith.constant 0 : index
    %284 = vector.load %arg6[%c3, %c0_89] : memref<5x32xf32, #tpu.memory_space<vmem>>, vector<1x32xf32>
    %285 = arith.mulf %283, %283 : vector<8x32xf32>
    %cst_90 = arith.constant dense<0.000000e+00> : vector<8xf32>
    %286 = vector.multi_reduction <add>, %285, %cst_90 [1] : vector<8x32xf32> to vector<8xf32>
    %287 = vector.shape_cast %286 : vector<8xf32> to vector<8x1xf32>
    %cst_91 = arith.constant 3.200000e+01 : f32
    %288 = vector.broadcast %cst_91 : f32 to vector<8x1xf32>
    %289 = arith.divf %287, %288 : vector<8x1xf32>
    %cst_92 = arith.constant 9.99999997E-7 : f32
    %290 = vector.broadcast %cst_92 : f32 to vector<8x1xf32>
    %291 = arith.addf %289, %290 : vector<8x1xf32>
    %292 = math.rsqrt %291 : vector<8x1xf32>
    %293 = vector.broadcast %292 : vector<8x1xf32> to vector<8x32xf32>
    %294 = arith.mulf %283, %293 : vector<8x32xf32>
    %295 = vector.broadcast %284 : vector<1x32xf32> to vector<8x32xf32>
    %296 = arith.mulf %294, %295 : vector<8x32xf32>
    %297 = arith.truncf %296 : vector<8x32xf32> to vector<8x32xbf16>
    %c1_93 = arith.constant 1 : index
    %c0_94 = arith.constant 0 : index
    %c0_95 = arith.constant 0 : index
    %298 = vector.load %arg7[%c1_93, %c0_94, %c0_95] : memref<2x32x128xbf16, #tpu.memory_space<vmem>>, vector<1x32x128xbf16>
    %299 = vector.shape_cast %298 : vector<1x32x128xbf16> to vector<32x128xbf16>
    %cst_96 = arith.constant dense<0.000000e+00> : vector<8x128xf32>
    %300 = tpu.matmul %297, %299, %cst_96 {dimension_numbers = #tpu.dot_dimension_numbers<[1], [0], [0], [1], [0, 0, 1, 1], [], []>} : vector<8x32xbf16>, vector<32x128xbf16>, vector<8x128xf32> -> vector<8x128xf32>
    %301 = vector.extract_strided_slice %300 {offsets = [0, 0], sizes = [8, 64], strides = [1, 1]} : vector<8x128xf32> to vector<8x64xf32>
    %302 = vector.extract_strided_slice %300 {offsets = [0, 64], sizes = [8, 64], strides = [1, 1]} : vector<8x128xf32> to vector<8x64xf32>
    %303 = arith.mulf %301, %301 : vector<8x64xf32>
    %304 = arith.mulf %301, %303 : vector<8x64xf32>
    %cst_97 = arith.constant 4.471500e-02 : f32
    %305 = vector.broadcast %cst_97 : f32 to vector<8x64xf32>
    %306 = arith.mulf %305, %304 : vector<8x64xf32>
    %307 = arith.addf %301, %306 : vector<8x64xf32>
    %cst_98 = arith.constant 0.797884583 : f32
    %308 = vector.broadcast %cst_98 : f32 to vector<8x64xf32>
    %309 = arith.mulf %308, %307 : vector<8x64xf32>
    %310 = math.tanh %309 : vector<8x64xf32>
    %cst_99 = arith.constant 1.000000e+00 : f32
    %311 = vector.broadcast %cst_99 : f32 to vector<8x64xf32>
    %312 = arith.addf %311, %310 : vector<8x64xf32>
    %cst_100 = arith.constant 5.000000e-01 : f32
    %313 = vector.broadcast %cst_100 : f32 to vector<8x64xf32>
    %314 = arith.mulf %313, %312 : vector<8x64xf32>
    %315 = arith.mulf %301, %314 : vector<8x64xf32>
    %316 = arith.mulf %315, %302 : vector<8x64xf32>
    %317 = arith.truncf %316 : vector<8x64xf32> to vector<8x64xbf16>
    %c1_101 = arith.constant 1 : index
    %c0_102 = arith.constant 0 : index
    %c0_103 = arith.constant 0 : index
    %318 = vector.load %arg8[%c1_101, %c0_102, %c0_103] : memref<2x64x32xbf16, #tpu.memory_space<vmem>>, vector<1x64x32xbf16>
    %319 = vector.shape_cast %318 : vector<1x64x32xbf16> to vector<64x32xbf16>
    %cst_104 = arith.constant dense<0.000000e+00> : vector<8x32xf32>
    %320 = tpu.matmul %317, %319, %cst_104 {dimension_numbers = #tpu.dot_dimension_numbers<[1], [0], [0], [1], [0, 0, 1, 1], [], []>} : vector<8x64xbf16>, vector<64x32xbf16>, vector<8x32xf32> -> vector<8x32xf32>
    %321 = arith.addf %283, %320 : vector<8x32xf32>
    %c4 = arith.constant 4 : index
    %c0_105 = arith.constant 0 : index
    %322 = vector.load %arg6[%c4, %c0_105] : memref<5x32xf32, #tpu.memory_space<vmem>>, vector<1x32xf32>
    %323 = arith.mulf %321, %321 : vector<8x32xf32>
    %cst_106 = arith.constant dense<0.000000e+00> : vector<8xf32>
    %324 = vector.multi_reduction <add>, %323, %cst_106 [1] : vector<8x32xf32> to vector<8xf32>
    %325 = vector.shape_cast %324 : vector<8xf32> to vector<8x1xf32>
    %cst_107 = arith.constant 3.200000e+01 : f32
    %326 = vector.broadcast %cst_107 : f32 to vector<8x1xf32>
    %327 = arith.divf %325, %326 : vector<8x1xf32>
    %cst_108 = arith.constant 9.99999997E-7 : f32
    %328 = vector.broadcast %cst_108 : f32 to vector<8x1xf32>
    %329 = arith.addf %327, %328 : vector<8x1xf32>
    %330 = math.rsqrt %329 : vector<8x1xf32>
    %331 = vector.broadcast %330 : vector<8x1xf32> to vector<8x32xf32>
    %332 = arith.mulf %321, %331 : vector<8x32xf32>
    %333 = vector.broadcast %322 : vector<1x32xf32> to vector<8x32xf32>
    %334 = arith.mulf %332, %333 : vector<8x32xf32>
    %335 = arith.truncf %334 : vector<8x32xf32> to vector<8x32xbf16>
    %c0_109 = arith.constant 0 : index
    %c0_110 = arith.constant 0 : index
    %336 = vector.load %arg9[%c0_109, %c0_110] : memref<32x128xbf16, #tpu.memory_space<vmem>>, vector<32x128xbf16>
    %cst_111 = arith.constant dense<0.000000e+00> : vector<8x128xf32>
    %337 = tpu.matmul %335, %336, %cst_111 {dimension_numbers = #tpu.dot_dimension_numbers<[1], [0], [0], [1], [0, 0, 1, 1], [], []>} : vector<8x32xbf16>, vector<32x128xbf16>, vector<8x128xf32> -> vector<8x128xf32>
    %c0_112 = arith.constant 0 : index
    %c0_113 = arith.constant 0 : index
    %c0_114 = arith.constant 0 : index
    %338 = vector.load %arg10[%c0_112, %c0_113, %c0_114] : memref<1x8x128xf32, #tpu.memory_space<vmem>>, vector<1x8x128xf32>
    %339 = vector.shape_cast %338 : vector<1x8x128xf32> to vector<8x128xf32>
    %340 = vector.shape_cast %337 : vector<8x128xf32> to vector<1x8x128xf32>
    tpu.vector_store %arg10[%c0_112, %c0_113, %c0_114], %340 {strides = array<i32>} : memref<1x8x128xf32, #tpu.memory_space<vmem>>, vector<1x8x128xf32>,
    return
  }
  func.func @transform_0(%arg0: i32) -> (i32, i32, i32) {
    %c0_i32 = arith.constant 0 : i32
    %c0_i32_0 = arith.constant 0 : i32
    %c0_i32_1 = arith.constant 0 : i32
    return %arg0, %c0_i32, %c0_i32_0 : i32, i32, i32
  }
  func.func @transform_1(%arg0: i32) -> (i32, i32, i32) {
    %c0_i32 = arith.constant 0 : i32
    %c0_i32_0 = arith.constant 0 : i32
    %c0_i32_1 = arith.constant 0 : i32
    return %arg0, %c0_i32, %c0_i32_0 : i32, i32, i32
  }
  func.func @transform_2(%arg0: i32) -> (i32, i32, i32) {
    %c0_i32 = arith.constant 0 : i32
    %c0_i32_0 = arith.constant 0 : i32
    %c0_i32_1 = arith.constant 0 : i32
    return %arg0, %c0_i32, %c0_i32_0 : i32, i32, i32
  }
  func.func @transform_3(%arg0: i32) -> (i32, i32, i32) {
    %c0_i32 = arith.constant 0 : i32
    %c0_i32_0 = arith.constant 0 : i32
    %c0_i32_1 = arith.constant 0 : i32
    %c0_i32_2 = arith.constant 0 : i32
    return %c0_i32, %c0_i32_0, %c0_i32_1 : i32, i32, i32
  }
  func.func @transform_4(%arg0: i32) -> (i32, i32, i32) {
    %c0_i32 = arith.constant 0 : i32
    %c0_i32_0 = arith.constant 0 : i32
    %c0_i32_1 = arith.constant 0 : i32
    %c0_i32_2 = arith.constant 0 : i32
    return %c0_i32, %c0_i32_0, %c0_i32_1 : i32, i32, i32
  }
  func.func @transform_5(%arg0: i32) -> (i32, i32) {
    %c0_i32 = arith.constant 0 : i32
    %c0_i32_0 = arith.constant 0 : i32
    %c0_i32_1 = arith.constant 0 : i32
    return %c0_i32, %c0_i32_0 : i32, i32
  }
  func.func @transform_6(%arg0: i32) -> (i32, i32, i32) {
    %c0_i32 = arith.constant 0 : i32
    %c0_i32_0 = arith.constant 0 : i32
    %c0_i32_1 = arith.constant 0 : i32
    %c0_i32_2 = arith.constant 0 : i32
    return %c0_i32, %c0_i32_0, %c0_i32_1 : i32, i32, i32
  }
  func.func @transform_7(%arg0: i32) -> (i32, i32, i32) {
    %c0_i32 = arith.constant 0 : i32
    %c0_i32_0 = arith.constant 0 : i32
    %c0_i32_1 = arith.constant 0 : i32
    %c0_i32_2 = arith.constant 0 : i32
    return %c0_i32, %c0_i32_0, %c0_i32_1 : i32, i32, i32
  }
  func.func @transform_8(%arg0: i32) -> (i32, i32) {
    %c0_i32 = arith.constant 0 : i32
    %c0_i32_0 = arith.constant 0 : i32
    %c0_i32_1 = arith.constant 0 : i32
    return %c0_i32, %c0_i32_0 : i32, i32
  }
  func.func @transform_9(%arg0: i32) -> (i32, i32, i32) {
    %c0_i32 = arith.constant 0 : i32
    %c0_i32_0 = arith.constant 0 : i32
    %c0_i32_1 = arith.constant 0 : i32
    return %arg0, %c0_i32, %c0_i32_0 : i32, i32, i32
  }
}

</mosaic_0001>

<bundles_post_ra>
// kernel: tile.14
= control target key start
LH: loop header
LB: loop body
LE: loop exit
PB: predicated region body
PF: predicated region fallthrough
CT: control target
= control target key end

     0   :  { %vm82_vm0 = vcmask 1047556   ;;  %vm84_vm1 = vcmask 130048   ;;  %s195_s9 = smov 48   ;;  %s196_s14 = smov 16   ;;  %vm103_vm2 = vcmask 523648   ;;  %vm124_vm3 = vcmask 392448   ;;  %s289_s0 = inlined_call_operand.vmem [shape: f32[2,8,4,16], index: 0, kind: input, shape index: {}]   ;;  %s290_s1 = inlined_call_operand.vmem [shape: f32[2,8,64], index: 1, kind: output, shape index: {}]  }
   0x1   :  { %v180_v0 = vld [vmem:[%s289_s0 + $0x1c] sm:$0xf]  ;;  %v181_v1 = vld [vmem:[%s289_s0 + $0x18] sm:$0xf]  ;;  %v182_v2 = vld [vmem:[%s289_s0 + $0x14] sm:$0xf] }
   0x2   :  { %48 = vst [vmem:[#allocation0 + $0x38] sm:$0xf] %v180_v0  ;;  %53 = vst [vmem:[#allocation0 + $0x30] sm:$0xf] %v181_v1  ;;  %v183_v3 = vld [vmem:[%s289_s0 + $0x10] sm:$0xf] }
   0x3   :  { %58 = vst [vmem:[#allocation0 + $0x28] sm:$0xf] %v182_v2  ;;  %v184_v4 = vld [vmem:[%s289_s0 + $0xc] sm:$0xf]  ;;  %v185_v5 = vld [vmem:[%s289_s0 + $0x8] sm:$0xf] }
   0x4   :  { %63 = vst [vmem:[#allocation0 + $0x20] sm:$0xf] %v183_v3  ;;  %68 = vst [vmem:[#allocation0 + $0x18] sm:$0xf] %v184_v4  ;;  %v186_v6 = vld [vmem:[%s289_s0 + $0x4] sm:$0xf] }
   0x5   :  { %73 = vst [vmem:[#allocation0 + $0x10] sm:$0xf] %v185_v5  ;;  %v78_v7 = vld [vmem:[%s289_s0] sm:$0xf]  ;;  %77 = vst [vmem:[#allocation0 + $0x8] sm:$0xf] %v186_v6 }
   0x6   :  { %79 = vst [vmem:[#allocation0] sm:$0xf] %v78_v7  ;;  %v172_v8 = vld [vmem:[%s289_s0 + $0x3c] sm:$0xf]  ;;  %v173_v9 = vld [vmem:[%s289_s0 + $0x38] sm:$0xf] }
   0x7   :  { %8 = vst [vmem:[#allocation0 + $0x78] sm:$0xf] %v172_v8  ;;  %13 = vst [vmem:[#allocation0 + $0x70] sm:$0xf] %v173_v9  ;;  %v174_v10 = vld [vmem:[%s289_s0 + $0x34] sm:$0xf] }
   0x8   :  { %v175_v11 = vld [vmem:[%s289_s0 + $0x30] sm:$0xf]  ;;  %v176_v12 = vld [vmem:[%s289_s0 + $0x2c] sm:$0xf]  ;;  %18 = vst [vmem:[#allocation0 + $0x68] sm:$0xf] %v174_v10 }
   0x9   :  { %23 = vst [vmem:[#allocation0 + $0x60] sm:$0xf] %v175_v11  ;;  %28 = vst [vmem:[#allocation0 + $0x58] sm:$0xf] %v176_v12  ;;  %v177_v13 = vld [vmem:[%s289_s0 + $0x28] sm:$0xf] }
   0xa   :  { %v178_v14 = vld [vmem:[%s289_s0 + $0x24] sm:$0xf]  ;;  %v179_v15 = vld [vmem:[%s289_s0 + $0x20] sm:$0xf]  ;;  %33 = vst [vmem:[#allocation0 + $0x50] sm:$0xf] %v177_v13 }
   0xb   :  { %38 = vst [vmem:[#allocation0 + $0x48] sm:$0xf] %v178_v14  ;;  %43 = vst [vmem:[#allocation0 + $0x40] sm:$0xf] %v179_v15  ;;  %s194_s0 = smov 32   ;;  %vm145_vm4 = vcmask 261248  }
   0xc   :  { %v119_v16 = vld [vmem:[#allocation0 + $0x2] ss:$8 sm:$0xf0]   ;;  %v98_v17 = vld [vmem:[#allocation0 + $0x3] ss:$8 sm:$0xf0]  }
   0xd   :  { %v117_v18 = vld [vmem:[#allocation0 + $0x2] ss:$8 sm:$0xf]   ;;  %v96_v19 = vld [vmem:[#allocation0 + $0x3] ss:$8 sm:$0xf]  }
   0xe   :  { %v121_v20 = vsel %vm82_vm0, %v119_v16, %v117_v18  ;;  %v100_v21 = vsel %vm82_vm0, %v98_v17, %v96_v19  ;;  %v138_v24 = vld [vmem:[#allocation0 + $0x1] ss:$8 sm:$0xf]   ;;  %v80_v32 = vld [vmem:[#allocation0] ss:$8 sm:$0xf]  }
   0xf   :  { %122 = vrot.lane.b32.xlu1 %v121_v20, %s194_s0  ;;  %101 = vrot.lane.b32.xlu0 %v100_v21, %s195_s9  ;;  %v140_v25 = vld [vmem:[#allocation0 + $0x1] ss:$8 sm:$0xf0]   ;;  %v81_v33 = vld [vmem:[#allocation0] ss:$8 sm:$0xf0]  }
  0x10   :  { %v129_v22 = vld [vmem:[#allocation0 + $0x42] ss:$8 sm:$0xf0]   ;;  %v108_v23 = vld [vmem:[#allocation0 + $0x43] ss:$8 sm:$0xf0]   ;;  %v83_v34 = vsel %vm82_vm0, %v81_v33, %v80_v32  ;;  %v142_v38 = vsel %vm82_vm0, %v140_v25, %v138_v24 }
  0x11   :  { %v150_v31 = vld [vmem:[#allocation0 + $0x41] ss:$8 sm:$0xf0]   ;;  %v89_v36 = vld [vmem:[#allocation0 + $0x40] ss:$8 sm:$0xf0]  }
  0x12   :  { %v127_v26 = vld [vmem:[#allocation0 + $0x42] ss:$8 sm:$0xf]   ;;  %v106_v27 = vld [vmem:[#allocation0 + $0x43] ss:$8 sm:$0xf]  }
  0x13   :  { %v131_v28 = vsel %vm82_vm0, %v129_v22, %v127_v26  ;;  %v110_v29 = vsel %vm82_vm0, %v108_v23, %v106_v27  ;;  %v148_v30 = vld [vmem:[#allocation0 + $0x41] ss:$8 sm:$0xf]   ;;  %v87_v35 = vld [vmem:[#allocation0 + $0x40] ss:$8 sm:$0xf]  }
  0x14   :  { %132 = vrot.lane.b32.xlu1 %v131_v28, %s194_s0  ;;  %111 = vrot.lane.b32.xlu0 %v110_v29, %s195_s9  ;;  %v152_v37 = vsel %vm82_vm0, %v150_v31, %v148_v30  ;;  %85 = vst.msk [vmem:[%s290_s1] sm:$0xff] %vm84_vm1, %v83_v34   ;;  %v91_v39 = vsel %vm82_vm0, %v89_v36, %v87_v35 }
  0x15   :  { %187 = vst.msk [vmem:[%s290_s1 + $0x8] sm:$0xff] %vm84_vm1, %v91_v39  }
  0x18   :  { %153 = vrot.lane.b32.xlu1 %v152_v37, %s196_s14  ;;  %143 = vrot.lane.b32.xlu0 %v142_v38, %s196_s14 }
  0x81   :  { %v123_v40 = vpop.permute.xlu1 %122   ;;  %v102_v41 = vpop.permute.xlu0 %101  }
  0x82   :  { %104 = vst.msk [vmem:[%s290_s1] sm:$0xff] %vm103_vm2, %v102_v41  }
  0x83   :  { %125 = vst.msk [vmem:[%s290_s1] sm:$0xff] %vm124_vm3, %v123_v40  }
  0x86   :  { %v133_v42 = vpop.permute.xlu1 %132   ;;  %v112_v43 = vpop.permute.xlu0 %111  }
  0x87   :  { %188 = vst.msk [vmem:[%s290_s1 + $0x8] sm:$0xff] %vm103_vm2, %v112_v43  }
  0x88   :  { %189 = vst.msk [vmem:[%s290_s1 + $0x8] sm:$0xff] %vm124_vm3, %v133_v42  }
  0x8a   :  { %v154_v44 = vpop.permute.xlu1 %153   ;;  %v144_v45 = vpop.permute.xlu0 %143  }
  0x8b   :  { %190 = vst.msk [vmem:[%s290_s1 + $0x8] sm:$0xff] %vm145_vm4, %v154_v44   ;;  %146 = vst.msk [vmem:[%s290_s1] sm:$0xff] %vm145_vm4, %v144_v45  }

// kernel: paligemma_forward.3
= control target key start
LH: loop header
LB: loop body
LE: loop exit
PB: predicated region body
PF: predicated region fallthrough
CT: control target
= control target key end

     0   :  { %14 = vsyncpa [#allocation3], 0  ;;  %s3108_s0 = inlined_call_operand.vmem [shape: f32[2,8,32], index: 0, kind: input, shape index: {}]   ;;  %s3109_s1 = inlined_call_operand.vmem [shape: f32[2,8,64], index: 1, kind: input, shape index: {}]   ;;  %s3110_s2 = inlined_call_operand.vmem [shape: f32[2,8,64], index: 2, kind: input, shape index: {}]   ;;  %s3111_s3 = inlined_call_operand.vmem [shape: bf16[2,32,224], index: 3, kind: input, shape index: {}]   ;;  %s3112_s4 = inlined_call_operand.vmem [shape: bf16[2,64,32], index: 4, kind: input, shape index: {}]   ;;  %s3113_s5 = inlined_call_operand.vmem [shape: f32[5,32], index: 5, kind: input, shape index: {}]   ;;  %s3114_s6 = inlined_call_operand.vmem [shape: bf16[2,32,128], index: 6, kind: input, shape index: {}]   ;;  %s3115_s7 = inlined_call_operand.vmem [shape: bf16[2,64,32], index: 7, kind: input, shape index: {}]   ;;  %s3116_s8 = inlined_call_operand.vmem [shape: bf16[32,128], index: 8, kind: input, shape index: {}]   ;;  %s3117_s9 = inlined_call_operand.hbm [shape: f32[2,8,128], index: 9, kind: output, shape index: {}]  }
   0x1   :  { %16 = vsyncpa [#allocation3 + $0x1], 0  ;;  %s2685_s30 = smov 0   ;;  %s2687_s10 = smov 0  }
   0x2   :  { %s2689_s11 = smov 0   ;;  %s2691_s12 = smov 0  }
   0x3 LB: > { %s2706_s13 = sadd.s32 4294967295, %s2622_s12   ;;  %s2106_s14 = sadd.s32 4294967294, %s2622_s12   ;;  %s2622_s12 = sphi %s2691_s12, %s3131_s12   ;;  %s2618_s11 = sphi %s2689_s11, %s3130_s11   ;;  %s2614_s10 = sphi %s2687_s10, %s3129_s10   ;;  %s2610_s30 = sphi %s2685_s30, %s3128_s30  }
   0x4   : > { %s2710_s15 = sadd.s32 1, %s2622_s12   ;;  %s233_s16 = sadd.s32 1, %s2618_s11 }
   0x5   : > { %s230_s17 = ssub.s32 %s2622_s12, %s2710_s15  ;;  %p243_p0 = scmp.ne.s32.totalorder %s2618_s11, %s2614_s10 }
   0x6   : > { %p231_p1 = scmp.eq.s32.totalorder %s230_s17, 0  ;;  %p244_p2 = scmp.eq.s32.totalorder %s2706_s13, 1 }
   0x7   : > { %p249_p3 = scmp.ne.s32.totalorder %s2614_s10, %s2610_s30  ;;  %p250_p4 = scmp.eq.s32.totalorder %s2106_s14, 1 }
   0x8   : > { %s2721_s18 = scalar_select %p231_p1, %s2618_s11, %s233_s16  }
   0x9   : > { %p2723_p5 = por %p244_p2, %p243_p0  ;;  %p2727_p6 = por %p250_p4, %p249_p3 }
   0xa   : > { %p2109_p7 = scmp.ge.s32.totalorder %s2622_s12, 1  ;;  %p307_p8 = scmp.lt.s32.totalorder %s2622_s12, 3 }
   0xc   : > { %p308_p9 = pnand %p2109_p7, %p307_p8 }
   0xd   : > { %p350_p10 = scmp.lt.s32.totalorder (!%p308_p9), %s2706_s13, 1  ;;  %vm369_vm0 = vcmask (!%p308_p9), 261120   ;;  %v2480_v4 = vld [vmem:[%s3111_s3 + $0x4] ss:$8 sps:$4 sm:$0xff] (!%p308_p9)   ;;  %v2482_v5 = vld [vmem:[%s3111_s3] ss:$8 sps:$4 sm:$0xff] (!%p308_p9)  }
   0xe   : > { %311 = sbr.rel (%p308_p9) target bundleno = 5073 (0x13d1), region = 56  ;;  %v2483_v6 = vld [vmem:[%s3111_s3 + $0x14] ss:$8 sps:$4 sm:$0xff] (!%p308_p9)   ;;  %411 = vmatprep.subr.bf16.mxu0 (!%p308_p9), %v2480_v4  ;;  %v2624_v7 = vmov (!%p308_p9), 0   ;;  %v2485_v8 = vld [vmem:[%s3111_s3 + $0x10] ss:$8 sps:$4 sm:$0xff] (!%p308_p9)  }
   0xf   : > { %443 = vmatprep.mubr.bf16.mxu0 (!%p308_p9), %v2624_v7  ;;  %412 = vmatpush1.bf16.msra.mxu0 (!%p308_p9), %v2482_v5  ;;  %s2625_s29 = smov (!%p308_p9), 64   ;;  %v2114_v15 = vld [vmem:[%s3113_s5] ss:$0 sm:$0xff] (!%p308_p9)  ;;  %v2626_v19 = vmov (!%p308_p9), 0.0   ;;  %vm2627_vm1 = vmmov (!%p308_p9), 0   ;;  %s2629_s17 = smov (!%p308_p9), 48  }
  0x10   : > { %413 = vmatprep.subr.bf16.mxu0 (!%p308_p9), %v2483_v6  ;;  %2263 = vmatprep.subr.bf16.mxu1 (!%p308_p9), %v2626_v19  ;;  %s2631_s23 = smov (!%p308_p9), 80   ;;  %vm471_vm2 = vcmask (!%p308_p9), 130048   ;;  %vm519_vm3 = vcmask (!%p308_p9), 64512   ;;  %s3121_s24 = smov (!%p308_p9), 32   ;;  %vm539_vm4 = vcmask (!%p308_p9), 1043456   ;;  %vm911_vm5 = vcmask (!%p308_p9), 392192  }
  0x11   : > { %2265 = vmatprep.mubr.msk.bf16.mxu1 (!%p308_p9), %vm2627_vm1, %v2626_v19  ;;  %vm946_vm6 = vcmask (!%p308_p9), 523264  }
  0x13   : > { %414 = vmatpush1.bf16.msra.mxu0 (!%p308_p9), %v2485_v8 }
  0x14   : > { %2269 = vmatprep.subr.bf16.mxu0 (!%p308_p9), %v2626_v19 }
  0x15   : > { %s351_s21 = scalar_select %p350_p10, %s2706_s13, 1 }
  0x17   : > { %s2111_s22 = sshll.u32 %s351_s21, 3  ;;  %s3118_s21 = smov 96  }
  0x18   : > { %s353_s25 = scalar_lea.vmem %s3108_s0, %s2111_s22  ;;  %s361_s28 = scalar_lea.vmem %s3110_s2, %s2111_s22 }
  0x19   : > { %v363_v0 = vld [vmem:[%s353_s25] sm:$0xff]  ;;  %s357_s25 = scalar_lea.vmem %s3109_s1, %s2111_s22  ;;  %s2628_s22 = smov 112  }
  0x1a   : > { %v2738_v1 = vmul.f32 5.656854, %v363_v0  ;;  %v2759_v9 = vld [vmem:[%s357_s25] sm:$0xff]  ;;  %s3119_s25 = smov 16  }
  0x1b   : > { %v2766_v10 = vld [vmem:[%s361_s28] sm:$0xff] }
  0x1c   : > { %v368_v2 = vmul.f32 %v2738_v1, %v2738_v1  ;;  %461 = vrot.lane.b32.xlu1 %v2766_v10, %s2625_s29 }
  0x1e   : > { %v370_v3 = vsel %vm369_vm0, %v368_v2, 0.0 }
  0x1f   : > { %371 = vadd.xlane.f32.xlu0 %v370_v3 }
  0x35   : > { %456 = vrot.lane.b32.xlu0 %v2759_v9, %s2625_s29 }
  0x8e   : > { %v2779_v21 = vpop.permute.xlu1 %461 }
  0xac   : > { %v372_v11 = vpop.xlane.xlu0 %371 }
  0xad   : > { %v374_v12 = vmul.f32 0.03125, %v372_v11 }
  0xaf   : > { %v375_v13 = vadd.f32 1e-06, %v374_v12 }
  0xb0   : > { %v2777_v20 = vpop.permute.xlu0 %456 }
  0xb1   : > { %2514 = vrsqrt.f32 %v375_v13 }
  0xbb   : > { %v2515_v14 = vpop.eup %2514 }
  0xbc   : > { %v377_v16 = vmul.f32 %v2515_v14, %v2738_v1 }
  0xbe   : > { %v382_v17 = vmul.f32 %v2114_v15, %v377_v16 }
  0xc0   : > { %v383_v18 = vpack.c.bf16 %v382_v17, %v382_v17 }
  0xc2   : > { %2119 = vmatmul.mubr.msk.bf16.vlgmr.msra.gmra.mrb[0].mxu0 %vm369_vm0, %v383_v18 }
  0xc3   : > { %2271 = vmatprep.mubr.msk.bf16.mxu0 %vm2627_vm1, %v2626_v19 }
 0x195   : > { %v2785_v22 = vpop.f32.mrb[0].mxu0 }
 0x196   : > { %v452_v23 = vmul.f32 %v2785_v22, %v2759_v9  ;;  %v459_v24 = vmul.f32 %v2777_v20, %v2785_v22  ;;  %v447_v25 = vpop.f32.mrb[1].mxu0 }
 0x197   : > { %v453_v26 = vmul.f32 %v447_v25, %v2766_v10  ;;  %v464_v27 = vmul.f32 %v2779_v21, %v447_v25  ;;  %v449_v28 = vpop.f32.mrb[2].mxu0 }
 0x198   : > { %v450_v29 = vpop.f32.mrb[3].mxu0 }
 0x199   : > { %v454_v30 = vadd.f32 %v453_v26, %v452_v23  ;;  %v465_v31 = vadd.f32 %v464_v27, %v459_v24  ;;  %v532_v29 = vpack.c.bf16 %v2785_v22, %v2785_v22 }
 0x19b   : > { %v467_v32 = vpack.c.bf16 %v465_v31, %v465_v31  ;;  %v466_v33 = vpack.c.bf16 %v454_v30, %v454_v30 }
 0x19d   : > { %469 = vrot.lane.b32.xlu1 %v467_v32, %s2625_s29 }
 0x1a1   : > { %584 = vrot.lane.b32.xlu1 %v466_v33, %s2628_s22 }
 0x1a5   : > { %687 = vrot.lane.b32.xlu1 %v467_v32, %s2629_s17 }
 0x1a9   : > { %685 = vrot.lane.b32.xlu1 %v466_v33, %s3118_s21 }
 0x1ad   : > { %796 = vrot.lane.b32.xlu1 %v466_v33, %s2631_s23 }
 0x20f   : > { %v470_v34 = vpop.permute.xlu1 %469 }
 0x210   : > { %v476_v35 = vsel %vm471_vm2, %v470_v34, 0 }
 0x211   : > { %2264 = vmatpush3.bf16.xpose.msra.mxu1 %v476_v35 }
 0x212   : > { %2275 = vmatprep.subr.bf16.mxu1 %v2626_v19 }
 0x213   : > { %v585_v36 = vpop.permute.xlu1 %584 }
 0x217   : > { %v688_v37 = vpop.permute.xlu1 %687 }
 0x218   : > { %2266 = vmatmul.mubr.msk.bf16.vlgmr.msra.gmra.mrb[0].mxu1 %vm471_vm2, %v466_v33  ;;  %v693_v38 = vsel %vm471_vm2, %v688_v37, 0 }
 0x219   : > { %2276 = vmatpush3.bf16.xpose.msra.mxu1 %v476_v35  ;;  %2277 = vmatprep.mubr.msk.bf16.mxu1 %vm2627_vm1, %v2626_v19 }
 0x21a   : > { %2287 = vmatprep.subr.bf16.mxu1 %v2626_v19 }
 0x21b   : > { %v686_v39 = vpop.permute.xlu1 %685 }
 0x21f   : > { %v797_v40 = vpop.permute.xlu1 %796 }
 0x220   : > { %2278 = vmatmul.mubr.msk.bf16.vlgmr.msra.gmra.mrb[4].mxu1 %vm471_vm2, %v585_v36 }
 0x221   : > { %2288 = vmatpush3.bf16.xpose.msra.mxu1 %v693_v38  ;;  %2289 = vmatprep.mubr.msk.bf16.mxu1 %vm2627_vm1, %v2626_v19 }
 0x222   : > { %2299 = vmatprep.subr.bf16.mxu1 %v2626_v19 }
 0x228   : > { %2290 = vmatmul.mubr.msk.bf16.vlgmr.msra.gmra.mrb[8].mxu1 %vm471_vm2, %v686_v39 }
 0x229   : > { %2300 = vmatpush3.bf16.xpose.msra.mxu1 %v693_v38  ;;  %2301 = vmatprep.mubr.msk.bf16.mxu1 %vm2627_vm1, %v2626_v19 }
 0x22a   : > { %2311 = vmatprep.subr.bf16.mxu1 %v2626_v19 }
 0x230   : > { %2302 = vmatmul.mubr.msk.bf16.vlgmr.msra.gmra.mrb[12].mxu1 %vm471_vm2, %v797_v40 }
 0x231   : > { %2319 = vmatprep.mubr.msk.bf16.mxu1 %vm2627_vm1, %v2626_v19 }
 0x2eb   : > { %v512_v41 = vpop.f32.mrb[0].mxu1 }
 0x2ec   : > { %v518_v42 = vmul.f32 0.25, %v512_v41  ;;  %v2267_v43 = vpop.f32.mrb[1].mxu1 }
 0x2ed   : > { %v515_v44 = vpop.f32.mrb[2].mxu1 }
 0x2ee   : > { %v2268_v45 = vpop.f32.mrb[3].mxu1  ;;  %v520_v46 = vsel %vm519_vm3, %v518_v42, -inf }
 0x2ef   : > { %521 = vmax.xlane.f32.xlu1 %v520_v46 }
 0x2f3   : > { %v623_v47 = vpop.f32.mrb[4].mxu1 }
 0x2f4   : > { %v629_v48 = vmul.f32 0.25, %v623_v47  ;;  %v2279_v49 = vpop.f32.mrb[5].mxu1 }
 0x2f5   : > { %v626_v50 = vpop.f32.mrb[6].mxu1  ;;  %v2486_v49 = vld [vmem:[%s3112_s4] sm:$0xff]  }
 0x2f6   : > { %v2280_v51 = vpop.f32.mrb[7].mxu1  ;;  %v630_v52 = vsel %vm519_vm3, %v629_v48, -inf  ;;  %2312 = vmatpush3.bf16.msra.mxu1 %v2486_v49 }
 0x2f7   : > { %631 = vmax.xlane.f32.xlu0 %v630_v52  ;;  %2313 = vmatprep.subr.bf16.mxu1 %v2626_v19 }
 0x2fb   : > { %v729_v53 = vpop.f32.mrb[8].mxu1 }
 0x2fc   : > { %v735_v54 = vmul.f32 0.25, %v729_v53  ;;  %v2291_v55 = vpop.f32.mrb[9].mxu1 }
 0x2fd   : > { %v732_v56 = vpop.f32.mrb[10].mxu1  ;;  %v2488_v55 = vld [vmem:[%s3112_s4 + $0x10] sm:$0xff]  }
 0x2fe   : > { %v2292_v57 = vpop.f32.mrb[11].mxu1  ;;  %v736_v58 = vsel %vm519_vm3, %v735_v54, -inf }
 0x2ff   : > { %737 = vmax.xlane.f32.xlu0 %v736_v58 }
 0x303   : > { %v835_v59 = vpop.f32.mrb[12].mxu1 }
 0x304   : > { %v841_v60 = vmul.f32 0.25, %v835_v59  ;;  %v2303_v61 = vpop.f32.mrb[13].mxu1 }
 0x305   : > { %v838_v62 = vpop.f32.mrb[14].mxu1 }
 0x306   : > { %v2304_v63 = vpop.f32.mrb[15].mxu1  ;;  %v842_v0 = vsel %vm519_vm3, %v841_v60, -inf }
 0x307   : > { %843 = vmax.xlane.f32.xlu1 %v842_v0 }
 0x37c   : > { %v522_v2 = vpop.xlane.xlu1 %521 }
 0x37d   : > { %v523_v3 = vsub.f32 %v518_v42, %v522_v2 }
 0x37f   : > { %v524_v4 = vmul.f32 1.442695, %v523_v3 }
 0x381   : > { %2516 = vpow2.f32 %v524_v4 }
 0x384   : > { %v632_v5 = vpop.xlane.xlu0 %631 }
 0x385   : > { %v633_v6 = vsub.f32 %v629_v48, %v632_v5 }
 0x387   : > { %v634_v8 = vmul.f32 1.442695, %v633_v6 }
 0x389   : > { %2518 = vpow2.f32 %v634_v8 }
 0x38b   : > { %v2517_v11 = vpop.eup %2516 }
 0x38c   : > { %v738_v12 = vpop.xlane.xlu0 %737  ;;  %v526_v13 = vsel %vm519_vm3, %v2517_v11, 0.0 }
 0x38d   : > { %v739_v14 = vsub.f32 %v735_v54, %v738_v12  ;;  %527 = vadd.xlane.f32.xlu0 %v526_v13  ;;  %v2487_v54 = vld [vmem:[%s3112_s4 + $0x8] sm:$0xff]  }
 0x38e   : > { %2314 = vmatpush3.bf16.msra.mxu1 %v2487_v54 }
 0x38f   : > { %v740_v15 = vmul.f32 1.442695, %v739_v14  ;;  %2315 = vmatprep.subr.bf16.mxu1 %v2626_v19 }
 0x391   : > { %2520 = vpow2.f32 %v740_v15 }
 0x392   : > { %2316 = vmatpush3.bf16.msra.mxu1 %v2488_v55 }
 0x393   : > { %v2519_v16 = vpop.eup %2518  ;;  %2317 = vmatprep.subr.bf16.mxu1 %v2626_v19 }
 0x394   : > { %v844_v17 = vpop.xlane.xlu1 %843  ;;  %v636_v18 = vsel %vm519_vm3, %v2519_v16, 0.0 }
 0x395   : > { %v845_v23 = vsub.f32 %v841_v60, %v844_v17  ;;  %637 = vadd.xlane.f32.xlu1 %v636_v18  ;;  %v2489_v60 = vld [vmem:[%s3112_s4 + $0x18] sm:$0xff]  }
 0x396   : > { %2318 = vmatpush3.bf16.msra.mxu1 %v2489_v60 }
 0x397   : > { %v846_v24 = vmul.f32 1.442695, %v845_v23 }
 0x399   : > { %2522 = vpow2.f32 %v846_v24 }
 0x39b   : > { %v2521_v25 = vpop.eup %2520 }
 0x39c   : > { %v742_v26 = vsel %vm519_vm3, %v2521_v25, 0.0 }
 0x39d   : > { %743 = vadd.xlane.f32.xlu0 %v742_v26 }
 0x3a3   : > { %v2523_v27 = vpop.eup %2522 }
 0x3a4   : > { %v848_v28 = vsel %vm519_vm3, %v2523_v27, 0.0 }
 0x3a5   : > { %849 = vadd.xlane.f32.xlu1 %v848_v28  ;;  %v2491_v28 = vld [vmem:[%s3114_s6 + $0x8] sm:$0xff]  }
 0x3b3   : > { %534 = vrot.lane.b32.xlu0 %v532_v29, %s3121_s24 }
 0x3b6   : > { %748 = vrot.lane.b32.xlu1 %v532_v29, %s3119_s25 }
 0x41a   : > { %v528_v30 = vpop.xlane.xlu0 %527 }
 0x41b   : > { %2524 = vrcp.f32 %v528_v30 }
 0x422   : > { %v638_v31 = vpop.xlane.xlu1 %637 }
 0x423   : > { %2526 = vrcp.f32 %v638_v31  ;;  %v2133_v31 = vld [vmem:[%s3113_s5 + $0x1] ss:$0 sm:$0xff] }
 0x425   : > { %v2525_v32 = vpop.eup %2524 }
 0x426   : > { %v530_v34 = vmul.f32 %v2525_v32, %v2517_v11 }
 0x428   : > { %v531_v22 = vpack.c.bf16 %v530_v34, %v530_v34 }
 0x42a   : > { %v744_v33 = vpop.xlane.xlu0 %743 }
 0x42b   : > { %2528 = vrcp.f32 %v744_v33 }
 0x42d   : > { %v2527_v37 = vpop.eup %2526 }
 0x42e   : > { %v535_v35 = vpop.permute.xlu0 %534  ;;  %v640_v39 = vmul.f32 %v2527_v37, %v2519_v16  ;;  %v2495_v37 = vld [vmem:[%s3115_s7 + $0x18] sm:$0xff]  }
 0x42f   : > { %v541_v36 = vsel %vm539_vm4, %v535_v35, 0  ;;  %v2492_v35 = vld [vmem:[%s3115_s7] sm:$0xff]  }
 0x430   : > { %2270 = vmatpush3.bf16.msra.mxu0 %v541_v36  ;;  %v641_v41 = vpack.c.bf16 %v640_v39, %v640_v39 }
 0x431   : > { %2281 = vmatprep.subr.bf16.mxu0 %v2626_v19 }
 0x432   : > { %v850_v38 = vpop.xlane.xlu1 %849 }
 0x433   : > { %2272 = vmatmul.mubr.msk.bf16.vlgmr.msra.gmra.mrb[4].mxu0 %vm519_vm3, %v531_v22  ;;  %2530 = vrcp.f32 %v850_v38  ;;  %v2494_v22 = vld [vmem:[%s3115_s7 + $0x10] sm:$0xff]  }
 0x434   : > { %2282 = vmatpush3.bf16.msra.mxu0 %v541_v36  ;;  %2283 = vmatprep.mubr.msk.bf16.mxu0 %vm2627_vm1, %v2626_v19  ;;  %v2493_v36 = vld [vmem:[%s3115_s7 + $0x8] sm:$0xff]  }
 0x435   : > { %2293 = vmatprep.subr.bf16.mxu0 %v2626_v19  ;;  %v2529_v42 = vpop.eup %2528 }
 0x436   : > { %v749_v40 = vpop.permute.xlu1 %748  ;;  %v746_v44 = vmul.f32 %v2529_v42, %v2521_v25 }
 0x437   : > { %v754_v43 = vsel %vm539_vm4, %v749_v40, 0 }
 0x438   : > { %v747_v45 = vpack.c.bf16 %v746_v44, %v746_v44 }
 0x43b   : > { %2284 = vmatmul.mubr.msk.bf16.vlgmr.msra.gmra.mrb[8].mxu0 %vm519_vm3, %v641_v41 }
 0x43c   : > { %2294 = vmatpush3.bf16.msra.mxu0 %v754_v43  ;;  %2295 = vmatprep.mubr.msk.bf16.mxu0 %vm2627_vm1, %v2626_v19 }
 0x43d   : > { %2305 = vmatprep.subr.bf16.mxu0 %v2626_v19  ;;  %v2531_v46 = vpop.eup %2530 }
 0x43e   : > { %v852_v47 = vmul.f32 %v2531_v46, %v2523_v27  ;;  %v2490_v27 = vld [vmem:[%s3114_s6] sm:$0xff]  }
 0x440   : > { %v853_v48 = vpack.c.bf16 %v852_v47, %v852_v47 }
 0x443   : > { %2296 = vmatmul.mubr.msk.bf16.vlgmr.msra.gmra.mrb[12].mxu0 %vm519_vm3, %v747_v45 }
 0x444   : > { %2306 = vmatpush3.bf16.msra.mxu0 %v754_v43  ;;  %2307 = vmatprep.mubr.msk.bf16.mxu0 %vm2627_vm1, %v2626_v19 }
 0x445   : > { %2323 = vmatprep.subr.bf16.mxu0 %v2626_v19 }
 0x44b   : > { %2308 = vmatmul.mubr.msk.bf16.vlgmr.msra.gmra.mrb[16].mxu0 %vm519_vm3, %v853_v48 }
 0x44c   : > { %2327 = vmatprep.mubr.msk.bf16.mxu0 %vm2627_vm1, %v2626_v19  ;;  %2324 = vmatpush3.bf16.msra.mxu0 %v2490_v27 }
 0x44d   : > { %2325 = vmatprep.subr.bf16.mxu0 %v2626_v19 }
 0x450   : > { %2326 = vmatpush3.bf16.msra.mxu0 %v2491_v28 }
 0x451   : > { %2331 = vmatprep.subr.bf16.mxu0 %v2626_v19 }
 0x506   : > { %v577_v50 = vpop.f32.mrb[4].mxu0 }
 0x507   : > { %v2273_v51 = vpop.f32.mrb[5].mxu0 }
 0x508   : > { %v580_v52 = vpop.f32.mrb[6].mxu0 }
 0x509   : > { %v2274_v53 = vpop.f32.mrb[7].mxu0 }
 0x50e   : > { %v679_v56 = vpop.f32.mrb[8].mxu0 }
 0x50f   : > { %898 = vrot.lane.b32.xlu1 %v679_v56, %s3119_s25  ;;  %v2285_v57 = vpop.f32.mrb[9].mxu0  ;;  %s347_s25 = sand.u32 1, %s2614_s10  }
 0x510   : > { %v682_v58 = vpop.f32.mrb[10].mxu0  ;;  %s2110_s28 = sshll.u32 %s347_s25, 3  ;;  %s2010_s16 = scalar_lea.sflag [#allocation3], %s347_s25 }
 0x511   : > { %v2286_v59 = vpop.f32.mrb[11].mxu0 }
 0x516   : > { %v790_v61 = vpop.f32.mrb[12].mxu0 }
 0x517   : > { %902 = vrot.lane.b32.xlu0 %v790_v61, %s3121_s24  ;;  %v2297_v62 = vpop.f32.mrb[13].mxu0  ;;  %v2498_v61 = vld [vmem:[%s3111_s3 + $0x24] ss:$8 sps:$4 sm:$0xff]   ;;  %s3125_s24 = smov 96  }
 0x518   : > { %v793_v63 = vpop.f32.mrb[14].mxu0  ;;  %v2496_v62 = vld [vmem:[%s3111_s3 + $0x20] ss:$8 sps:$4 sm:$0xff]   ;;  %1199 = vmatprep.subr.bf16.mxu1 %v2498_v61 }
 0x519   : > { %v2298_v0 = vpop.f32.mrb[15].mxu0  ;;  %v2499_v63 = vld [vmem:[%s3111_s3 + $0x30] ss:$8 sps:$4 sm:$0xff]  }
 0x51a   : > { %v2501_v0 = vld [vmem:[%s3111_s3 + $0x34] ss:$8 sps:$4 sm:$0xff]  }
 0x51e   : > { %v891_v2 = vpop.f32.mrb[16].mxu0 }
 0x51f   : > { %906 = vrot.lane.b32.xlu1 %v891_v2, %s2629_s17  ;;  %v2309_v3 = vpop.f32.mrb[17].mxu0 }
 0x520   : > { %v894_v4 = vpop.f32.mrb[18].mxu0 }
 0x521   : > { %v2310_v5 = vpop.f32.mrb[19].mxu0 }
 0x581   : > { %v899_v6 = vpop.permute.xlu1 %898 }
 0x582   : > { %v909_v11 = vsel %vm471_vm2, %v577_v50, %v899_v6  ;;  %v2142_v6 = vld [vmem:[%s3113_s5 + $0x2] ss:$0 sm:$0xff] }
 0x589   : > { %v903_v8 = vpop.permute.xlu0 %902 }
 0x58a   : > { %v910_v12 = vsel %vm369_vm0, %v909_v11, %v903_v8 }
 0x591   : > { %v907_v13 = vpop.permute.xlu1 %906 }
 0x592   : > { %v912_v14 = vsel %vm911_vm5, %v910_v12, %v907_v13 }
 0x593   : > { %v913_v15 = vpack.c.bf16 %v912_v14, %v912_v14 }
 0x595   : > { %2320 = vmatmul.mubr.msk.bf16.vlgmr.msra.gmra.mrb[16].mxu1 %vm946_vm6, %v913_v15 }
 0x596   : > { %1231 = vmatprep.mubr.bf16.mxu1 %v2624_v7  ;;  %1200 = vmatpush1.bf16.msra.mxu1 %v2496_v62 }
 0x597   : > { %1201 = vmatprep.subr.bf16.mxu1 %v2501_v0 }
 0x59a   : > { %1202 = vmatpush1.bf16.msra.mxu1 %v2499_v63 }
 0x59b   : > { %2343 = vmatprep.subr.bf16.mxu1 %v2626_v19 }
 0x668   : > { %v984_v16 = vpop.f32.mrb[16].mxu1 }
 0x669   : > { %v990_v17 = vadd.f32 %v984_v16, %v2738_v1  ;;  %v2321_v18 = vpop.f32.mrb[17].mxu1 }
 0x66a   : > { %v987_v23 = vpop.f32.mrb[18].mxu1 }
 0x66b   : > { %v2322_v24 = vpop.f32.mrb[19].mxu1  ;;  %v992_v25 = vmul.f32 %v990_v17, %v990_v17 }
 0x66d   : > { %v993_v26 = vsel %vm369_vm0, %v992_v25, 0.0 }
 0x66e   : > { %994 = vadd.xlane.f32.xlu0 %v993_v26 }
 0x6fb   : > { %v995_v1 = vpop.xlane.xlu0 %994 }
 0x6fc   : > { %v996_v7 = vmul.f32 0.03125, %v995_v1 }
 0x6fe   : > { %v997_v29 = vadd.f32 1e-06, %v996_v7 }
 0x700   : > { %2532 = vrsqrt.f32 %v997_v29 }
 0x70a   : > { %v2533_v30 = vpop.eup %2532 }
 0x70b   : > { %v999_v32 = vmul.f32 %v2533_v30, %v990_v17 }
 0x70d   : > { %v1004_v33 = vmul.f32 %v2133_v31, %v999_v32 }
 0x70f   : > { %v1005_v34 = vpack.c.bf16 %v1004_v33, %v1004_v33 }
 0x711   : > { %2328 = vmatmul.mubr.msk.bf16.vlgmr.msra.gmra.mrb[20].mxu0 %vm369_vm0, %v1005_v34 }
 0x712   : > { %2339 = vmatprep.mubr.msk.bf16.mxu0 %vm2627_vm1, %v2626_v19  ;;  %2332 = vmatpush3.bf16.msra.mxu0 %v2492_v35 }
 0x713   : > { %2333 = vmatprep.subr.bf16.mxu0 %v2626_v19 }
 0x716   : > { %2334 = vmatpush3.bf16.msra.mxu0 %v2493_v36 }
 0x717   : > { %2335 = vmatprep.subr.bf16.mxu0 %v2626_v19 }
 0x71a   : > { %2336 = vmatpush3.bf16.msra.mxu0 %v2494_v22 }
 0x71b   : > { %2337 = vmatprep.subr.bf16.mxu0 %v2626_v19 }
 0x71e   : > { %2338 = vmatpush3.bf16.msra.mxu0 %v2495_v37 }
 0x71f   : > { %2349 = vmatprep.subr.bf16.mxu0 %v2626_v19 }
 0x7e4   : > { %v1059_v38 = vpop.f32.mrb[20].mxu0 }
 0x7e5   : > { %1075 = vrot.lane.b32.xlu1 %v1059_v38, %s2625_s29  ;;  %v2329_v39 = vpop.f32.mrb[21].mxu0  ;;  %v1065_v42 = vmul.f32 %v1059_v38, %v1059_v38 }
 0x7e6   : > { %v1062_v40 = vpop.f32.mrb[22].mxu0 }
 0x7e7   : > { %v2330_v41 = vpop.f32.mrb[23].mxu0  ;;  %v1066_v43 = vmul.f32 %v1065_v42, %v1059_v38 }
 0x7e9   : > { %v1067_v44 = vmul.f32 0.044715, %v1066_v43 }
 0x7eb   : > { %v1068_v45 = vadd.f32 %v1067_v44, %v1059_v38 }
 0x7ed   : > { %v1069_v46 = vmul.f32 0.7978846, %v1068_v45 }
 0x7ef   : > { %2534 = vtanh.f32 %v1069_v46 }
 0x7f9   : > { %v2535_v47 = vpop.eup %2534 }
 0x7fa   : > { %v1071_v48 = vadd.f32 1.0, %v2535_v47 }
 0x7fc   : > { %v1072_v49 = vmul.f32 0.5, %v1071_v48 }
 0x7fe   : > { %v1073_v50 = vmul.f32 %v1072_v49, %v1059_v38 }
 0x857   : > { %v1076_v51 = vpop.permute.xlu1 %1075 }
 0x858   : > { %v1078_v52 = vmul.f32 %v1076_v51, %v1073_v50 }
 0x85a   : > { %v1079_v53 = vpack.c.bf16 %v1078_v52, %v1078_v52 }
 0x85c   : > { %2340 = vmatmul.mubr.msk.bf16.vlgmr.msra.gmra.mrb[24].mxu0 %vm946_vm6, %v1079_v53 }
 0x85d   : > { %2351 = vmatprep.mubr.msk.bf16.mxu0 %vm2627_vm1, %v2626_v19 }
 0x92f   : > { %v1149_v54 = vpop.f32.mrb[24].mxu0 }
 0x930   : > { %v2905_v55 = vadd.f32 %v1149_v54, %v990_v17  ;;  %v2341_v56 = vpop.f32.mrb[25].mxu0 }
 0x931   : > { %v1152_v57 = vpop.f32.mrb[26].mxu0 }
 0x932   : > { %v2342_v58 = vpop.f32.mrb[27].mxu0  ;;  %v1157_v59 = vmul.f32 %v2905_v55, %v2905_v55 }
 0x934   : > { %v1158_v60 = vsel %vm369_vm0, %v1157_v59, 0.0 }
 0x935   : > { %1159 = vadd.xlane.f32.xlu1 %v1158_v60 }
 0x9c2   : > { %v1160_v2 = vpop.xlane.xlu1 %1159 }
 0x9c3   : > { %v1161_v3 = vmul.f32 0.03125, %v1160_v2 }
 0x9c5   : > { %v1162_v4 = vadd.f32 1e-06, %v1161_v3 }
 0x9c7   : > { %2536 = vrsqrt.f32 %v1162_v4 }
 0x9d1   : > { %v2537_v5 = vpop.eup %2536 }
 0x9d2   : > { %v1164_v8 = vmul.f32 %v2537_v5, %v2905_v55 }
 0x9d4   : > { %v1169_v11 = vmul.f32 %v2142_v6, %v1164_v8 }
 0x9d6   : > { %v1170_v12 = vpack.c.bf16 %v1169_v11, %v1169_v11 }
 0x9d8   : > { %2151 = vmatmul.mubr.msk.bf16.vlgmr.msra.gmra.mrb[20].mxu1 %vm369_vm0, %v1170_v12 }
 0x9d9   : > { %2345 = vmatprep.mubr.msk.bf16.mxu1 %vm2627_vm1, %v2626_v19 }
 0xaab   : > { %v2930_v13 = vpop.f32.mrb[20].mxu1 }
 0xaac   : > { %v1240_v14 = vmul.f32 %v2930_v13, %v2759_v9  ;;  %v1243_v15 = vmul.f32 %v2930_v13, %v2777_v20  ;;  %v1235_v16 = vpop.f32.mrb[21].mxu1 }
 0xaad   : > { %v1241_v17 = vmul.f32 %v1235_v16, %v2766_v10  ;;  %v1244_v18 = vmul.f32 %v1235_v16, %v2779_v21  ;;  %v1237_v23 = vpop.f32.mrb[22].mxu1 }
 0xaae   : > { %v1238_v24 = vpop.f32.mrb[23].mxu1 }
 0xaaf   : > { %v1242_v25 = vadd.f32 %v1241_v17, %v1240_v14  ;;  %v1245_v26 = vadd.f32 %v1244_v18, %v1243_v15  ;;  %v1310_v15 = vpack.c.bf16 %v2930_v13, %v2930_v13 }
 0xab1   : > { %v1246_v27 = vpack.c.bf16 %v1242_v25, %v1242_v25  ;;  %v1247_v28 = vpack.c.bf16 %v1245_v26, %v1245_v26 }
 0xab3   : > { %1249 = vrot.lane.b32.xlu0 %v1247_v28, %s2625_s29  ;;  %1361 = vrot.lane.b32.xlu1 %v1246_v27, %s2628_s22  ;;  %s3126_s22 = smov 32  }
 0xab7   : > { %1464 = vrot.lane.b32.xlu0 %v1247_v28, %s2629_s17  ;;  %1573 = vrot.lane.b32.xlu1 %v1246_v27, %s2631_s23  ;;  %s3127_s23 = smov 16  }
 0xabb   : > { %1462 = vrot.lane.b32.xlu0 %v1246_v27, %s3125_s24  ;;  %s349_s24 = scalar_lea.vmem [#allocation2], %s2110_s28 }
 0xb25   : > { %v1250_v9 = vpop.permute.xlu0 %1249  ;;  %v1362_v21 = vpop.permute.xlu1 %1361 }
 0xb26   : > { %v1255_v10 = vsel %vm471_vm2, %v1250_v9, 0 }
 0xb27   : > { %2344 = vmatpush3.bf16.xpose.msra.mxu1 %v1255_v10 }
 0xb28   : > { %2355 = vmatprep.subr.bf16.mxu1 %v2626_v19 }
 0xb29   : > { %v1465_v20 = vpop.permute.xlu0 %1464  ;;  %v1574_v29 = vpop.permute.xlu1 %1573 }
 0xb2a   : > { %v1470_v1 = vsel %vm471_vm2, %v1465_v20, 0 }
 0xb2d   : > { %v1463_v7 = vpop.permute.xlu0 %1462 }
 0xb2e   : > { %2346 = vmatmul.mubr.msk.bf16.vlgmr.msra.gmra.mrb[24].mxu1 %vm471_vm2, %v1246_v27 }
 0xb2f   : > { %2356 = vmatpush3.bf16.xpose.msra.mxu1 %v1255_v10  ;;  %2357 = vmatprep.mubr.msk.bf16.mxu1 %vm2627_vm1, %v2626_v19 }
 0xb30   : > { %2367 = vmatprep.subr.bf16.mxu1 %v2626_v19 }
 0xb36   : > { %2358 = vmatmul.mubr.msk.bf16.vlgmr.msra.gmra.mrb[28].mxu1 %vm471_vm2, %v1362_v21 }
 0xb37   : > { %2368 = vmatpush3.bf16.xpose.msra.mxu1 %v1470_v1  ;;  %2369 = vmatprep.mubr.msk.bf16.mxu1 %vm2627_vm1, %v2626_v19 }
 0xb38   : > { %2379 = vmatprep.subr.bf16.mxu1 %v2626_v19 }
 0xb3e   : > { %2370 = vmatmul.mubr.msk.bf16.vlgmr.msra.gmra.mrb[32].mxu1 %vm471_vm2, %v1463_v7 }
 0xb3f   : > { %2380 = vmatpush3.bf16.xpose.msra.mxu1 %v1470_v1  ;;  %2381 = vmatprep.mubr.msk.bf16.mxu1 %vm2627_vm1, %v2626_v19 }
 0xb40   : > { %2391 = vmatprep.subr.bf16.mxu1 %v2626_v19 }
 0xb46   : > { %2382 = vmatmul.mubr.msk.bf16.vlgmr.msra.gmra.mrb[36].mxu1 %vm471_vm2, %v1574_v29 }
 0xb47   : > { %2399 = vmatprep.mubr.msk.bf16.mxu1 %vm2627_vm1, %v2626_v19 }
 0xc01   : > { %v1291_v30 = vpop.f32.mrb[24].mxu1 }
 0xc02   : > { %v1297_v31 = vmul.f32 0.25, %v1291_v30  ;;  %v2347_v32 = vpop.f32.mrb[25].mxu1 }
 0xc03   : > { %v1294_v33 = vpop.f32.mrb[26].mxu1 }
 0xc04   : > { %v2348_v34 = vpop.f32.mrb[27].mxu1  ;;  %v1298_v35 = vsel %vm519_vm3, %v1297_v31, -inf  ;;  %v2502_v33 = vld [vmem:[%s3112_s4 + $0x20] sm:$0xff]  }
 0xc05   : > { %1299 = vmax.xlane.f32.xlu0 %v1298_v35  ;;  %2392 = vmatpush3.bf16.msra.mxu1 %v2502_v33 }
 0xc06   : > { %2393 = vmatprep.subr.bf16.mxu1 %v2626_v19 }
 0xc09   : > { %v1400_v36 = vpop.f32.mrb[28].mxu1 }
 0xc0a   : > { %v1406_v22 = vmul.f32 0.25, %v1400_v36  ;;  %v2359_v37 = vpop.f32.mrb[29].mxu1 }
 0xc0b   : > { %v1403_v38 = vpop.f32.mrb[30].mxu1  ;;  %v2503_v37 = vld [vmem:[%s3112_s4 + $0x28] sm:$0xff]  }
 0xc0c   : > { %v2360_v39 = vpop.f32.mrb[31].mxu1  ;;  %v1407_v40 = vsel %vm519_vm3, %v1406_v22, -inf  ;;  %2394 = vmatpush3.bf16.msra.mxu1 %v2503_v37  ;;  %v2504_v38 = vld [vmem:[%s3112_s4 + $0x30] sm:$0xff]  }
 0xc0d   : > { %1408 = vmax.xlane.f32.xlu1 %v1407_v40  ;;  %2395 = vmatprep.subr.bf16.mxu1 %v2626_v19 }
 0xc10   : > { %2396 = vmatpush3.bf16.msra.mxu1 %v2504_v38 }
 0xc11   : > { %v1506_v41 = vpop.f32.mrb[32].mxu1  ;;  %2397 = vmatprep.subr.bf16.mxu1 %v2626_v19 }
 0xc12   : > { %v1512_v42 = vmul.f32 0.25, %v1506_v41  ;;  %v2371_v43 = vpop.f32.mrb[33].mxu1 }
 0xc13   : > { %v1509_v44 = vpop.f32.mrb[34].mxu1  ;;  %v2505_v43 = vld [vmem:[%s3112_s4 + $0x38] sm:$0xff]  }
 0xc14   : > { %v2372_v45 = vpop.f32.mrb[35].mxu1  ;;  %v1513_v46 = vsel %vm519_vm3, %v1512_v42, -inf  ;;  %2398 = vmatpush3.bf16.msra.mxu1 %v2505_v43 }
 0xc15   : > { %1514 = vmax.xlane.f32.xlu0 %v1513_v46  ;;  %2423 = vmatprep.subr.bf16.mxu1 %v2626_v19 }
 0xc19   : > { %v1612_v47 = vpop.f32.mrb[36].mxu1 }
 0xc1a   : > { %v1618_v48 = vmul.f32 0.25, %v1612_v47  ;;  %v2383_v49 = vpop.f32.mrb[37].mxu1 }
 0xc1b   : > { %v1615_v50 = vpop.f32.mrb[38].mxu1 }
 0xc1c   : > { %v2384_v51 = vpop.f32.mrb[39].mxu1  ;;  %v1619_v52 = vsel %vm519_vm3, %v1618_v48, -inf }
 0xc1d   : > { %1620 = vmax.xlane.f32.xlu0 %v1619_v52 }
 0xc92   : > { %v1300_v53 = vpop.xlane.xlu0 %1299 }
 0xc93   : > { %v1301_v54 = vsub.f32 %v1297_v31, %v1300_v53 }
 0xc95   : > { %v1302_v56 = vmul.f32 1.442695, %v1301_v54 }
 0xc97   : > { %2538 = vpow2.f32 %v1302_v56 }
 0xc9a   : > { %v1409_v57 = vpop.xlane.xlu1 %1408 }
 0xc9b   : > { %v1410_v58 = vsub.f32 %v1406_v22, %v1409_v57 }
 0xc9d   : > { %v1411_v59 = vmul.f32 1.442695, %v1410_v58 }
 0xc9f   : > { %2540 = vpow2.f32 %v1411_v59 }
 0xca1   : > { %v2539_v60 = vpop.eup %2538 }
 0xca2   : > { %v1515_v61 = vpop.xlane.xlu0 %1514  ;;  %v1304_v62 = vsel %vm519_vm3, %v2539_v60, 0.0 }
 0xca3   : > { %v1516_v63 = vsub.f32 %v1512_v42, %v1515_v61  ;;  %1305 = vadd.xlane.f32.xlu1 %v1304_v62 }
 0xca5   : > { %v1517_v0 = vmul.f32 1.442695, %v1516_v63 }
 0xca7   : > { %2542 = vpow2.f32 %v1517_v0 }
 0xca9   : > { %v2541_v2 = vpop.eup %2540 }
 0xcaa   : > { %v1621_v3 = vpop.xlane.xlu0 %1620  ;;  %v1413_v4 = vsel %vm519_vm3, %v2541_v2, 0.0 }
 0xcab   : > { %v1622_v5 = vsub.f32 %v1618_v48, %v1621_v3  ;;  %1414 = vadd.xlane.f32.xlu0 %v1413_v4  ;;  %v2506_v4 = vld [vmem:[%s3114_s6 + $0x10] sm:$0xff]  }
 0xcad   : > { %v1623_v6 = vmul.f32 1.442695, %v1622_v5  ;;  %v2507_v5 = vld [vmem:[%s3114_s6 + $0x18] sm:$0xff]  }
 0xcaf   : > { %2544 = vpow2.f32 %v1623_v6 }
 0xcb1   : > { %v2543_v8 = vpop.eup %2542 }
 0xcb2   : > { %v1519_v11 = vsel %vm519_vm3, %v2543_v8, 0.0 }
 0xcb3   : > { %1520 = vadd.xlane.f32.xlu1 %v1519_v11 }
 0xcb9   : > { %v2545_v12 = vpop.eup %2544 }
 0xcba   : > { %v1625_v14 = vsel %vm519_vm3, %v2545_v12, 0.0 }
 0xcbb   : > { %1626 = vadd.xlane.f32.xlu0 %v1625_v14 }
 0xcc4   : > { %1312 = vrot.lane.b32.xlu1 %v1310_v15, %s3126_s22 }
 0xcd1   : > { %1525 = vrot.lane.b32.xlu0 %v1310_v15, %s3127_s23 }
 0xd30   : > { %v1306_v16 = vpop.xlane.xlu1 %1305 }
 0xd31   : > { %2546 = vrcp.f32 %v1306_v16 }
 0xd38   : > { %v1415_v17 = vpop.xlane.xlu0 %1414 }
 0xd39   : > { %2548 = vrcp.f32 %v1415_v17  ;;  %v2508_v17 = vld [vmem:[%s3115_s7 + $0x20] sm:$0xff]  }
 0xd3b   : > { %v2547_v18 = vpop.eup %2546 }
 0xd3c   : > { %v1308_v24 = vmul.f32 %v2547_v18, %v2539_v60  ;;  %v2509_v18 = vld [vmem:[%s3115_s7 + $0x28] sm:$0xff]  }
 0xd3e   : > { %v1309_v27 = vpack.c.bf16 %v1308_v24, %v1308_v24  ;;  %v2511_v24 = vld [vmem:[%s3115_s7 + $0x38] sm:$0xff]  }
 0xd40   : > { %v1521_v23 = vpop.xlane.xlu1 %1520 }
 0xd41   : > { %2550 = vrcp.f32 %v1521_v23  ;;  %v2510_v23 = vld [vmem:[%s3115_s7 + $0x30] sm:$0xff]  }
 0xd43   : > { %v2549_v13 = vpop.eup %2548 }
 0xd44   : > { %v1313_v25 = vpop.permute.xlu1 %1312  ;;  %v1417_v9 = vmul.f32 %v2549_v13, %v2541_v2 }
 0xd45   : > { %v1318_v26 = vsel %vm539_vm4, %v1313_v25, 0 }
 0xd46   : > { %2350 = vmatpush3.bf16.msra.mxu0 %v1318_v26  ;;  %v1418_v20 = vpack.c.bf16 %v1417_v9, %v1417_v9 }
 0xd47   : > { %2361 = vmatprep.subr.bf16.mxu0 %v2626_v19 }
 0xd48   : > { %v1627_v28 = vpop.xlane.xlu0 %1626 }
 0xd49   : > { %2352 = vmatmul.mubr.msk.bf16.vlgmr.msra.gmra.mrb[28].mxu0 %vm519_vm3, %v1309_v27  ;;  %2552 = vrcp.f32 %v1627_v28 }
 0xd4a   : > { %2362 = vmatpush3.bf16.msra.mxu0 %v1318_v26  ;;  %2363 = vmatprep.mubr.msk.bf16.mxu0 %vm2627_vm1, %v2626_v19 }
 0xd4b   : > { %2373 = vmatprep.subr.bf16.mxu0 %v2626_v19  ;;  %v2551_v21 = vpop.eup %2550 }
 0xd4c   : > { %v1526_v10 = vpop.permute.xlu0 %1525  ;;  %v1523_v7 = vmul.f32 %v2551_v21, %v2543_v8 }
 0xd4d   : > { %v1531_v1 = vsel %vm539_vm4, %v1526_v10, 0 }
 0xd4e   : > { %v1524_v29 = vpack.c.bf16 %v1523_v7, %v1523_v7 }
 0xd51   : > { %2364 = vmatmul.mubr.msk.bf16.vlgmr.msra.gmra.mrb[32].mxu0 %vm519_vm3, %v1418_v20 }
 0xd52   : > { %2374 = vmatpush3.bf16.msra.mxu0 %v1531_v1  ;;  %2375 = vmatprep.mubr.msk.bf16.mxu0 %vm2627_vm1, %v2626_v19 }
 0xd53   : > { %2385 = vmatprep.subr.bf16.mxu0 %v2626_v19  ;;  %v2553_v30 = vpop.eup %2552 }
 0xd54   : > { %v1629_v31 = vmul.f32 %v2553_v30, %v2545_v12  ;;  %v2173_v12 = vld [vmem:[%s3113_s5 + $0x3] ss:$0 sm:$0xff] }
 0xd56   : > { %v1630_v32 = vpack.c.bf16 %v1629_v31, %v1629_v31 }
 0xd59   : > { %2376 = vmatmul.mubr.msk.bf16.vlgmr.msra.gmra.mrb[36].mxu0 %vm519_vm3, %v1524_v29 }
 0xd5a   : > { %2386 = vmatpush3.bf16.msra.mxu0 %v1531_v1  ;;  %2387 = vmatprep.mubr.msk.bf16.mxu0 %vm2627_vm1, %v2626_v19 }
 0xd5b   : > { %2403 = vmatprep.subr.bf16.mxu0 %v2626_v19 }
 0xd61   : > { %2388 = vmatmul.mubr.msk.bf16.vlgmr.msra.gmra.mrb[40].mxu0 %vm519_vm3, %v1630_v32 }
 0xd62   : > { %2407 = vmatprep.mubr.msk.bf16.mxu0 %vm2627_vm1, %v2626_v19  ;;  %2404 = vmatpush3.bf16.msra.mxu0 %v2506_v4 }
 0xd63   : > { %2405 = vmatprep.subr.bf16.mxu0 %v2626_v19 }
 0xd66   : > { %2406 = vmatpush3.bf16.msra.mxu0 %v2507_v5 }
 0xd67   : > { %2411 = vmatprep.subr.bf16.mxu0 %v2626_v19 }
 0xe1c   : > { %v1354_v34 = vpop.f32.mrb[28].mxu0 }
 0xe1d   : > { %v2353_v35 = vpop.f32.mrb[29].mxu0 }
 0xe1e   : > { %v1357_v36 = vpop.f32.mrb[30].mxu0 }
 0xe1f   : > { %v2354_v22 = vpop.f32.mrb[31].mxu0 }
 0xe24   : > { %v1456_v39 = vpop.f32.mrb[32].mxu0 }
 0xe25   : > { %1675 = vrot.lane.b32.xlu1 %v1456_v39, %s3127_s23  ;;  %v2365_v40 = vpop.f32.mrb[33].mxu0 }
 0xe26   : > { %v1459_v41 = vpop.f32.mrb[34].mxu0  ;;  %v2512_v40 = vld [vmem:[%s3116_s8] sm:$0xff]  }
 0xe27   : > { %v2366_v42 = vpop.f32.mrb[35].mxu0  ;;  %v2513_v41 = vld [vmem:[%s3116_s8 + $0x8] sm:$0xff]  }
 0xe2c   : > { %v1567_v44 = vpop.f32.mrb[36].mxu0 }
 0xe2d   : > { %1679 = vrot.lane.b32.xlu1 %v1567_v44, %s3126_s22  ;;  %v2377_v45 = vpop.f32.mrb[37].mxu0  ;;  %s2199_s22 = sshll.u32 %s2706_s13, 7  ;;  %s2634_s13 = smov [#allocation2]  }
 0xe2e   : > { %v1570_v46 = vpop.f32.mrb[38].mxu0  ;;  %s3068_s14 = scalar_lea.hbm %s3117_s9, %s2199_s22  ;;  %s2564_s27 = sshll.u32 %s2634_s13, 4  ;;  %s2565_s27 = int_to_ptr.vmem [resolvable:$false] %s2564_s27 }
 0xe2f   : > { %v2378_v47 = vpop.f32.mrb[39].mxu0  ;;  %v2194_v46 = vld [vmem:[%s3113_s5 + $0x4] ss:$0 sm:$0xff]  ;;  %s2566_s21 = scalar_lea.vmem %s2565_s27, 256 }
 0xe34   : > { %v1668_v48 = vpop.f32.mrb[40].mxu0 }
 0xe35   : > { %1683 = vrot.lane.b32.xlu0 %v1668_v48, %s2629_s17  ;;  %v2389_v49 = vpop.f32.mrb[41].mxu0  ;;  %s2023_s17 = sshll.u32 %s349_s24, 4  ;;  %s3063_s17 = int_to_ptr.vmem [resolvable:$true] %s2023_s17 }
 0xe36   : > { %v1671_v50 = vpop.f32.mrb[42].mxu0  ;;  %s2560_s26 = scalar_lea.vmem %s3063_s17, 128  ;;  %p2567_p0 = scmp.lt.s32.totalorder %s3063_s17, %s2565_s27 }
 0xe37   : > { %v2390_v51 = vpop.f32.mrb[43].mxu0  ;;  %p2561_p11 = scmp.ne.s32.totalorder %s3063_s17, %s2560_s26  ;;  %p2568_p1 = scmp.lt.s32.totalorder %s2566_s21, %s2560_s26 }
 0xe39   : > { %p2562_p12 = pnand %p2561_p11, %p2723_p5  ;;  %p2569_p2 = por %p2568_p1, %p2567_p0 }
 0xe3b   : > { %p2563_p13 = pneg %p2562_p12 }
 0xe3d   : > { %p2570_p3 = pnand %p2569_p2, %p2563_p13 }
 0xe97   : > { %v1676_v52 = vpop.permute.xlu1 %1675 }
 0xe98   : > { %v1686_v54 = vsel %vm471_vm2, %v1354_v34, %v1676_v52 }
 0xe9f   : > { %v1680_v53 = vpop.permute.xlu1 %1679 }
 0xea0   : > { %v1687_v56 = vsel %vm369_vm0, %v1686_v54, %v1680_v53 }
 0xea7   : > { %v1684_v57 = vpop.permute.xlu0 %1683 }
 0xea8   : > { %v1688_v58 = vsel %vm911_vm5, %v1687_v56, %v1684_v57 }
 0xea9   : > { %v1689_v59 = vpack.c.bf16 %v1688_v58, %v1688_v58 }
 0xeab   : > { %2400 = vmatmul.mubr.msk.bf16.vlgmr.msra.gmra.mrb[40].mxu1 %vm946_vm6, %v1689_v59 }
 0xeac   : > { %2427 = vmatprep.mubr.msk.bf16.mxu1 %vm2627_vm1, %v2626_v19  ;;  %2424 = vmatpush3.bf16.msra.mxu1 %v2512_v40 }
 0xead   : > { %2425 = vmatprep.subr.bf16.mxu1 %v2626_v19 }
 0xeb0   : > { %2426 = vmatpush3.bf16.msra.mxu1 %v2513_v41 }
 0xf7e   : > { %v1760_v60 = vpop.f32.mrb[40].mxu1 }
 0xf7f   : > { %v1766_v61 = vadd.f32 %v1760_v60, %v2905_v55  ;;  %v2401_v62 = vpop.f32.mrb[41].mxu1 }
 0xf80   : > { %v1763_v63 = vpop.f32.mrb[42].mxu1 }
 0xf81   : > { %v2402_v0 = vpop.f32.mrb[43].mxu1  ;;  %v1768_v2 = vmul.f32 %v1766_v61, %v1766_v61 }
 0xf83   : > { %v1769_v3 = vsel %vm369_vm0, %v1768_v2, 0.0 }
 0xf84   : > { %1770 = vadd.xlane.f32.xlu1 %v1769_v3 }
0x1011   : > { %v1771_v55 = vpop.xlane.xlu1 %1770 }
0x1012   : > { %v1772_v6 = vmul.f32 0.03125, %v1771_v55 }
0x1014   : > { %v1773_v8 = vadd.f32 1e-06, %v1772_v6 }
0x1016   : > { %2554 = vrsqrt.f32 %v1773_v8 }
0x1020   : > { %v2555_v11 = vpop.eup %2554 }
0x1021   : > { %v1775_v14 = vmul.f32 %v2555_v11, %v1766_v61 }
0x1023   : > { %v1780_v15 = vmul.f32 %v2173_v12, %v1775_v14 }
0x1025   : > { %v1781_v16 = vpack.c.bf16 %v1780_v15, %v1780_v15 }
0x1027   : > { %2408 = vmatmul.mubr.msk.bf16.vlgmr.msra.gmra.mrb[44].mxu0 %vm369_vm0, %v1781_v16 }
0x1028   : > { %2419 = vmatprep.mubr.msk.bf16.mxu0 %vm2627_vm1, %v2626_v19  ;;  %2412 = vmatpush3.bf16.msra.mxu0 %v2508_v17 }
0x1029   : > { %2413 = vmatprep.subr.bf16.mxu0 %v2626_v19 }
0x102c   : > { %2414 = vmatpush3.bf16.msra.mxu0 %v2509_v18 }
0x102d   : > { %2415 = vmatprep.subr.bf16.mxu0 %v2626_v19 }
0x1030   : > { %2416 = vmatpush3.bf16.msra.mxu0 %v2510_v23 }
0x1031   : > { %2417 = vmatprep.subr.bf16.mxu0 %v2626_v19 }
0x1034   : > { %2418 = vmatpush3.bf16.msra.mxu0 %v2511_v24 }
0x10fa   : > { %v1836_v25 = vpop.f32.mrb[44].mxu0 }
0x10fb   : > { %1852 = vrot.lane.b32.xlu0 %v1836_v25, %s2625_s29  ;;  %v2409_v26 = vpop.f32.mrb[45].mxu0  ;;  %v1842_v28 = vmul.f32 %v1836_v25, %v1836_v25 }
0x10fc   : > { %v1839_v27 = vpop.f32.mrb[46].mxu0 }
0x10fd   : > { %v2410_v13 = vpop.f32.mrb[47].mxu0  ;;  %v1843_v9 = vmul.f32 %v1842_v28, %v1836_v25 }
0x10ff   : > { %v1844_v10 = vmul.f32 0.044715, %v1843_v9 }
0x1101   : > { %v1845_v20 = vadd.f32 %v1844_v10, %v1836_v25 }
0x1103   : > { %v1846_v21 = vmul.f32 0.7978846, %v1845_v20 }
0x1105   : > { %2556 = vtanh.f32 %v1846_v21 }
0x110f   : > { %v2557_v1 = vpop.eup %2556 }
0x1110   : > { %v1848_v7 = vadd.f32 1.0, %v2557_v1 }
0x1112   : > { %v1849_v29 = vmul.f32 0.5, %v1848_v7 }
0x1114   : > { %v1850_v30 = vmul.f32 %v1849_v29, %v1836_v25 }
0x116d   : > { %v1853_v31 = vpop.permute.xlu0 %1852 }
0x116e   : > { %v1855_v32 = vmul.f32 %v1853_v31, %v1850_v30 }
0x1170   : > { %v1856_v33 = vpack.c.bf16 %v1855_v32, %v1855_v32 }
0x1172   : > { %2420 = vmatmul.mubr.msk.bf16.vlgmr.msra.gmra.mrb[48].mxu0 %vm946_vm6, %v1856_v33 }
0x1245   : > { %v1927_v34 = vpop.f32.mrb[48].mxu0 }
0x1246   : > { %v1933_v35 = vadd.f32 %v1927_v34, %v1766_v61  ;;  %v2421_v36 = vpop.f32.mrb[49].mxu0 }
0x1247   : > { %v1930_v22 = vpop.f32.mrb[50].mxu0 }
0x1248   : > { %v2422_v37 = vpop.f32.mrb[51].mxu0  ;;  %v1935_v38 = vmul.f32 %v1933_v35, %v1933_v35 }
0x124a   : > { %v1936_v39 = vsel %vm369_vm0, %v1935_v38, 0.0 }
0x124b   : > { %1937 = vadd.xlane.f32.xlu0 %v1936_v39 }
0x12d8   : > { %v1938_v42 = vpop.xlane.xlu0 %1937 }
0x12d9   : > { %v1939_v43 = vmul.f32 0.03125, %v1938_v42 }
0x12db   : > { %v1940_v44 = vadd.f32 1e-06, %v1939_v43 }
0x12dd   : > { %2558 = vrsqrt.f32 %v1940_v44 }
0x12e7   : > { %v2559_v45 = vpop.eup %2558 }
0x12e8   : > { %v1942_v47 = vmul.f32 %v2559_v45, %v1933_v35 }
0x12ea   : > { %v1947_v48 = vmul.f32 %v2194_v46, %v1942_v47 }
0x12ec   : > { %v1948_v49 = vpack.c.bf16 %v1947_v48, %v1947_v48 }
0x12ee   : > { %2428 = vmatmul.mubr.msk.bf16.vlgmr.msra.gmra.mrb[44].mxu1 %vm369_vm0, %v1948_v49 }
0x13c1   : > { %v2002_v19 = vpop.f32.mrb[44].mxu1 }
0x13c2   : > { %2008 = vst [vmem:[%s349_s24] sm:$0xff] %v2002_v19  ;;  %v2429_v50 = vpop.f32.mrb[45].mxu1 }
0x13c3   : > { %v2005_v51 = vpop.f32.mrb[46].mxu1 }
0x13c4   : > { %2573 = shalt.err (!%p2570_p3)
}
0x13c5   : > { %s2574_s25 = scalar_lea.hbm %s3068_s14, 128  ;;  %s2578_s22 = scalar_lea.hbm %s3117_s9, 256 }
0x13c6   : > { %p2575_p4 = scmp.ne.s32.totalorder %s3068_s14, %s2574_s25  ;;  %p2579_p9 = scmp.lt.u32.totalorder %s3068_s14, %s3117_s9 }
0x13c7   : > { %p2580_p10 = scmp.lt.u32.totalorder %s2578_s22, %s2574_s25  ;;  %p2582_p12 = scmp.lt.u32.totalorder %s2574_s25, %s3068_s14 }
0x13c8   : > { %p2576_p7 = pnand %p2575_p4, %p2723_p5 }
0x13c9   : > { %p2581_p11 = por %p2580_p10, %p2579_p9 }
0x13ca   : > { %p2577_p8 = pneg %p2576_p7 }
0x13cb   : > { %p2583_p13 = por %p2582_p12, %p2581_p11 }
0x13cd   : > { %p2584_p0 = pnand %p2583_p13, %p2577_p8 }
0x13cf   : > { %2587 = shalt.err (!%p2584_p0)
}
0x13d0   : > { %2431 = dma.vmem_to_hbm [thread:$0]  (%p2723_p5), %s3063_s17, 128, %s3068_s14, %s2010_s16   ;;  %v2430_v52 = vpop.f32.mrb[47].mxu1 }
0x13d1 PF: > { %p2437_p1 = scmp.ge.s32.totalorder %s2622_s12, 2  ;;  %s2035_s26 = sand.u32 1, %s2610_s30  }
0x13d2   : > { %s2036_s13 = scalar_lea.sflag [#allocation3], %s2035_s26 }
0x13d3   : > { %p2434_p2 = pnand %p2437_p1, %p2727_p6 }
0x13d5   : > { %2605 = dma.done.wait (!%p2434_p2), %s2036_s13, 128  }
0x13d6   : > { %2607 = vsyncadd (!%p2434_p2), %s2036_s13, 4294967168  ;;  %p19_p3 = scmp.ge.s32.totalorder %s2710_s15, 4   ;;  %s3128_s30 = smov %s2614_s10 }
0x13d7   : > { %s3129_s10 = smov %s2618_s11  ;;  %s3130_s11 = smov %s2721_s18 }
0x13d8   : > { %s3131_s12 = smov %s2710_s15  ;;  %21 = sbr.rel (!%p19_p3) target bundleno = 3 (0x3), region = 101 }
0x13df   :  { %2041 = vsyncpa [#allocation3], 1 }
0x13e0   :  { %2043 = vsyncpa [#allocation3 + $0x1], 1 }

// kernel: paligemma_forward.2
= control target key start
LH: loop header
LB: loop body
LE: loop exit
PB: predicated region body
PF: predicated region fallthrough
CT: control target
= control target key end

     0   :  { %s2928_s29 = smov 0   ;;  %s3378_s0 = inlined_call_operand.vmem [shape: f32[2,4,192], index: 0, kind: input, shape index: {}]   ;;  %s3379_s1 = inlined_call_operand.vmem [shape: bf16[192,32], index: 1, kind: input, shape index: {}]   ;;  %s3380_s2 = inlined_call_operand.vmem [shape: f32[4,32], index: 2, kind: input, shape index: {}]   ;;  %s3381_s3 = inlined_call_operand.vmem [shape: f32[2,4,32], index: 3, kind: input, shape index: {}]   ;;  %s3382_s4 = inlined_call_operand.vmem [shape: bf16[2,32,96], index: 4, kind: input, shape index: {}]   ;;  %s3383_s5 = inlined_call_operand.vmem [shape: f32[2,1,96], index: 5, kind: input, shape index: {}]   ;;  %s3384_s6 = inlined_call_operand.vmem [shape: bf16[2,32,32], index: 6, kind: input, shape index: {}]   ;;  %s3385_s7 = inlined_call_operand.vmem [shape: f32[2,2,32], index: 7, kind: input, shape index: {}]   ;;  %s3386_s8 = inlined_call_operand.vmem [shape: bf16[2,32,64], index: 8, kind: input, shape index: {}]   ;;  %s3387_s9 = inlined_call_operand.vmem [shape: f32[2,1,64], index: 9, kind: input, shape index: {}]   ;;  %s3388_s10 = inlined_call_operand.vmem [shape: bf16[2,64,32], index: 10, kind: input, shape index: {}]   ;;  %s3389_s11 = inlined_call_operand.vmem [shape: f32[2,32], index: 11, kind: input, shape index: {}]   ;;  %s3390_s12 = inlined_call_operand.vmem [shape: bf16[32,32], index: 12, kind: input, shape index: {}]   ;;  %s3391_s13 = inlined_call_operand.vmem [shape: f32[1,32], index: 13, kind: input, shape index: {}]   ;;  %s3392_s14 = inlined_call_operand.vmem [shape: f32[2,1,128], index: 14, kind: output, shape index: {}]  }
   0x1 LB: > { %s2380_s30 = sadd.s32 4294967295, %s2833_s29   ;;  %p2384_p0 = scmp.ge.s32.totalorder %s2833_s29, 1  ;;  %s2833_s29 = sphi %s2928_s29, %s24_s29  }
   0x2   : > { %p412_p1 = scmp.lt.s32.totalorder %s2833_s29, 3 }
   0x4   : > { %p413_p2 = pnand %p2384_p0, %p412_p1 }
   0x5   : > { %v2746_v0 = vld [vmem:[%s3379_s1] sm:$0xff] (!%p413_p2)   ;;  %v2835_v1 = vmov (!%p413_p2), 0   ;;  %p456_p3 = scmp.lt.s32.totalorder (!%p413_p2), %s2380_s30, 1  ;;  %v2747_v2 = vld [vmem:[%s3379_s1 + $0x8] sm:$0xff] (!%p413_p2)   ;;  %v2748_v3 = vld [vmem:[%s3379_s1 + $0x10] sm:$0xff] (!%p413_p2)   ;;  %vm568_vm0 = vcmask (!%p413_p2), 523264   ;;  %v629_v34 = vlaneseq (!%p413_p2) }
   0x6   : > { %416 = sbr.rel (%p413_p2) target bundleno = 7074 (0x1ba2), region = 76  ;;  %572 = vmatprep.subr.bf16.mxu0 (!%p413_p2), %v2835_v1  ;;  %v2749_v4 = vld [vmem:[%s3379_s1 + $0x18] sm:$0xff] (!%p413_p2)   ;;  %v2750_v5 = vld [vmem:[%s3379_s1 + $0x20] sm:$0xff] (!%p413_p2)   ;;  %v2751_v9 = vld [vmem:[%s3379_s1 + $0x28] sm:$0xff] (!%p413_p2)   ;;  %vm614_vm1 = vcmask (!%p413_p2), 257024   ;;  %v2836_v30 = vmov (!%p413_p2), 0.0  }
   0x7   : > { %573 = vmatpush1.bf16.msra.mxu0 (!%p413_p2), %v2746_v0  ;;  %v2752_v10 = vld [vmem:[%s3379_s1 + $0x30] sm:$0xff] (!%p413_p2)   ;;  %v2753_v11 = vld [vmem:[%s3379_s1 + $0x38] sm:$0xff] (!%p413_p2)   ;;  %v2754_v12 = vld [vmem:[%s3379_s1 + $0x40] sm:$0xff] (!%p413_p2)   ;;  %2544 = vmatprep.subr.bf16.mxu1 (!%p413_p2), %v2836_v30  ;;  %vm2837_vm2 = vmmov (!%p413_p2), 0   ;;  %v3002_v36 = vshrl.u32 (!%p413_p2), %v629_v34, 7  ;;  %vm663_vm3 = vcmask (!%p413_p2), 261120  }
   0x8   : > { %574 = vmatprep.subr.bf16.mxu0 (!%p413_p2), %v2835_v1  ;;  %v2755_v13 = vld [vmem:[%s3379_s1 + $0x48] sm:$0xff] (!%p413_p2)   ;;  %v2756_v14 = vld [vmem:[%s3379_s1 + $0x50] sm:$0xff] (!%p413_p2)   ;;  %v2757_v15 = vld [vmem:[%s3379_s1 + $0x58] sm:$0xff] (!%p413_p2)   ;;  %2548 = vmatprep.mubr.msk.bf16.mxu1 (!%p413_p2), %vm2837_vm2, %v2836_v30  ;;  %s3399_s25 = smov (!%p413_p2), 64   ;;  %s2839_s26 = smov (!%p413_p2), 96   ;;  %vm711_vm4 = vcmask (!%p413_p2), 64512  }
   0x9   : > { %v495_v17 = vld [vmem:[%s3380_s2] sm:$0xf] (!%p413_p2)  ;;  %v2760_v31 = vld [vmem:[%s3382_s4 + $0x8] sm:$0xff] (!%p413_p2)   ;;  %v3005_v37 = vsub.s32 (!%p413_p2), 0, %v3002_v36  ;;  %v3013_v39 = vsub.s32 (!%p413_p2), 1, %v3002_v36  ;;  %vm778_vm5 = vcmask (!%p413_p2), 1041408  }
   0xa   : > { %v2759_v29 = vld [vmem:[%s3382_s4] sm:$0xff] (!%p413_p2)   ;;  %vm759_vm6 = vcmask (!%p413_p2), 27648   ;;  %s2840_s27 = smov (!%p413_p2), 88   ;;  %s2841_s28 = smov (!%p413_p2), 120   ;;  %vm774_vm7 = vcmask (!%p413_p2), 31744   ;;  %vm1168_vm8 = vcmask (!%p413_p2), 130048  }
   0xb   : > { %575 = vmatpush1.bf16.msra.mxu0 (!%p413_p2), %v2747_v2  ;;  %2545 = vmatpush3.bf16.msra.mxu1 (!%p413_p2), %v2759_v29  ;;  %v3010_v38 = vld [vmem:[%s3381_s3] sm:$0xf] (!%p413_p2)  ;;  %s3398_s15 = smov (!%p413_p2), 56   ;;  %s2843_s16 = smov (!%p413_p2), 80   ;;  %vm1170_vm9 = vcmask (!%p413_p2), 195584   ;;  %vm2330_vm10 = vcmask (!%p413_p2), 785408  }
   0xc   : > { %576 = vmatprep.subr.bf16.mxu0 (!%p413_p2), %v2835_v1  ;;  %2546 = vmatprep.subr.bf16.mxu1 (!%p413_p2), %v2836_v30  ;;  %v632_v40 = vrot.slane (!%p413_p2), %v3010_v38, %v3005_v37  ;;  %v637_v43 = vrot.slane (!%p413_p2), %v3010_v38, %v3013_v39  ;;  %v2400_v47 = vld [vmem:[%s3383_s5] ss:$0 sm:$0xff] (!%p413_p2)  ;;  %s2844_s17 = smov (!%p413_p2), 112   ;;  %s2845_s18 = smov (!%p413_p2), 72  }
   0xd   : > { %s3409_s30 = smov (!%p456_p3, %s2380_s30), 1  ;;  %s2846_s19 = smov 104  }
   0xe   : > { %s2480_s21 = sshll.u32 %s3409_s30, 3  ;;  %s3394_s20 = smov 40  }
   0xf   : > { %s460_s24 = scalar_lea.vmem %s3378_s0, %s2480_s21  ;;  %577 = vmatpush1.bf16.msra.mxu0 %v2748_v3  ;;  %2547 = vmatpush3.bf16.msra.mxu1 %v2760_v31  ;;  %s3395_s21 = smov 48  }
  0x10   : > { %578 = vmatprep.subr.bf16.mxu0 %v2835_v1  ;;  %v465_v6 = vld [vmem:[%s460_s24] sm:$0xff]  ;;  %2552 = vmatprep.subr.bf16.mxu1 %v2836_v30  ;;  %s3393_s22 = smov 8   ;;  %s3396_s23 = smov 24  }
  0x11   : > { %v467_v7 = vcombine.high %v465_v6, %v465_v6  ;;  %v469_v16 = vpack.c.bf16 %v465_v6, %v465_v6  ;;  %s3407_s24 = smov 24  }
  0x13   : > { %579 = vmatpush1.bf16.msra.mxu0 %v2749_v4  ;;  %v470_v8 = vpack.c.bf16 %v467_v7, %v467_v7 }
  0x14   : > { %580 = vmatprep.subr.bf16.mxu0 %v2835_v1 }
  0x15   : > { %2399 = vmatprep.mubr.msk.bf16.mxu0 %vm568_vm0, %v470_v8 }
  0x17   : > { %581 = vmatpush1.bf16.msra.mxu0 %v2750_v5 }
  0x18   : > { %582 = vmatprep.subr.bf16.mxu0 %v2835_v1 }
  0x1b   : > { %583 = vmatpush1.bf16.msra.mxu0 %v2751_v9 }
  0x1c   : > { %584 = vmatprep.subr.bf16.mxu0 %v2835_v1 }
  0x1f   : > { %585 = vmatpush1.bf16.msra.mxu0 %v2752_v10 }
  0x20   : > { %586 = vmatprep.subr.bf16.mxu0 %v2835_v1 }
  0x23   : > { %587 = vmatpush1.bf16.msra.mxu0 %v2753_v11 }
  0x24   : > { %588 = vmatprep.subr.bf16.mxu0 %v2835_v1 }
  0x27   : > { %589 = vmatpush1.bf16.msra.mxu0 %v2754_v12 }
  0x28   : > { %590 = vmatprep.subr.bf16.mxu0 %v2835_v1 }
  0x2b   : > { %591 = vmatpush1.bf16.msra.mxu0 %v2755_v13 }
  0x2c   : > { %592 = vmatprep.subr.bf16.mxu0 %v2835_v1 }
  0x2f   : > { %593 = vmatpush1.bf16.msra.mxu0 %v2756_v14 }
  0x30   : > { %594 = vmatprep.subr.bf16.mxu0 %v2835_v1 }
  0x33   : > { %595 = vmatpush1.bf16.msra.mxu0 %v2757_v15 }
  0x34   : > { %2582 = vmatprep.subr.bf16.mxu0 %v2836_v30 }
  0x36   : > { %605 = vmatmul.mubr.bf16.vlgmr.msra.gmra.mrb[0].mxu0 %v469_v16 }
  0x37   : > { %2584 = vmatprep.mubr.msk.bf16.mxu0 %vm2837_vm2, %v2836_v30 }
 0x109   : > { %v606_v18 = vpop.f32.mrb[0].mxu0 }
 0x10a   : > { %v2982_v19 = vadd.f32 %v606_v18, %v495_v17  ;;  %v608_v20 = vpop.f32.mrb[1].mxu0 }
 0x10b   : > { %v609_v21 = vpop.f32.mrb[2].mxu0 }
 0x10c   : > { %v610_v22 = vpop.f32.mrb[3].mxu0  ;;  %v615_v23 = vsel %vm614_vm1, %v2982_v19, 0.0 }
 0x10d   : > { %616 = vadd.xlane.f32.xlu0 %v615_v23 }
 0x19a   : > { %v617_v24 = vpop.xlane.xlu0 %616 }
 0x19b   : > { %v619_v25 = vmul.f32 0.03125, %v617_v24 }
 0x19d   : > { %v620_v26 = vsub.f32 %v2982_v19, %v619_v25 }
 0x19f   : > { %v621_v27 = vmul.f32 %v620_v26, %v620_v26 }
 0x1a1   : > { %v622_v28 = vsel %vm614_vm1, %v621_v27, 0.0 }
 0x1a2   : > { %623 = vadd.xlane.f32.xlu0 %v622_v28 }
 0x22f   : > { %v624_v32 = vpop.xlane.xlu0 %623 }
 0x230   : > { %v625_v33 = vmul.f32 0.03125, %v624_v32 }
 0x232   : > { %v626_v35 = vadd.f32 1e-06, %v625_v33 }
 0x234   : > { %2781 = vrsqrt.f32 %v626_v35 }
 0x23e   : > { %v2782_v41 = vpop.eup %2781 }
 0x23f   : > { %v628_v42 = vmul.f32 %v2782_v41, %v620_v26 }
 0x241   : > { %v633_v44 = vmul.f32 %v632_v40, %v628_v42 }
 0x243   : > { %v638_v45 = vadd.f32 %v637_v43, %v633_v44 }
 0x245   : > { %v639_v46 = vpack.c.bf16 %v638_v45, %v638_v45 }
 0x247   : > { %2549 = vmatmul.mubr.msk.bf16.vlgmr.msra.gmra.mrb[0].mxu1 %vm663_vm3, %v639_v46 }
 0x248   : > { %2554 = vmatprep.mubr.msk.bf16.mxu1 %vm2837_vm2, %v2836_v30 }
 0x31a   : > { %v701_v48 = vpop.f32.mrb[0].mxu1 }
 0x31b   : > { %v702_v49 = vadd.f32 %v2400_v47, %v701_v48  ;;  %v2550_v50 = vpop.f32.mrb[1].mxu1 }
 0x31c   : > { %v704_v51 = vpop.f32.mrb[2].mxu1 }
 0x31d   : > { %v3025_v52 = vpack.c.bf16 %v702_v49, %v702_v49  ;;  %v2551_v53 = vpop.f32.mrb[3].mxu1 }
 0x31f   : > { %772 = vrot.lane.b32.xlu0 %v3025_v52, %s3399_s25  ;;  %709 = vrot.lane.b32.xlu1 %v3025_v52, %s2839_s26 }
 0x391   : > { %v710_v54 = vpop.permute.xlu1 %709  ;;  %v773_v56 = vpop.permute.xlu0 %772 }
 0x392   : > { %v716_v55 = vsel %vm711_vm4, %v710_v54, 0  ;;  %v780_v57 = vsel %vm778_vm5, %v773_v56, 0 }
 0x393   : > { %2553 = vmatpush3.bf16.xpose.msra.mxu1 %v716_v55 }
 0x394   : > { %2558 = vmatprep.subr.bf16.mxu1 %v2836_v30 }
 0x39a   : > { %2555 = vmatmul.mubr.msk.bf16.vlgmr.msra.gmra.mrb[4].mxu1 %vm711_vm4, %v3025_v52 }
 0x39b   : > { %2559 = vmatpush3.bf16.msra.mxu1 %v780_v57  ;;  %2560 = vmatprep.mubr.msk.bf16.mxu1 %vm2837_vm2, %v2836_v30 }
 0x39c   : > { %2564 = vmatprep.subr.bf16.mxu1 %v2836_v30 }
 0x46d   : > { %v752_v58 = vpop.f32.mrb[4].mxu1 }
 0x46e   : > { %v758_v59 = vmul.f32 0.35355338, %v752_v58  ;;  %v2556_v60 = vpop.f32.mrb[5].mxu1 }
 0x46f   : > { %v755_v61 = vpop.f32.mrb[6].mxu1 }
 0x470   : > { %v2557_v62 = vpop.f32.mrb[7].mxu1  ;;  %v760_v63 = vsel %vm759_vm6, %v758_v59, -inf }
 0x471   : > { %761 = vmax.xlane.f32.xlu1 %v760_v63 }
 0x4fe   : > { %v762_v0 = vpop.xlane.xlu1 %761 }
 0x4ff   : > { %v763_v1 = vsub.f32 %v758_v59, %v762_v0 }
 0x501   : > { %v764_v2 = vmul.f32 1.442695, %v763_v1 }
 0x503   : > { %2783 = vpow2.f32 %v764_v2 }
 0x50d   : > { %v2784_v3 = vpop.eup %2783 }
 0x50e   : > { %v766_v4 = vsel %vm759_vm6, %v2784_v3, 0.0 }
 0x50f   : > { %767 = vadd.xlane.f32.xlu0 %v766_v4 }
 0x525   : > { %824 = vrot.lane.b32.xlu0 %v3025_v52, %s2840_s27 }
 0x529   : > { %822 = vrot.lane.b32.xlu0 %v3025_v52, %s2841_s28 }
 0x59c   : > { %v768_v5 = vpop.xlane.xlu0 %767 }
 0x59d   : > { %2785 = vrcp.f32 %v768_v5 }
 0x5a0   : > { %v825_v8 = vpop.permute.xlu0 %824 }
 0x5a1   : > { %v830_v10 = vsel %vm711_vm4, %v825_v8, 0 }
 0x5a4   : > { %v823_v11 = vpop.permute.xlu0 %822 }
 0x5a7   : > { %v2786_v6 = vpop.eup %2785 }
 0x5a8   : > { %v770_v7 = vmul.f32 %v2786_v6, %v2784_v3 }
 0x5aa   : > { %v771_v9 = vpack.c.bf16 %v770_v7, %v770_v7 }
 0x5ac   : > { %2561 = vmatmul.mubr.msk.bf16.vlgmr.msra.gmra.mrb[8].mxu1 %vm774_vm7, %v771_v9 }
 0x5ad   : > { %2565 = vmatpush3.bf16.xpose.msra.mxu1 %v830_v10  ;;  %2566 = vmatprep.mubr.msk.bf16.mxu1 %vm2837_vm2, %v2836_v30 }
 0x5ae   : > { %2570 = vmatprep.subr.bf16.mxu1 %v2836_v30 }
 0x5b4   : > { %2567 = vmatmul.mubr.msk.bf16.vlgmr.msra.gmra.mrb[12].mxu1 %vm711_vm4, %v823_v11 }
 0x5b5   : > { %2572 = vmatprep.mubr.msk.bf16.mxu1 %vm2837_vm2, %v2836_v30 }
 0x67f   : > { %v3053_v12 = vpop.f32.mrb[8].mxu1 }
 0x680   : > { %v2562_v13 = vpop.f32.mrb[9].mxu1 }
 0x681   : > { %v819_v14 = vpop.f32.mrb[10].mxu1 }
 0x682   : > { %v2563_v15 = vpop.f32.mrb[11].mxu1 }
 0x687   : > { %v866_v16 = vpop.f32.mrb[12].mxu1 }
 0x688   : > { %v872_v17 = vmul.f32 0.35355338, %v866_v16  ;;  %v2568_v18 = vpop.f32.mrb[13].mxu1 }
 0x689   : > { %v869_v20 = vpop.f32.mrb[14].mxu1 }
 0x68a   : > { %v2569_v21 = vpop.f32.mrb[15].mxu1  ;;  %v873_v22 = vsel %vm759_vm6, %v872_v17, -inf }
 0x68b   : > { %874 = vmax.xlane.f32.xlu1 %v873_v22  ;;  %v2761_v21 = vld [vmem:[%s3384_s6] sm:$0xff]   ;;  %v2762_v22 = vld [vmem:[%s3384_s6 + $0x8] sm:$0xff]  }
 0x69c   : > { %885 = vrot.lane.b32.xlu1 %v3025_v52, %s3398_s15 }
 0x6a0   : > { %935 = vrot.lane.b32.xlu1 %v3025_v52, %s2843_s16 }
 0x6a4   : > { %933 = vrot.lane.b32.xlu1 %v3025_v52, %s2844_s17 }
 0x6a8   : > { %1046 = vrot.lane.b32.xlu1 %v3025_v52, %s2845_s18 }
 0x718   : > { %v875_v23 = vpop.xlane.xlu1 %874 }
 0x719   : > { %v876_v24 = vsub.f32 %v872_v17, %v875_v23 }
 0x71b   : > { %v877_v25 = vmul.f32 1.442695, %v876_v24 }
 0x71c   : > { %v886_v26 = vpop.permute.xlu1 %885 }
 0x71d   : > { %2787 = vpow2.f32 %v877_v25  ;;  %v891_v27 = vsel %vm778_vm5, %v886_v26, 0 }
 0x71e   : > { %2571 = vmatpush3.bf16.msra.mxu1 %v891_v27 }
 0x71f   : > { %2576 = vmatprep.subr.bf16.mxu1 %v2836_v30 }
 0x720   : > { %v936_v32 = vpop.permute.xlu1 %935 }
 0x721   : > { %v941_v41 = vsel %vm711_vm4, %v936_v32, 0 }
 0x724   : > { %v934_v40 = vpop.permute.xlu1 %933 }
 0x727   : > { %v2788_v28 = vpop.eup %2787 }
 0x728   : > { %v879_v29 = vsel %vm759_vm6, %v2788_v28, 0.0  ;;  %v1047_v42 = vpop.permute.xlu1 %1046 }
 0x729   : > { %880 = vadd.xlane.f32.xlu0 %v879_v29  ;;  %v1052_v43 = vsel %vm711_vm4, %v1047_v42, 0 }
 0x73f   : > { %1044 = vrot.lane.b32.xlu0 %v3025_v52, %s2846_s19 }
 0x7b6   : > { %v881_v31 = vpop.xlane.xlu0 %880 }
 0x7b7   : > { %2789 = vrcp.f32 %v881_v31 }
 0x7ba   : > { %v1045_v44 = vpop.permute.xlu0 %1044 }
 0x7c1   : > { %v2790_v33 = vpop.eup %2789 }
 0x7c2   : > { %v883_v34 = vmul.f32 %v2790_v33, %v2788_v28 }
 0x7c4   : > { %v884_v35 = vpack.c.bf16 %v883_v34, %v883_v34 }
 0x7c6   : > { %2573 = vmatmul.mubr.msk.bf16.vlgmr.msra.gmra.mrb[16].mxu1 %vm774_vm7, %v884_v35 }
 0x7c7   : > { %2577 = vmatpush3.bf16.xpose.msra.mxu1 %v941_v41  ;;  %2578 = vmatprep.mubr.msk.bf16.mxu1 %vm2837_vm2, %v2836_v30 }
 0x7c8   : > { %2588 = vmatprep.subr.bf16.mxu1 %v2836_v30 }
 0x7ce   : > { %2579 = vmatmul.mubr.msk.bf16.vlgmr.msra.gmra.mrb[20].mxu1 %vm711_vm4, %v934_v40 }
 0x7cf   : > { %2589 = vmatpush3.bf16.xpose.msra.mxu1 %v1052_v43  ;;  %2590 = vmatprep.mubr.msk.bf16.mxu1 %vm2837_vm2, %v2836_v30  ;;  %v3121_v43 = vld [vmem:[%s3385_s7] sm:$0x3] }
 0x7d0   : > { %2600 = vmatprep.subr.bf16.mxu1 %v2836_v30 }
 0x7d6   : > { %2591 = vmatmul.mubr.msk.bf16.vlgmr.msra.gmra.mrb[24].mxu1 %vm711_vm4, %v1045_v44  ;;  %v1236_v44 = vrot.slane %v3121_v43, %v3005_v37 }
 0x7d7   : > { %2604 = vmatprep.mubr.msk.bf16.mxu1 %vm2837_vm2, %v2836_v30  ;;  %2601 = vmatpush3.bf16.msra.mxu1 %v2761_v21 }
 0x7d8   : > { %2602 = vmatprep.subr.bf16.mxu1 %v2836_v30 }
 0x7db   : > { %2603 = vmatpush3.bf16.msra.mxu1 %v2762_v22 }
 0x7dc   : > { %2616 = vmatprep.subr.bf16.mxu1 %v2836_v30 }
 0x899   : > { %v927_v45 = vpop.f32.mrb[16].mxu1 }
 0x89a   : > { %v2574_v46 = vpop.f32.mrb[17].mxu1 }
 0x89b   : > { %v930_v47 = vpop.f32.mrb[18].mxu1 }
 0x89c   : > { %v2575_v48 = vpop.f32.mrb[19].mxu1 }
 0x8a1   : > { %v977_v49 = vpop.f32.mrb[20].mxu1 }
 0x8a2   : > { %v983_v50 = vmul.f32 0.35355338, %v977_v49  ;;  %v2580_v51 = vpop.f32.mrb[21].mxu1 }
 0x8a3   : > { %v980_v53 = vpop.f32.mrb[22].mxu1 }
 0x8a4   : > { %v2581_v54 = vpop.f32.mrb[23].mxu1  ;;  %v984_v55 = vsel %vm759_vm6, %v983_v50, -inf }
 0x8a5   : > { %985 = vmax.xlane.f32.xlu1 %v984_v55 }
 0x8a9   : > { %v1088_v56 = vpop.f32.mrb[24].mxu1 }
 0x8aa   : > { %v1094_v57 = vmul.f32 0.35355338, %v1088_v56  ;;  %v2592_v58 = vpop.f32.mrb[25].mxu1 }
 0x8ab   : > { %v1091_v59 = vpop.f32.mrb[26].mxu1 }
 0x8ac   : > { %v2593_v60 = vpop.f32.mrb[27].mxu1  ;;  %v1095_v61 = vsel %vm759_vm6, %v1094_v57, -inf }
 0x8ad   : > { %1096 = vmax.xlane.f32.xlu0 %v1095_v61  ;;  %v1253_v61 = vsub.s32 2, %v3002_v36 }
 0x8c3   : > { %1107 = vrot.lane.b32.xlu0 %v3025_v52, %s3394_s20 }
 0x932   : > { %v986_v62 = vpop.xlane.xlu1 %985 }
 0x933   : > { %v987_v63 = vsub.f32 %v983_v50, %v986_v62  ;;  %v1258_v62 = vsub.s32 3, %v3002_v36  ;;  %v2776_v36 = vld [vmem:[%s3388_s10 + $0x28] sm:$0xff]  }
 0x935   : > { %v988_v0 = vmul.f32 1.442695, %v987_v63  ;;  %v1254_v63 = vrot.slane %v3010_v38, %v1253_v61 }
 0x937   : > { %2791 = vpow2.f32 %v988_v0 }
 0x93a   : > { %v1097_v1 = vpop.xlane.xlu0 %1096 }
 0x93b   : > { %v1098_v2 = vsub.f32 %v1094_v57, %v1097_v1  ;;  %v2764_v57 = vld [vmem:[%s3386_s8 + $0x8] sm:$0xff]  }
 0x93d   : > { %v1099_v3 = vmul.f32 1.442695, %v1098_v2  ;;  %v1259_v2 = vrot.slane %v3010_v38, %v1258_v62  ;;  %v2767_v38 = vld [vmem:[%s3388_s10 + $0x10] sm:$0xff]  }
 0x93e   : > { %v1108_v15 = vpop.permute.xlu0 %1107 }
 0x93f   : > { %2793 = vpow2.f32 %v1099_v3  ;;  %v1113_v17 = vsel %vm778_vm5, %v1108_v15, 0 }
 0x941   : > { %v2792_v4 = vpop.eup %2791 }
 0x942   : > { %v990_v5 = vsel %vm759_vm6, %v2792_v4, 0.0 }
 0x943   : > { %991 = vadd.xlane.f32.xlu1 %v990_v5 }
 0x949   : > { %v2794_v6 = vpop.eup %2793 }
 0x94a   : > { %v1101_v7 = vsel %vm759_vm6, %v2794_v6, 0.0 }
 0x94b   : > { %1102 = vadd.xlane.f32.xlu1 %v1101_v7  ;;  %v2766_v7 = vld [vmem:[%s3388_s10 + $0x8] sm:$0xff]  }
 0x95c   : > { %996 = vrot.lane.b32.xlu1 %v3025_v52, %s3395_s21  ;;  %s3397_s21 = smov 16  }
 0x960   : > { %1156 = vrot.lane.b32.xlu1 %v927_v45, %s3393_s22 }
 0x9d0   : > { %v992_v8 = vpop.xlane.xlu1 %991 }
 0x9d1   : > { %2795 = vrcp.f32 %v992_v8  ;;  %v2768_v8 = vld [vmem:[%s3388_s10 + $0x18] sm:$0xff]  }
 0x9d8   : > { %v1103_v9 = vpop.xlane.xlu1 %1102 }
 0x9d9   : > { %2797 = vrcp.f32 %v1103_v9  ;;  %v2415_v9 = vld [vmem:[%s3387_s9] ss:$0 sm:$0xff] }
 0x9db   : > { %v2796_v10 = vpop.eup %2795 }
 0x9dc   : > { %v994_v11 = vmul.f32 %v2796_v10, %v2792_v4  ;;  %v997_v13 = vpop.permute.xlu1 %996 }
 0x9dd   : > { %v1002_v14 = vsel %vm778_vm5, %v997_v13, 0 }
 0x9de   : > { %2583 = vmatpush3.bf16.msra.mxu0 %v1002_v14  ;;  %v995_v16 = vpack.c.bf16 %v994_v11, %v994_v11 }
 0x9df   : > { %2594 = vmatprep.subr.bf16.mxu0 %v2836_v30 }
 0x9e0   : > { %v1157_v32 = vpop.permute.xlu1 %1156 }
 0x9e1   : > { %2585 = vmatmul.mubr.msk.bf16.vlgmr.msra.gmra.mrb[4].mxu0 %vm774_vm7, %v995_v16  ;;  %v1167_v34 = vsel %vm711_vm4, %v3053_v12, %v1157_v32 }
 0x9e2   : > { %2595 = vmatpush3.bf16.msra.mxu0 %v1113_v17  ;;  %2596 = vmatprep.mubr.msk.bf16.mxu0 %vm2837_vm2, %v2836_v30 }
 0x9e3   : > { %v2798_v52 = vpop.eup %2797  ;;  %2608 = vmatprep.subr.bf16.mxu0 %v2836_v30 }
 0x9e4   : > { %v1105_v18 = vmul.f32 %v2798_v52, %v2794_v6  ;;  %v2765_v6 = vld [vmem:[%s3388_s10] sm:$0xff]  }
 0x9e6   : > { %v1106_v20 = vpack.c.bf16 %v1105_v18, %v1105_v18 }
 0x9e9   : > { %2597 = vmatmul.mubr.msk.bf16.vlgmr.msra.gmra.mrb[8].mxu0 %vm774_vm7, %v1106_v20 }
 0x9ea   : > { %2612 = vmatprep.mubr.msk.bf16.mxu0 %vm2837_vm2, %v2836_v30 }
 0xab4   : > { %v1038_v23 = vpop.f32.mrb[4].mxu0 }
 0xab5   : > { %1160 = vrot.lane.b32.xlu1 %v1038_v23, %s3397_s21  ;;  %v2586_v24 = vpop.f32.mrb[5].mxu0 }
 0xab6   : > { %v1041_v25 = vpop.f32.mrb[6].mxu0 }
 0xab7   : > { %v2587_v26 = vpop.f32.mrb[7].mxu0 }
 0xab8   : > { %v1349_v26 = vrot.slane %v3121_v43, %v3013_v39  ;;  %v2769_v43 = vld [vmem:[%s3382_s4 + $0x10] sm:$0xff]  }
 0xabc   : > { %v1149_v27 = vpop.f32.mrb[8].mxu0 }
 0xabd   : > { %1164 = vrot.lane.b32.xlu1 %v1149_v27, %s3396_s23  ;;  %v2598_v28 = vpop.f32.mrb[9].mxu0  ;;  %s3406_s23 = smov 16  }
 0xabe   : > { %v1152_v29 = vpop.f32.mrb[10].mxu0 }
 0xabf   : > { %v2599_v31 = vpop.f32.mrb[11].mxu0 }
 0xb27   : > { %v1161_v33 = vpop.permute.xlu1 %1160 }
 0xb28   : > { %v1169_v35 = vsel %vm1168_vm8, %v1167_v34, %v1161_v33 }
 0xb2f   : > { %v1165_v40 = vpop.permute.xlu1 %1164 }
 0xb30   : > { %v1171_v41 = vsel %vm1170_vm9, %v1169_v35, %v1165_v40 }
 0xb31   : > { %v1172_v42 = vpack.c.bf16 %v1171_v41, %v1171_v41 }
 0xb33   : > { %2605 = vmatmul.mubr.msk.bf16.vlgmr.msra.gmra.mrb[28].mxu1 %vm663_vm3, %v1172_v42 }
 0xb34   : > { %2624 = vmatprep.mubr.msk.bf16.mxu1 %vm2837_vm2, %v2836_v30  ;;  %2617 = vmatpush3.bf16.msra.mxu1 %v2765_v6 }
 0xb35   : > { %2618 = vmatprep.subr.bf16.mxu1 %v2836_v30 }
 0xb38   : > { %2619 = vmatpush3.bf16.msra.mxu1 %v2766_v7 }
 0xb39   : > { %2620 = vmatprep.subr.bf16.mxu1 %v2836_v30 }
 0xb3c   : > { %2621 = vmatpush3.bf16.msra.mxu1 %v2767_v38 }
 0xb3d   : > { %2622 = vmatprep.subr.bf16.mxu1 %v2836_v30 }
 0xb40   : > { %2623 = vmatpush3.bf16.msra.mxu1 %v2768_v8 }
 0xb41   : > { %2642 = vmatprep.subr.bf16.mxu1 %v2836_v30 }
 0xc06   : > { %v1226_v12 = vpop.f32.mrb[28].mxu1 }
 0xc07   : > { %v1232_v45 = vadd.f32 %v1226_v12, %v2982_v19  ;;  %v2606_v46 = vpop.f32.mrb[29].mxu1  ;;  %v2763_v19 = vld [vmem:[%s3386_s8] sm:$0xff]   ;;  %v2770_v12 = vld [vmem:[%s3382_s4 + $0x18] sm:$0xff]  }
 0xc08   : > { %v1229_v47 = vpop.f32.mrb[30].mxu1  ;;  %2609 = vmatpush3.bf16.msra.mxu0 %v2763_v19  ;;  %v2431_v19 = vld [vmem:[%s3383_s5 + $0x1] ss:$0 sm:$0xff] }
 0xc09   : > { %v3126_v48 = vadd.f32 %v1236_v44, %v1232_v45  ;;  %v2607_v49 = vpop.f32.mrb[31].mxu1  ;;  %2610 = vmatprep.subr.bf16.mxu0 %v2836_v30 }
 0xc0b   : > { %v1238_v50 = vsel %vm614_vm1, %v3126_v48, 0.0 }
 0xc0c   : > { %1239 = vadd.xlane.f32.xlu1 %v1238_v50  ;;  %2611 = vmatpush3.bf16.msra.mxu0 %v2764_v57 }
 0xc0d   : > { %2628 = vmatprep.subr.bf16.mxu0 %v2836_v30 }
 0xc99   : > { %v1240_v51 = vpop.xlane.xlu1 %1239 }
 0xc9a   : > { %v1241_v53 = vmul.f32 0.03125, %v1240_v51 }
 0xc9c   : > { %v1242_v54 = vsub.f32 %v3126_v48, %v1241_v53 }
 0xc9e   : > { %v1243_v55 = vmul.f32 %v1242_v54, %v1242_v54 }
 0xca0   : > { %v1244_v56 = vsel %vm614_vm1, %v1243_v55, 0.0 }
 0xca1   : > { %1245 = vadd.xlane.f32.xlu0 %v1244_v56 }
 0xd2e   : > { %v1246_v58 = vpop.xlane.xlu0 %1245 }
 0xd2f   : > { %v1247_v59 = vmul.f32 0.03125, %v1246_v58 }
 0xd31   : > { %v1248_v60 = vadd.f32 1e-06, %v1247_v59 }
 0xd33   : > { %2799 = vrsqrt.f32 %v1248_v60 }
 0xd3d   : > { %v2800_v0 = vpop.eup %2799 }
 0xd3e   : > { %v1250_v1 = vmul.f32 %v2800_v0, %v1242_v54 }
 0xd40   : > { %v1255_v3 = vmul.f32 %v1254_v63, %v1250_v1 }
 0xd42   : > { %v1260_v4 = vadd.f32 %v1259_v2, %v1255_v3 }
 0xd44   : > { %v1261_v5 = vpack.c.bf16 %v1260_v4, %v1260_v4 }
 0xd46   : > { %2613 = vmatmul.mubr.msk.bf16.vlgmr.msra.gmra.mrb[12].mxu0 %vm663_vm3, %v1261_v5 }
 0xd47   : > { %2632 = vmatprep.mubr.msk.bf16.mxu0 %vm2837_vm2, %v2836_v30  ;;  %2629 = vmatpush3.bf16.msra.mxu0 %v2769_v43 }
 0xd48   : > { %2630 = vmatprep.subr.bf16.mxu0 %v2836_v30 }
 0xd4b   : > { %2631 = vmatpush3.bf16.msra.mxu0 %v2770_v12 }
 0xd4c   : > { %2636 = vmatprep.subr.bf16.mxu0 %v2836_v30 }
 0xe19   : > { %v1322_v10 = vpop.f32.mrb[12].mxu0 }
 0xe1a   : > { %v1323_v11 = vadd.f32 %v2415_v9, %v1322_v10  ;;  %v2614_v13 = vpop.f32.mrb[13].mxu0 }
 0xe1b   : > { %v1325_v14 = vpop.f32.mrb[14].mxu0 }
 0xe1c   : > { %v1328_v15 = vmul.f32 %v1323_v11, %v1323_v11  ;;  %v2615_v16 = vpop.f32.mrb[15].mxu0 }
 0xe1e   : > { %v1329_v17 = vmul.f32 %v1328_v15, %v1323_v11 }
 0xe20   : > { %v1330_v52 = vmul.f32 0.044715, %v1329_v17 }
 0xe22   : > { %v1331_v18 = vadd.f32 %v1330_v52, %v1323_v11 }
 0xe24   : > { %v1332_v20 = vmul.f32 0.7978846, %v1331_v18 }
 0xe26   : > { %2801 = vtanh.f32 %v1332_v20 }
 0xe30   : > { %v2802_v21 = vpop.eup %2801 }
 0xe31   : > { %v1334_v22 = vadd.f32 1.0, %v2802_v21 }
 0xe33   : > { %v1335_v23 = vmul.f32 0.5, %v1334_v22 }
 0xe35   : > { %v1336_v24 = vmul.f32 %v1335_v23, %v1323_v11 }
 0xe37   : > { %v1337_v25 = vpack.c.bf16 %v1336_v24, %v1336_v24 }
 0xe39   : > { %2625 = vmatmul.mubr.msk.bf16.vlgmr.msra.gmra.mrb[32].mxu1 %vm568_vm0, %v1337_v25 }
 0xe3a   : > { %2644 = vmatprep.mubr.msk.bf16.mxu1 %vm2837_vm2, %v2836_v30 }
 0xf0c   : > { %v1411_v27 = vpop.f32.mrb[32].mxu1 }
 0xf0d   : > { %v1412_v28 = vadd.f32 %v1411_v27, %v1349_v26  ;;  %v2626_v29 = vpop.f32.mrb[33].mxu1 }
 0xf0e   : > { %v1414_v31 = vpop.f32.mrb[34].mxu1 }
 0xf0f   : > { %v3176_v32 = vadd.f32 %v1412_v28, %v3126_v48  ;;  %v2627_v33 = vpop.f32.mrb[35].mxu1  ;;  %v3193_v48 = vld [vmem:[%s3381_s3 + $0x4] sm:$0xf] }
 0xf10   : > { %v1438_v49 = vrot.slane %v3193_v48, %v3005_v37  ;;  %v1443_v53 = vrot.slane %v3193_v48, %v3013_v39 }
 0xf11   : > { %v1422_v34 = vsel %vm614_vm1, %v3176_v32, 0.0 }
 0xf12   : > { %1423 = vadd.xlane.f32.xlu0 %v1422_v34 }
 0xf9f   : > { %v1424_v35 = vpop.xlane.xlu0 %1423 }
 0xfa0   : > { %v1425_v40 = vmul.f32 0.03125, %v1424_v35 }
 0xfa2   : > { %v1426_v41 = vsub.f32 %v3176_v32, %v1425_v40 }
 0xfa4   : > { %v1427_v42 = vmul.f32 %v1426_v41, %v1426_v41 }
 0xfa6   : > { %v1428_v44 = vsel %vm614_vm1, %v1427_v42, 0.0 }
 0xfa7   : > { %1429 = vadd.xlane.f32.xlu1 %v1428_v44 }
0x1034   : > { %v1430_v45 = vpop.xlane.xlu1 %1429 }
0x1035   : > { %v1431_v46 = vmul.f32 0.03125, %v1430_v45 }
0x1037   : > { %v1432_v47 = vadd.f32 1e-06, %v1431_v46 }
0x1039   : > { %2803 = vrsqrt.f32 %v1432_v47 }
0x1043   : > { %v2804_v50 = vpop.eup %2803 }
0x1044   : > { %v1434_v51 = vmul.f32 %v2804_v50, %v1426_v41 }
0x1046   : > { %v1439_v54 = vmul.f32 %v1438_v49, %v1434_v51 }
0x1048   : > { %v1444_v55 = vadd.f32 %v1443_v53, %v1439_v54 }
0x104a   : > { %v1445_v56 = vpack.c.bf16 %v1444_v55, %v1444_v55 }
0x104c   : > { %2633 = vmatmul.mubr.msk.bf16.vlgmr.msra.gmra.mrb[16].mxu0 %vm663_vm3, %v1445_v56 }
0x104d   : > { %2638 = vmatprep.mubr.msk.bf16.mxu0 %vm2837_vm2, %v2836_v30 }
0x111f   : > { %v1508_v57 = vpop.f32.mrb[16].mxu0 }
0x1120   : > { %v1509_v58 = vadd.f32 %v2431_v19, %v1508_v57  ;;  %v2634_v59 = vpop.f32.mrb[17].mxu0 }
0x1121   : > { %v1511_v60 = vpop.f32.mrb[18].mxu0 }
0x1122   : > { %v3205_v63 = vpack.c.bf16 %v1509_v58, %v1509_v58  ;;  %v2635_v0 = vpop.f32.mrb[19].mxu0 }
0x1124   : > { %1627 = vrot.lane.b32.xlu1 %v3205_v63, %s2840_s27  ;;  %1516 = vrot.lane.b32.xlu0 %v3205_v63, %s2839_s26  ;;  %s3401_s27 = smov 64  }
0x1128   : > { %1625 = vrot.lane.b32.xlu1 %v3205_v63, %s2841_s28  ;;  %1738 = vrot.lane.b32.xlu0 %v3205_v63, %s2843_s16  ;;  %s3402_s28 = smov 56   ;;  %s3403_s16 = smov 48  }
0x112c   : > { %1736 = vrot.lane.b32.xlu1 %v3205_v63, %s2844_s17  ;;  %1849 = vrot.lane.b32.xlu0 %v3205_v63, %s2845_s18  ;;  %s3404_s17 = smov 40   ;;  %s3405_s18 = smov 8  }
0x1130   : > { %1847 = vrot.lane.b32.xlu1 %v3205_v63, %s2846_s19 }
0x1196   : > { %v1517_v1 = vpop.permute.xlu0 %1516  ;;  %v1628_v3 = vpop.permute.xlu1 %1627 }
0x1197   : > { %v1522_v2 = vsel %vm711_vm4, %v1517_v1, 0  ;;  %v1633_v4 = vsel %vm711_vm4, %v1628_v3, 0 }
0x1198   : > { %2637 = vmatpush3.bf16.xpose.msra.mxu0 %v1522_v2 }
0x1199   : > { %2648 = vmatprep.subr.bf16.mxu0 %v2836_v30 }
0x119a   : > { %v1739_v5 = vpop.permute.xlu0 %1738  ;;  %v1626_v6 = vpop.permute.xlu1 %1625 }
0x119b   : > { %v1744_v7 = vsel %vm711_vm4, %v1739_v5, 0 }
0x119e   : > { %v1850_v38 = vpop.permute.xlu0 %1849  ;;  %v1737_v8 = vpop.permute.xlu1 %1736 }
0x119f   : > { %2639 = vmatmul.mubr.msk.bf16.vlgmr.msra.gmra.mrb[20].mxu0 %vm711_vm4, %v3205_v63  ;;  %v1855_v9 = vsel %vm711_vm4, %v1850_v38, 0 }
0x11a0   : > { %2649 = vmatpush3.bf16.xpose.msra.mxu0 %v1633_v4  ;;  %2650 = vmatprep.mubr.msk.bf16.mxu0 %vm2837_vm2, %v2836_v30 }
0x11a1   : > { %2660 = vmatprep.subr.bf16.mxu0 %v2836_v30 }
0x11a2   : > { %v1848_v10 = vpop.permute.xlu1 %1847 }
0x11a7   : > { %2651 = vmatmul.mubr.msk.bf16.vlgmr.msra.gmra.mrb[24].mxu0 %vm711_vm4, %v1626_v6 }
0x11a8   : > { %2661 = vmatpush3.bf16.xpose.msra.mxu0 %v1744_v7  ;;  %2662 = vmatprep.mubr.msk.bf16.mxu0 %vm2837_vm2, %v2836_v30 }
0x11a9   : > { %2672 = vmatprep.subr.bf16.mxu0 %v2836_v30 }
0x11af   : > { %2663 = vmatmul.mubr.msk.bf16.vlgmr.msra.gmra.mrb[28].mxu0 %vm711_vm4, %v1737_v8 }
0x11b0   : > { %2673 = vmatpush3.bf16.xpose.msra.mxu0 %v1855_v9  ;;  %2674 = vmatprep.mubr.msk.bf16.mxu0 %vm2837_vm2, %v2836_v30 }
0x11b1   : > { %2684 = vmatprep.subr.bf16.mxu0 %v2836_v30 }
0x11b7   : > { %2675 = vmatmul.mubr.msk.bf16.vlgmr.msra.gmra.mrb[32].mxu0 %vm711_vm4, %v1848_v10 }
0x11b8   : > { %2688 = vmatprep.mubr.msk.bf16.mxu0 %vm2837_vm2, %v2836_v30 }
0x1272   : > { %v1558_v11 = vpop.f32.mrb[20].mxu0 }
0x1273   : > { %v1564_v13 = vmul.f32 0.35355338, %v1558_v11  ;;  %v2640_v14 = vpop.f32.mrb[21].mxu0 }
0x1274   : > { %v1561_v15 = vpop.f32.mrb[22].mxu0 }
0x1275   : > { %v2641_v16 = vpop.f32.mrb[23].mxu0  ;;  %v1565_v17 = vsel %vm759_vm6, %v1564_v13, -inf }
0x1276   : > { %1566 = vmax.xlane.f32.xlu0 %v1565_v17 }
0x127a   : > { %v1669_v52 = vpop.f32.mrb[24].mxu0 }
0x127b   : > { %v1675_v18 = vmul.f32 0.35355338, %v1669_v52  ;;  %v2652_v20 = vpop.f32.mrb[25].mxu0 }
0x127c   : > { %v1672_v21 = vpop.f32.mrb[26].mxu0 }
0x127d   : > { %v2653_v22 = vpop.f32.mrb[27].mxu0  ;;  %v1676_v23 = vsel %vm759_vm6, %v1675_v18, -inf }
0x127e   : > { %1677 = vmax.xlane.f32.xlu1 %v1676_v23 }
0x1282   : > { %v1780_v24 = vpop.f32.mrb[28].mxu0 }
0x1283   : > { %v1786_v25 = vmul.f32 0.35355338, %v1780_v24  ;;  %v2664_v26 = vpop.f32.mrb[29].mxu0 }
0x1284   : > { %v1783_v27 = vpop.f32.mrb[30].mxu0 }
0x1285   : > { %v2665_v28 = vpop.f32.mrb[31].mxu0  ;;  %v1787_v29 = vsel %vm759_vm6, %v1786_v25, -inf }
0x1286   : > { %1788 = vmax.xlane.f32.xlu0 %v1787_v29 }
0x128a   : > { %v1891_v31 = vpop.f32.mrb[32].mxu0 }
0x128b   : > { %v1897_v33 = vmul.f32 0.35355338, %v1891_v31  ;;  %v2676_v34 = vpop.f32.mrb[33].mxu0 }
0x128c   : > { %v1894_v35 = vpop.f32.mrb[34].mxu0  ;;  %v2771_v34 = vld [vmem:[%s3384_s6 + $0x10] sm:$0xff]  }
0x128d   : > { %v2677_v40 = vpop.f32.mrb[35].mxu0  ;;  %v1898_v41 = vsel %vm759_vm6, %v1897_v33, -inf  ;;  %2685 = vmatpush3.bf16.msra.mxu0 %v2771_v34  ;;  %v2772_v35 = vld [vmem:[%s3384_s6 + $0x18] sm:$0xff]  }
0x128e   : > { %1899 = vmax.xlane.f32.xlu0 %v1898_v41  ;;  %2686 = vmatprep.subr.bf16.mxu0 %v2836_v30 }
0x1291   : > { %2687 = vmatpush3.bf16.msra.mxu0 %v2772_v35 }
0x1292   : > { %2700 = vmatprep.subr.bf16.mxu0 %v2836_v30 }
0x1303   : > { %v1567_v42 = vpop.xlane.xlu0 %1566 }
0x1304   : > { %v1568_v44 = vsub.f32 %v1564_v13, %v1567_v42 }
0x1306   : > { %v1569_v43 = vmul.f32 1.442695, %v1568_v44 }
0x1308   : > { %2805 = vpow2.f32 %v1569_v43 }
0x130b   : > { %v1678_v12 = vpop.xlane.xlu1 %1677 }
0x130c   : > { %v1679_v45 = vsub.f32 %v1675_v18, %v1678_v12 }
0x130e   : > { %v1680_v46 = vmul.f32 1.442695, %v1679_v45 }
0x1310   : > { %2807 = vpow2.f32 %v1680_v46 }
0x1312   : > { %v2806_v47 = vpop.eup %2805 }
0x1313   : > { %v1571_v49 = vsel %vm759_vm6, %v2806_v47, 0.0  ;;  %v1789_v50 = vpop.xlane.xlu0 %1788 }
0x1314   : > { %1572 = vadd.xlane.f32.xlu1 %v1571_v49  ;;  %v1790_v58 = vsub.f32 %v1786_v25, %v1789_v50 }
0x1316   : > { %v1791_v59 = vmul.f32 1.442695, %v1790_v58 }
0x131a   : > { %v2808_v51 = vpop.eup %2807 }
0x131b   : > { %v1900_v53 = vpop.xlane.xlu0 %1899  ;;  %v1682_v54 = vsel %vm759_vm6, %v2808_v51, 0.0 }
0x131c   : > { %v1901_v55 = vsub.f32 %v1897_v33, %v1900_v53  ;;  %1683 = vadd.xlane.f32.xlu0 %v1682_v54 }
0x131e   : > { %v1902_v56 = vmul.f32 1.442695, %v1901_v55 }
0x1320   : > { %2809 = vpow2.f32 %v1902_v56  ;;  %v3298_v56 = vld [vmem:[%s3385_s7 + $0x2] sm:$0x3] }
0x1321   : > { %2811 = vpow2.f32 %v1791_v59  ;;  %v2154_v35 = vrot.slane %v3298_v56, %v3013_v39  ;;  %v2779_v39 = vld [vmem:[%s3390_s12] sm:$0xff]  }
0x1325   : > { %1577 = vrot.lane.b32.xlu1 %v3205_v63, %s3401_s27 }
0x132a   : > { %v2810_v19 = vpop.eup %2809 }
0x132b   : > { %v1904_v57 = vsel %vm759_vm6, %v2810_v19, 0.0  ;;  %v2812_v60 = vpop.eup %2811 }
0x132c   : > { %1905 = vadd.xlane.f32.xlu0 %v1904_v57  ;;  %v1793_v0 = vsel %vm759_vm6, %v2812_v60, 0.0 }
0x1342   : > { %1688 = vrot.lane.b32.xlu0 %v3205_v63, %s3402_s28  ;;  %s2852_s28 = smov 32  }
0x1349   : > { %1794 = vadd.xlane.f32.xlu1 %v1793_v0 }
0x135a   : > { %1799 = vrot.lane.b32.xlu1 %v3205_v63, %s3403_s16 }
0x135e   : > { %1910 = vrot.lane.b32.xlu1 %v3205_v63, %s3404_s17 }
0x13a1   : > { %v1573_v1 = vpop.xlane.xlu1 %1572 }
0x13a2   : > { %2813 = vrcp.f32 %v1573_v1 }
0x13a5   : > { %v1578_v2 = vpop.permute.xlu1 %1577 }
0x13a6   : > { %v1583_v3 = vsel %vm778_vm5, %v1578_v2, 0 }
0x13a7   : > { %2643 = vmatpush3.bf16.msra.mxu1 %v1583_v3 }
0x13a8   : > { %2654 = vmatprep.subr.bf16.mxu1 %v2836_v30 }
0x13a9   : > { %v1684_v5 = vpop.xlane.xlu0 %1683 }
0x13aa   : > { %2815 = vrcp.f32 %v1684_v5 }
0x13ac   : > { %v2814_v4 = vpop.eup %2813 }
0x13ad   : > { %v1575_v6 = vmul.f32 %v2814_v4, %v2806_v47 }
0x13af   : > { %v1576_v7 = vpack.c.bf16 %v1575_v6, %v1575_v6 }
0x13b1   : > { %2645 = vmatmul.mubr.msk.bf16.vlgmr.msra.gmra.mrb[36].mxu1 %vm774_vm7, %v1576_v7 }
0x13b2   : > { %2656 = vmatprep.mubr.msk.bf16.mxu1 %vm2837_vm2, %v2836_v30 }
0x13b4   : > { %v2816_v38 = vpop.eup %2815 }
0x13b5   : > { %v1686_v8 = vmul.f32 %v2816_v38, %v2808_v51 }
0x13b7   : > { %v1687_v11 = vpack.c.bf16 %v1686_v8, %v1686_v8 }
0x13b9   : > { %v1906_v63 = vpop.xlane.xlu0 %1905 }
0x13bd   : > { %v1689_v9 = vpop.permute.xlu0 %1688 }
0x13be   : > { %v1694_v10 = vsel %vm778_vm5, %v1689_v9, 0  ;;  %v2056_v9 = vrot.slane %v3193_v48, %v1253_v61  ;;  %v2777_v61 = vld [vmem:[%s3388_s10 + $0x30] sm:$0xff]  }
0x13bf   : > { %2655 = vmatpush3.bf16.msra.mxu1 %v1694_v10 }
0x13c0   : > { %2666 = vmatprep.subr.bf16.mxu1 %v2836_v30 }
0x13c2   : > { %2657 = vmatmul.mubr.msk.bf16.vlgmr.msra.gmra.mrb[40].mxu1 %vm774_vm7, %v1687_v11 }
0x13c3   : > { %2668 = vmatprep.mubr.msk.bf16.mxu1 %vm2837_vm2, %v2836_v30 }
0x13d6   : > { %v1795_v13 = vpop.xlane.xlu1 %1794 }
0x13d7   : > { %2817 = vrcp.f32 %v1795_v13  ;;  %v2061_v13 = vrot.slane %v3193_v48, %v1258_v62  ;;  %v2778_v62 = vld [vmem:[%s3388_s10 + $0x38] sm:$0xff]   ;;  %v2455_v48 = vld [vmem:[%s3387_s9 + $0x1] ss:$0 sm:$0xff] }
0x13d8   : > { %2819 = vrcp.f32 %v1906_v63 }
0x13da   : > { %v1800_v14 = vpop.permute.xlu1 %1799 }
0x13db   : > { %v1805_v15 = vsel %vm778_vm5, %v1800_v14, 0 }
0x13dc   : > { %2667 = vmatpush3.bf16.msra.mxu1 %v1805_v15 }
0x13dd   : > { %2678 = vmatprep.subr.bf16.mxu1 %v2836_v30 }
0x13de   : > { %v1911_v52 = vpop.permute.xlu1 %1910 }
0x13df   : > { %v1916_v21 = vsel %vm778_vm5, %v1911_v52, 0 }
0x13e1   : > { %v2818_v16 = vpop.eup %2817 }
0x13e2   : > { %v1797_v17 = vmul.f32 %v2818_v16, %v2812_v60  ;;  %v2820_v20 = vpop.eup %2819 }
0x13e3   : > { %v1908_v22 = vmul.f32 %v2820_v20, %v2810_v19  ;;  %v2038_v19 = vrot.slane %v3298_v56, %v3005_v37  ;;  %v2773_v37 = vld [vmem:[%s3386_s8 + $0x10] sm:$0xff]  }
0x13e4   : > { %v1798_v18 = vpack.c.bf16 %v1797_v17, %v1797_v17  ;;  %v2775_v17 = vld [vmem:[%s3388_s10 + $0x20] sm:$0xff]  }
0x13e5   : > { %v1909_v23 = vpack.c.bf16 %v1908_v22, %v1908_v22 }
0x13e6   : > { %2669 = vmatmul.mubr.msk.bf16.vlgmr.msra.gmra.mrb[44].mxu1 %vm774_vm7, %v1798_v18 }
0x13e7   : > { %2679 = vmatpush3.bf16.msra.mxu1 %v1916_v21  ;;  %2680 = vmatprep.mubr.msk.bf16.mxu1 %vm2837_vm2, %v2836_v30 }
0x13e8   : > { %2692 = vmatprep.subr.bf16.mxu1 %v2836_v30 }
0x13ee   : > { %2681 = vmatmul.mubr.msk.bf16.vlgmr.msra.gmra.mrb[48].mxu1 %vm774_vm7, %v1909_v23 }
0x13ef   : > { %2696 = vmatprep.mubr.msk.bf16.mxu1 %vm2837_vm2, %v2836_v30  ;;  %2693 = vmatpush3.bf16.msra.mxu1 %v2773_v37 }
0x13f0   : > { %2694 = vmatprep.subr.bf16.mxu1 %v2836_v30 }
0x1484   : > { %v1619_v24 = vpop.f32.mrb[36].mxu1 }
0x1485   : > { %v2646_v25 = vpop.f32.mrb[37].mxu1 }
0x1486   : > { %v1622_v26 = vpop.f32.mrb[38].mxu1 }
0x1487   : > { %v2647_v27 = vpop.f32.mrb[39].mxu1 }
0x1495   : > { %v1730_v28 = vpop.f32.mrb[40].mxu1 }
0x1496   : > { %1959 = vrot.lane.b32.xlu0 %v1730_v28, %s3405_s18  ;;  %v2658_v29 = vpop.f32.mrb[41].mxu1  ;;  %s463_s18 = scalar_lea.vmem %s3392_s14, %s3409_s30 }
0x1497   : > { %v1733_v31 = vpop.f32.mrb[42].mxu1 }
0x1498   : > { %v2659_v33 = vpop.f32.mrb[43].mxu1 }
0x14b9   : > { %v1841_v40 = vpop.f32.mrb[44].mxu1 }
0x14ba   : > { %1963 = vrot.lane.b32.xlu1 %v1841_v40, %s3406_s23  ;;  %v2670_v41 = vpop.f32.mrb[45].mxu1 }
0x14bb   : > { %v1844_v42 = vpop.f32.mrb[46].mxu1 }
0x14bc   : > { %v2671_v44 = vpop.f32.mrb[47].mxu1 }
0x14c1   : > { %v1952_v43 = vpop.f32.mrb[48].mxu1 }
0x14c2   : > { %1967 = vrot.lane.b32.xlu0 %v1952_v43, %s3407_s24  ;;  %v2682_v12 = vpop.f32.mrb[49].mxu1 }
0x14c3   : > { %v1955_v45 = vpop.f32.mrb[50].mxu1 }
0x14c4   : > { %v2683_v46 = vpop.f32.mrb[51].mxu1 }
0x1508   : > { %v1960_v47 = vpop.permute.xlu0 %1959 }
0x1509   : > { %v1970_v50 = vsel %vm711_vm4, %v1619_v24, %v1960_v47 }
0x152c   : > { %v1964_v49 = vpop.permute.xlu1 %1963 }
0x152d   : > { %v1971_v51 = vsel %vm1168_vm8, %v1970_v50, %v1964_v49 }
0x1534   : > { %v1968_v53 = vpop.permute.xlu0 %1967 }
0x1535   : > { %v1972_v54 = vsel %vm1170_vm9, %v1971_v51, %v1968_v53  ;;  %v2780_v53 = vld [vmem:[%s3390_s12 + $0x8] sm:$0xff]  }
0x1536   : > { %v1973_v55 = vpack.c.bf16 %v1972_v54, %v1972_v54 }
0x1538   : > { %2689 = vmatmul.mubr.msk.bf16.vlgmr.msra.gmra.mrb[36].mxu0 %vm663_vm3, %v1973_v55 }
0x1539   : > { %2708 = vmatprep.mubr.msk.bf16.mxu0 %vm2837_vm2, %v2836_v30  ;;  %2701 = vmatpush3.bf16.msra.mxu0 %v2775_v17 }
0x153a   : > { %2702 = vmatprep.subr.bf16.mxu0 %v2836_v30 }
0x153d   : > { %2703 = vmatpush3.bf16.msra.mxu0 %v2776_v36 }
0x153e   : > { %2704 = vmatprep.subr.bf16.mxu0 %v2836_v30 }
0x1541   : > { %2705 = vmatpush3.bf16.msra.mxu0 %v2777_v61 }
0x1542   : > { %2706 = vmatprep.subr.bf16.mxu0 %v2836_v30 }
0x1545   : > { %2707 = vmatpush3.bf16.msra.mxu0 %v2778_v62 }
0x160b   : > { %v2028_v57 = vpop.f32.mrb[36].mxu0 }
0x160c   : > { %v2034_v58 = vadd.f32 %v2028_v57, %v3176_v32  ;;  %v2690_v59 = vpop.f32.mrb[37].mxu0  ;;  %v2774_v32 = vld [vmem:[%s3386_s8 + $0x18] sm:$0xff]   ;;  %v2472_v57 = vld [vmem:[%s3389_s11] ss:$0 sm:$0xff] }
0x160d   : > { %v2031_v60 = vpop.f32.mrb[38].mxu0  ;;  %2695 = vmatpush3.bf16.msra.mxu1 %v2774_v32  ;;  %v2473_v59 = vld [vmem:[%s3389_s11 + $0x1] ss:$0 sm:$0xff] }
0x160e   : > { %v3303_v0 = vadd.f32 %v2038_v19, %v2034_v58  ;;  %v2691_v1 = vpop.f32.mrb[39].mxu0  ;;  %2712 = vmatprep.subr.bf16.mxu1 %v2836_v30 }
0x1610   : > { %v2040_v2 = vsel %vm614_vm1, %v3303_v0, 0.0 }
0x1611   : > { %2041 = vadd.xlane.f32.xlu1 %v2040_v2 }
0x169e   : > { %v2042_v3 = vpop.xlane.xlu1 %2041 }
0x169f   : > { %v2043_v4 = vmul.f32 0.03125, %v2042_v3 }
0x16a1   : > { %v2044_v5 = vsub.f32 %v3303_v0, %v2043_v4 }
0x16a3   : > { %v2045_v6 = vmul.f32 %v2044_v5, %v2044_v5 }
0x16a5   : > { %v2046_v7 = vsel %vm614_vm1, %v2045_v6, 0.0 }
0x16a6   : > { %2047 = vadd.xlane.f32.xlu0 %v2046_v7 }
0x1733   : > { %v2048_v38 = vpop.xlane.xlu0 %2047 }
0x1734   : > { %v2049_v63 = vmul.f32 0.03125, %v2048_v38 }
0x1736   : > { %v2050_v8 = vadd.f32 1e-06, %v2049_v63 }
0x1738   : > { %2821 = vrsqrt.f32 %v2050_v8 }
0x1742   : > { %v2822_v10 = vpop.eup %2821 }
0x1743   : > { %v2052_v11 = vmul.f32 %v2822_v10, %v2044_v5 }
0x1745   : > { %v2057_v14 = vmul.f32 %v2056_v9, %v2052_v11 }
0x1747   : > { %v2062_v15 = vadd.f32 %v2061_v13, %v2057_v14 }
0x1749   : > { %v2063_v16 = vpack.c.bf16 %v2062_v15, %v2062_v15 }
0x174b   : > { %2697 = vmatmul.mubr.msk.bf16.vlgmr.msra.gmra.mrb[52].mxu1 %vm663_vm3, %v2063_v16 }
0x174c   : > { %2716 = vmatprep.mubr.msk.bf16.mxu1 %vm2837_vm2, %v2836_v30  ;;  %2713 = vmatpush3.bf16.msra.mxu1 %v2779_v39 }
0x174d   : > { %2714 = vmatprep.subr.bf16.mxu1 %v2836_v30  ;;  %v2474_v30 = vld [vmem:[%s3391_s13] ss:$0 sm:$0xff] }
0x1750   : > { %2715 = vmatpush3.bf16.msra.mxu1 %v2780_v53 }
0x181e   : > { %v2126_v52 = vpop.f32.mrb[52].mxu1 }
0x181f   : > { %v2127_v18 = vadd.f32 %v2455_v48, %v2126_v52  ;;  %v2698_v20 = vpop.f32.mrb[53].mxu1 }
0x1820   : > { %v2129_v21 = vpop.f32.mrb[54].mxu1 }
0x1821   : > { %v2132_v22 = vmul.f32 %v2127_v18, %v2127_v18  ;;  %v2699_v23 = vpop.f32.mrb[55].mxu1 }
0x1823   : > { %v2133_v24 = vmul.f32 %v2132_v22, %v2127_v18 }
0x1825   : > { %v2134_v25 = vmul.f32 0.044715, %v2133_v24 }
0x1827   : > { %v2135_v26 = vadd.f32 %v2134_v25, %v2127_v18 }
0x1829   : > { %v2136_v27 = vmul.f32 0.7978846, %v2135_v26 }
0x182b   : > { %2823 = vtanh.f32 %v2136_v27 }
0x1835   : > { %v2824_v28 = vpop.eup %2823 }
0x1836   : > { %v2138_v29 = vadd.f32 1.0, %v2824_v28 }
0x1838   : > { %v2139_v31 = vmul.f32 0.5, %v2138_v29 }
0x183a   : > { %v2140_v33 = vmul.f32 %v2139_v31, %v2127_v18 }
0x183c   : > { %v2141_v34 = vpack.c.bf16 %v2140_v33, %v2140_v33 }
0x183e   : > { %2709 = vmatmul.mubr.msk.bf16.vlgmr.msra.gmra.mrb[40].mxu0 %vm568_vm0, %v2141_v34 }
0x1911   : > { %v2216_v40 = vpop.f32.mrb[40].mxu0 }
0x1912   : > { %v2217_v41 = vadd.f32 %v2216_v40, %v2154_v35  ;;  %v2710_v42 = vpop.f32.mrb[41].mxu0 }
0x1913   : > { %v2219_v44 = vpop.f32.mrb[42].mxu0 }
0x1914   : > { %v2711_v43 = vpop.f32.mrb[43].mxu0  ;;  %v2222_v12 = vadd.f32 %v2217_v41, %v3303_v0 }
0x1916   : > { %v2225_v45 = vsel %vm614_vm1, %v2222_v12, 0.0 }
0x1917   : > { %2226 = vadd.xlane.f32.xlu0 %v2225_v45 }
0x19a4   : > { %v2227_v46 = vpop.xlane.xlu0 %2226 }
0x19a5   : > { %v2228_v47 = vmul.f32 0.03125, %v2227_v46 }
0x19a7   : > { %v2229_v49 = vsub.f32 %v2222_v12, %v2228_v47 }
0x19a9   : > { %v2230_v50 = vmul.f32 %v2229_v49, %v2229_v49 }
0x19ab   : > { %v2231_v51 = vsel %vm614_vm1, %v2230_v50, 0.0 }
0x19ac   : > { %2232 = vadd.xlane.f32.xlu1 %v2231_v51 }
0x1a39   : > { %v2233_v54 = vpop.xlane.xlu1 %2232 }
0x1a3a   : > { %v2234_v55 = vmul.f32 0.03125, %v2233_v54 }
0x1a3c   : > { %v2235_v56 = vadd.f32 1e-06, %v2234_v55 }
0x1a3e   : > { %2825 = vrsqrt.f32 %v2235_v56 }
0x1a48   : > { %v2826_v19 = vpop.eup %2825 }
0x1a49   : > { %v2237_v58 = vmul.f32 %v2826_v19, %v2229_v49 }
0x1a4b   : > { %v2242_v60 = vmul.f32 %v2472_v57, %v2237_v58 }
0x1a4d   : > { %v2247_v0 = vadd.f32 %v2473_v59, %v2242_v60 }
0x1a4f   : > { %v2248_v1 = vpack.c.bf16 %v2247_v0, %v2247_v0 }
0x1a51   : > { %2717 = vmatmul.mubr.msk.bf16.vlgmr.msra.gmra.mrb[56].mxu1 %vm663_vm3, %v2248_v1 }
0x1b24   : > { %v2309_v2 = vpop.f32.mrb[56].mxu1 }
0x1b25   : > { %v2310_v3 = vadd.f32 %v2474_v30, %v2309_v2  ;;  %v2718_v4 = vpop.f32.mrb[57].mxu1 }
0x1b26   : > { %v2312_v5 = vpop.f32.mrb[58].mxu1 }
0x1b27   : > { %v2719_v6 = vpop.f32.mrb[59].mxu1  ;;  %v2320_v7 = vrot.slane %v2310_v3, 2  ;;  %v2316_v37 = vrot.slane %v2310_v3, 1  ;;  %v2324_v32 = vrot.slane %v2310_v3, 3 }
0x1b29   : > { %2321 = vrot.lane.b32.xlu1 %v2320_v7, %s3401_s27  ;;  %2317 = vrot.lane.b32.xlu0 %v2316_v37, %s2852_s28 }
0x1b2d   : > { %2325 = vrot.lane.b32.xlu1 %v2324_v32, %s2839_s26 }
0x1b9b   : > { %v2322_v38 = vpop.permute.xlu1 %2321  ;;  %v2318_v63 = vpop.permute.xlu0 %2317 }
0x1b9c   : > { %v2328_v8 = vsel %vm663_vm3, %v2310_v3, %v2318_v63 }
0x1b9d   : > { %v2329_v10 = vsel %vm568_vm0, %v2328_v8, %v2322_v38 }
0x1b9f   : > { %v2326_v9 = vpop.permute.xlu1 %2325 }
0x1ba0   : > { %v2331_v11 = vsel %vm2330_vm10, %v2329_v10, %v2326_v9 }
0x1ba1   : > { %2332 = vst [vmem:[%s463_s18] sm:$0x1] %v2331_v11 }
0x1ba2 PF: > { %s24_s29 = sadd.s32 1, %s2833_s29  }
0x1ba3   : > { %p21_p4 = scmp.ge.s32.totalorder %s24_s29, 4  }
0x1ba5   :  { %23 = sbr.rel (!%p21_p4) target bundleno = 1 (0x1), region = 114 }

</bundles_post_ra>
